<compile_context>
chip_gen: v7x
topology: tpu7x:2x2x1
jax: 0.10.0
libtpu: 0.0.40
codegen_flags: <defaults>
</compile_context>

<pallas_src>
import numpy as np
import jax
import jax.numpy as jnp
from jax import lax
from jax.experimental import pallas as pl
from jax.experimental.pallas import tpu as pltpu

IMG = 28               # input spatial size
K = 5                  # conv kernel size
C_OUT = 9              # conv output channels
POOL_OUT = 6           # pooled spatial size (6x6)
FLAT = C_OUT * POOL_OUT * POOL_OUT   # 324, PyTorch .view() length
IN_FLAT = IMG * IMG                  # 784
N_WIN = 4              # 2x2 max-pool window positions
N_OUT = 10
N_OUT_PAD = 128        # pad linear output to a full lane group
MAX_TB = 256           # batch tile (images per grid step)


# ---------------------------------------------------------------------------
# Pallas kernel
# ---------------------------------------------------------------------------
def net_kernel(x_ref, wd_ref, nb_ref, lw_ref, lb_ref, out_ref):
    # x_ref   : (TB, 784)        raw flattened images
    # wd_ref  : (4, 784, 324)    dense "conv as matmul" weight, one slab per
    #                            2x2 pool-window position; columns already in
    #                            PyTorch (c, ph, pw) flatten order
    # nb_ref  : (4, 1, 324)      conv(noise) per window position (noise fold)
    # lw_ref  : (324, 128)       linear weight, zero-padded to 128 lanes
    # lb_ref  : (1, 128)         linear bias, zero-padded
    # out_ref : (TB, 128)
    x = x_ref[...]

    # Stride-2 conv for each pool-window position as one big MXU matmul each
    # (M = TB keeps the MXU full); the noise add is folded in as a bias.
    c0 = jnp.dot(x, wd_ref[0], preferred_element_type=jnp.float32) + nb_ref[0]
    c1 = jnp.dot(x, wd_ref[1], preferred_element_type=jnp.float32) + nb_ref[1]
    c2 = jnp.dot(x, wd_ref[2], preferred_element_type=jnp.float32) + nb_ref[2]
    c3 = jnp.dot(x, wd_ref[3], preferred_element_type=jnp.float32) + nb_ref[3]

    pooled = jnp.maximum(jnp.maximum(c0, c1), jnp.maximum(c2, c3))   # MaxPool2d(2,2)
    act = jnp.maximum(pooled, 0.0)                                   # ReLU

    # Linear(324 -> 10), padded to 128 output lanes (unmasked stores).
    out_ref[...] = (jnp.dot(act, lw_ref[...], preferred_element_type=jnp.float32)
                    + lb_ref[...])


# ---------------------------------------------------------------------------
# One-time (load-time) parameter preprocessing — host-side numpy glue
# ---------------------------------------------------------------------------
def _dense_conv_weight(conv_w_np):
    """(9,1,5,5) conv weight -> (4, 784, 324) dense weight.

    wd[w, h*28 + i, c*36 + ph*6 + pw] = conv_w[c, 0, kh, kw]  with
      dh, dw = w // 2, w % 2 ;  oh, ow = 2*ph + dh, 2*pw + dw
      h = 2*oh + kh          ;  i = 2*ow + kw
    so that (x_flat @ wd[w])[:, col] == conv(x)[:, c, 2*ph+dh, 2*pw+dw].
    """
    wd = np.zeros((N_WIN, IMG, IMG, FLAT), np.float32)
    for dh in range(2):
        for dw in range(2):
            w = dh * 2 + dw
            for c in range(C_OUT):
                for ph in range(POOL_OUT):
                    for pw in range(POOL_OUT):
                        col = c * POOL_OUT * POOL_OUT + ph * POOL_OUT + pw
                        h0 = 2 * (2 * ph + dh)
                        w0 = 2 * (2 * pw + dw)
                        wd[w, h0:h0 + K, w0:w0 + K, col] = conv_w_np[c, 0]
    return wd.reshape(N_WIN, IN_FLAT, FLAT)


def prepare_params(noise, conv_w, lin_w, lin_b):
    """Preprocess Net parameters into the kernel layout (done once)."""
    wd = _dense_conv_weight(np.asarray(conv_w, dtype=np.float32))
    noise_flat = np.asarray(noise, dtype=np.float32).reshape(IN_FLAT)
    nb = np.einsum("j,wjc->wc", noise_flat, wd).reshape(N_WIN, 1, FLAT)
    lwp = np.zeros((FLAT, N_OUT_PAD), np.float32)
    lwp[:, :N_OUT] = np.asarray(lin_w, dtype=np.float32).T
    lbp = np.zeros((1, N_OUT_PAD), np.float32)
    lbp[0, :N_OUT] = np.asarray(lin_b, dtype=np.float32)
    return (jnp.asarray(wd), jnp.asarray(nb.astype(np.float32)),
            jnp.asarray(lwp), jnp.asarray(lbp))


# ---------------------------------------------------------------------------
# Forward pass
# ---------------------------------------------------------------------------
def _round_up(n, m):
    return ((n + m - 1) // m) * m


@jax.jit
def net_forward(x, wd, nb, lwp, lbp):
    b = x.shape[0]
    xf = x.reshape(b, IN_FLAT)                     # (B, 784), layout-only

    tb = min(MAX_TB, _round_up(b, 8))              # images per grid step
    pb = _round_up(b, tb)
    if pb != b:
        xf = jnp.pad(xf, ((0, pb - b), (0, 0)))

    out = pl.pallas_call(
        net_kernel,
        out_shape=jax.ShapeDtypeStruct((pb, N_OUT_PAD), jnp.float32),
        grid_spec=pltpu.PrefetchScalarGridSpec(
            num_scalar_prefetch=0,
            grid=(pb // tb,),
            in_specs=[
                pl.BlockSpec((tb, IN_FLAT), lambda i: (i, 0)),
                pl.BlockSpec((N_WIN, IN_FLAT, FLAT), lambda i: (0, 0, 0)),
                pl.BlockSpec((N_WIN, 1, FLAT), lambda i: (0, 0, 0)),
                pl.BlockSpec((FLAT, N_OUT_PAD), lambda i: (0, 0)),
                pl.BlockSpec((1, N_OUT_PAD), lambda i: (0, 0)),
            ],
            out_specs=pl.BlockSpec((tb, N_OUT_PAD), lambda i: (i, 0)),
        ),
        compiler_params=pltpu.CompilerParams(
            dimension_semantics=("parallel",)),     # independent batch blocks
    )(xf, wd, nb, lwp, lbp)
    return out[:b, :N_OUT]


# ---------------------------------------------------------------------------
# Pure-JAX reference mirroring the PyTorch forward
# ---------------------------------------------------------------------------
def reference(x, noise, conv_w, lin_w, lin_b):
    xp = x + noise
    conv = lax.conv_general_dilated(
        xp, conv_w, window_strides=(2, 2), padding="VALID",
        dimension_numbers=("NCHW", "OIHW", "NCHW"))
    pooled = lax.reduce_window(conv, -jnp.inf, lax.max,
                               (1, 1, 2, 2), (1, 1, 2, 2), "VALID")
    act = jnp.maximum(pooled, 0.0)
    flat = act.reshape(act.shape[0], -1)
    return flat @ lin_w.T + lin_b


if __name__ == "__main__":
    key = jax.random.PRNGKey(0)
    kx, kn, kc, klw, klb = jax.random.split(key, 5)

    # deterministic parameters (shapes from Net.__init__); synthetic init
    batch = 2
    x = jax.random.normal(kx, (batch, 1, IMG, IMG), dtype=jnp.float32)
    noise = jax.random.uniform(kn, (1, 1, IMG, IMG), minval=-1.0, maxval=1.0,
                               dtype=jnp.float32)
    conv_w = jax.random.uniform(kc, (C_OUT, 1, K, K), minval=-0.2, maxval=0.2,
                                dtype=jnp.float32)
    bound = 1.0 / np.sqrt(FLAT)
    lin_w = jax.random.uniform(klw, (N_OUT, FLAT), minval=-bound, maxval=bound,
                               dtype=jnp.float32)
    lin_b = jax.random.uniform(klb, (N_OUT,), minval=-bound, maxval=bound,
                               dtype=jnp.float32)

    params = prepare_params(noise, conv_w, lin_w, lin_b)   # one-time prep
    out = jax.block_until_ready(net_forward(x, *params))
    ref = reference(x, noise, conv_w, lin_w, lin_b)
    np.testing.assert_allclose(np.asarray(out), np.asarray(ref),
                               rtol=1e-4, atol=1e-4)

    # mirror the PyTorch forward's debug print of self.noise[0, 0, 0, 0]
    print("{:.5f}".format(float(noise[0, 0, 0, 0])))
    print("KERNEL_OK")
</pallas_src>

<mosaic_0001>
module attributes {stable_mosaic.version = 11 : i64} {
  func.func @net_kernel(%arg0: i32, %arg1: memref<8x784xf32, #tpu.memory_space<vmem>>, %arg2: memref<4x784x324xf32, #tpu.memory_space<vmem>>, %arg3: memref<4x1x324xf32, #tpu.memory_space<vmem>>, %arg4: memref<324x128xf32, #tpu.memory_space<vmem>>, %arg5: memref<1x128xf32, #tpu.memory_space<vmem>>, %arg6: memref<8x128xf32, #tpu.memory_space<vmem>>) attributes {dimension_semantics = [#tpu.dimension_semantics<parallel>], iteration_bounds = array<i64: 1>, scalar_prefetch = 0 : i64, scratch_operands = 0 : i64, tpu.core_type = #tpu.core_type<tc>, window_params = [{transform_indices = @transform_0, window_bounds = array<i64: 8, 784>}, {pipeline_mode = #tpu.pipeline_mode<synchronous>, transform_indices = @transform_1, window_bounds = array<i64: 4, 784, 324>}, {pipeline_mode = #tpu.pipeline_mode<synchronous>, transform_indices = @transform_2, window_bounds = array<i64: 4, 1, 324>}, {pipeline_mode = #tpu.pipeline_mode<synchronous>, transform_indices = @transform_3, window_bounds = array<i64: 324, 128>}, {pipeline_mode = #tpu.pipeline_mode<synchronous>, transform_indices = @transform_4, window_bounds = array<i64: 1, 128>}, {transform_indices = @transform_5, window_bounds = array<i64: 8, 128>}]} {
    %c0 = arith.constant 0 : index
    %c0_0 = arith.constant 0 : index
    %0 = vector.load %arg1[%c0, %c0_0] : memref<8x784xf32, #tpu.memory_space<vmem>>, vector<8x784xf32>
    %c0_1 = arith.constant 0 : index
    %c0_2 = arith.constant 0 : index
    %c0_3 = arith.constant 0 : index
    %1 = vector.load %arg2[%c0_1, %c0_2, %c0_3] : memref<4x784x324xf32, #tpu.memory_space<vmem>>, vector<1x784x324xf32>
    %2 = vector.shape_cast %1 : vector<1x784x324xf32> to vector<784x324xf32>
    %cst = arith.constant dense<0.000000e+00> : vector<8x324xf32>
    %3 = tpu.matmul %0, %2, %cst {dimension_numbers = #tpu.dot_dimension_numbers<[1], [0], [0], [1], [0, 0, 1, 1], [], []>} : vector<8x784xf32>, vector<784x324xf32>, vector<8x324xf32> -> vector<8x324xf32>
    %c0_4 = arith.constant 0 : index
    %c0_5 = arith.constant 0 : index
    %c0_6 = arith.constant 0 : index
    %4 = vector.load %arg3[%c0_4, %c0_5, %c0_6] : memref<4x1x324xf32, #tpu.memory_space<vmem>>, vector<1x1x324xf32>
    %5 = vector.shape_cast %4 : vector<1x1x324xf32> to vector<1x324xf32>
    %6 = vector.broadcast %5 : vector<1x324xf32> to vector<8x324xf32>
    %7 = arith.addf %3, %6 : vector<8x324xf32>
    %c1 = arith.constant 1 : index
    %c0_7 = arith.constant 0 : index
    %c0_8 = arith.constant 0 : index
    %8 = vector.load %arg2[%c1, %c0_7, %c0_8] : memref<4x784x324xf32, #tpu.memory_space<vmem>>, vector<1x784x324xf32>
    %9 = vector.shape_cast %8 : vector<1x784x324xf32> to vector<784x324xf32>
    %cst_9 = arith.constant dense<0.000000e+00> : vector<8x324xf32>
    %10 = tpu.matmul %0, %9, %cst_9 {dimension_numbers = #tpu.dot_dimension_numbers<[1], [0], [0], [1], [0, 0, 1, 1], [], []>} : vector<8x784xf32>, vector<784x324xf32>, vector<8x324xf32> -> vector<8x324xf32>
    %c1_10 = arith.constant 1 : index
    %c0_11 = arith.constant 0 : index
    %c0_12 = arith.constant 0 : index
    %11 = vector.load %arg3[%c1_10, %c0_11, %c0_12] : memref<4x1x324xf32, #tpu.memory_space<vmem>>, vector<1x1x324xf32>
    %12 = vector.shape_cast %11 : vector<1x1x324xf32> to vector<1x324xf32>
    %13 = vector.broadcast %12 : vector<1x324xf32> to vector<8x324xf32>
    %14 = arith.addf %10, %13 : vector<8x324xf32>
    %c2 = arith.constant 2 : index
    %c0_13 = arith.constant 0 : index
    %c0_14 = arith.constant 0 : index
    %15 = vector.load %arg2[%c2, %c0_13, %c0_14] : memref<4x784x324xf32, #tpu.memory_space<vmem>>, vector<1x784x324xf32>
    %16 = vector.shape_cast %15 : vector<1x784x324xf32> to vector<784x324xf32>
    %cst_15 = arith.constant dense<0.000000e+00> : vector<8x324xf32>
    %17 = tpu.matmul %0, %16, %cst_15 {dimension_numbers = #tpu.dot_dimension_numbers<[1], [0], [0], [1], [0, 0, 1, 1], [], []>} : vector<8x784xf32>, vector<784x324xf32>, vector<8x324xf32> -> vector<8x324xf32>
    %c2_16 = arith.constant 2 : index
    %c0_17 = arith.constant 0 : index
    %c0_18 = arith.constant 0 : index
    %18 = vector.load %arg3[%c2_16, %c0_17, %c0_18] : memref<4x1x324xf32, #tpu.memory_space<vmem>>, vector<1x1x324xf32>
    %19 = vector.shape_cast %18 : vector<1x1x324xf32> to vector<1x324xf32>
    %20 = vector.broadcast %19 : vector<1x324xf32> to vector<8x324xf32>
    %21 = arith.addf %17, %20 : vector<8x324xf32>
    %c3 = arith.constant 3 : index
    %c0_19 = arith.constant 0 : index
    %c0_20 = arith.constant 0 : index
    %22 = vector.load %arg2[%c3, %c0_19, %c0_20] : memref<4x784x324xf32, #tpu.memory_space<vmem>>, vector<1x784x324xf32>
    %23 = vector.shape_cast %22 : vector<1x784x324xf32> to vector<784x324xf32>
    %cst_21 = arith.constant dense<0.000000e+00> : vector<8x324xf32>
    %24 = tpu.matmul %0, %23, %cst_21 {dimension_numbers = #tpu.dot_dimension_numbers<[1], [0], [0], [1], [0, 0, 1, 1], [], []>} : vector<8x784xf32>, vector<784x324xf32>, vector<8x324xf32> -> vector<8x324xf32>
    %c3_22 = arith.constant 3 : index
    %c0_23 = arith.constant 0 : index
    %c0_24 = arith.constant 0 : index
    %25 = vector.load %arg3[%c3_22, %c0_23, %c0_24] : memref<4x1x324xf32, #tpu.memory_space<vmem>>, vector<1x1x324xf32>
    %26 = vector.shape_cast %25 : vector<1x1x324xf32> to vector<1x324xf32>
    %27 = vector.broadcast %26 : vector<1x324xf32> to vector<8x324xf32>
    %28 = arith.addf %24, %27 : vector<8x324xf32>
    %29 = arith.maximumf %7, %14 : vector<8x324xf32>
    %30 = arith.maximumf %21, %28 : vector<8x324xf32>
    %31 = arith.maximumf %29, %30 : vector<8x324xf32>
    %cst_25 = arith.constant 0.000000e+00 : f32
    %32 = vector.broadcast %cst_25 : f32 to vector<8x324xf32>
    %33 = arith.maximumf %31, %32 : vector<8x324xf32>
    %c0_26 = arith.constant 0 : index
    %c0_27 = arith.constant 0 : index
    %34 = vector.load %arg4[%c0_26, %c0_27] : memref<324x128xf32, #tpu.memory_space<vmem>>, vector<324x128xf32>
    %cst_28 = arith.constant dense<0.000000e+00> : vector<8x128xf32>
    %35 = tpu.matmul %33, %34, %cst_28 {dimension_numbers = #tpu.dot_dimension_numbers<[1], [0], [0], [1], [0, 0, 1, 1], [], []>} : vector<8x324xf32>, vector<324x128xf32>, vector<8x128xf32> -> vector<8x128xf32>
    %c0_29 = arith.constant 0 : index
    %c0_30 = arith.constant 0 : index
    %36 = vector.load %arg5[%c0_29, %c0_30] : memref<1x128xf32, #tpu.memory_space<vmem>>, vector<1x128xf32>
    %37 = vector.broadcast %36 : vector<1x128xf32> to vector<8x128xf32>
    %38 = arith.addf %35, %37 : vector<8x128xf32>
    %c0_31 = arith.constant 0 : index
    %c0_32 = arith.constant 0 : index
    %39 = vector.load %arg6[%c0_31, %c0_32] : memref<8x128xf32, #tpu.memory_space<vmem>>, vector<8x128xf32>
    tpu.vector_store %arg6[%c0_31, %c0_32], %38 {strides = array<i32>} : memref<8x128xf32, #tpu.memory_space<vmem>>, vector<8x128xf32>,
    return
  }
  func.func @transform_0(%arg0: i32) -> (i32, i32) {
    %c0_i32 = arith.constant 0 : i32
    %c0_i32_0 = arith.constant 0 : i32
    return %arg0, %c0_i32 : i32, i32
  }
  func.func @transform_1(%arg0: i32) -> (i32, i32, i32) {
    %c0_i32 = arith.constant 0 : i32
    %c0_i32_0 = arith.constant 0 : i32
    %c0_i32_1 = arith.constant 0 : i32
    %c0_i32_2 = arith.constant 0 : i32
    return %c0_i32, %c0_i32_0, %c0_i32_1 : i32, i32, i32
  }
  func.func @transform_2(%arg0: i32) -> (i32, i32, i32) {
    %c0_i32 = arith.constant 0 : i32
    %c0_i32_0 = arith.constant 0 : i32
    %c0_i32_1 = arith.constant 0 : i32
    %c0_i32_2 = arith.constant 0 : i32
    return %c0_i32, %c0_i32_0, %c0_i32_1 : i32, i32, i32
  }
  func.func @transform_3(%arg0: i32) -> (i32, i32) {
    %c0_i32 = arith.constant 0 : i32
    %c0_i32_0 = arith.constant 0 : i32
    %c0_i32_1 = arith.constant 0 : i32
    return %c0_i32, %c0_i32_0 : i32, i32
  }
  func.func @transform_4(%arg0: i32) -> (i32, i32) {
    %c0_i32 = arith.constant 0 : i32
    %c0_i32_0 = arith.constant 0 : i32
    %c0_i32_1 = arith.constant 0 : i32
    return %c0_i32, %c0_i32_0 : i32, i32
  }
  func.func @transform_5(%arg0: i32) -> (i32, i32) {
    %c0_i32 = arith.constant 0 : i32
    %c0_i32_0 = arith.constant 0 : i32
    return %arg0, %c0_i32 : i32, i32
  }
}

</mosaic_0001>

<bundles_post_ra>
// kernel: net_forward.1
= control target key start
LH: loop header
LB: loop body
LE: loop exit
PB: predicated region body
PF: predicated region fallthrough
CT: control target
= control target key end

     0   :  { %v6450_v3 = vmov 0.0   ;;  %vm338_vm0 = vcmask 130048   ;;  %vm6452_vm1 = vmmov 0   ;;  %vm3601_vm2 = vcmask 1043456   ;;  %s10442_s1 = inlined_call_operand.vmem [shape: f32[4,784,324], index: 1, kind: input, shape index: {}]   ;;  %s10443_s0 = inlined_call_operand.vmem [shape: f32[8,784], index: 0, kind: input, shape index: {}]   ;;  %s10444_s2 = inlined_call_operand.vmem [shape: f32[4,1,324], index: 2, kind: input, shape index: {}]   ;;  %s10445_s3 = inlined_call_operand.vmem [shape: f32[324,128], index: 3, kind: input, shape index: {}]   ;;  %s10446_s4 = inlined_call_operand.vmem [shape: f32[1,128], index: 4, kind: input, shape index: {}]   ;;  %s10447_s5 = inlined_call_operand.vmem [shape: f32[8,128], index: 5, kind: output, shape index: {}]  }
   0x1   :  { %v28_v0 = vld [vmem:[%s10442_s1 + $0x8] sm:$0xff]  ;;  %v31_v1 = vld [vmem:[%s10442_s1 + $0x20] sm:$0xff]  ;;  %619 = vmatprep.mubr.f32.mxu1 %v6450_v3  ;;  %v30_v7 = vld [vmem:[%s10442_s1 + $0x18] sm:$0xff]  ;;  %vm3597_vm3 = vcmask 556032  }
   0x2   :  { %v316_v2 = vld [vmem:[%s10442_s1 + $0x908] sm:$0xff]  ;;  %v5172_v4 = vpack.c.bf16 %v31_v1, %v28_v0  ;;  %v319_v5 = vld [vmem:[%s10442_s1 + $0x920] sm:$0xff]  ;;  %v318_v11 = vld [vmem:[%s10442_s1 + $0x918] sm:$0xff] }
   0x3   :  { %v27_v6 = vld [vmem:[%s10442_s1] sm:$0xff]  ;;  %v5364_v8 = vpack.c.bf16 %v319_v5, %v316_v2  ;;  %v34_v12 = vld [vmem:[%s10442_s1 + $0x38] sm:$0xff]  ;;  %v37_v14 = vld [vmem:[%s10442_s1 + $0x50] sm:$0xff] }
   0x4   :  { %v5174_v9 = vpack.c.bf16 %v30_v7, %v27_v6  ;;  %v315_v10 = vld [vmem:[%s10442_s1 + $0x900] sm:$0xff]  ;;  %5173 = vmatprep.subr.bf16.mxu0 %v5172_v4  ;;  %v6517_v15 = vld [vmem:[%s10443_s0 + $0x30] sm:$0xff]  ;;  %v5176_v17 = vpack.c.bf16 %v37_v14, %v34_v12  ;;  %v80_v18 = vld [vmem:[%s10442_s1 + $0x1a8] sm:$0xff] }
   0x5   :  { %v5366_v13 = vpack.c.bf16 %v318_v11, %v315_v10  ;;  %v77_v16 = vld [vmem:[%s10442_s1 + $0x190] sm:$0xff]  ;;  %5365 = vmatprep.subr.bf16.mxu1 %v5364_v8  ;;  %v36_v20 = vld [vmem:[%s10442_s1 + $0x48] sm:$0xff]  ;;  %v43_v27 = vld [vmem:[%s10442_s1 + $0x80] sm:$0xff] }
   0x6   :  { %5175 = vmatpush1.bf16.msra.mxu0 %v5174_v9  ;;  %v33_v19 = vld [vmem:[%s10442_s1 + $0x30] sm:$0xff]  ;;  %v5368_v21 = vpack.c.bf16 %v80_v18, %v77_v16  ;;  %v32_v24 = vld [vmem:[%s10442_s1 + $0x28] sm:$0xff]  ;;  %v83_v28 = vld [vmem:[%s10442_s1 + $0x1c0] sm:$0xff] }
   0x7   :  { %5367 = vmatpush1.bf16.msra.mxu1 %v5366_v13  ;;  %v5178_v22 = vpack.c.bf16 %v36_v20, %v33_v19  ;;  %v29_v23 = vld [vmem:[%s10442_s1 + $0x10] sm:$0xff]  ;;  %v40_v25 = vld [vmem:[%s10442_s1 + $0x68] sm:$0xff]  ;;  %5177 = vmatprep.subr.bf16.mxu0 %v5176_v17  ;;  %v86_v29 = vld [vmem:[%s10442_s1 + $0x1d8] sm:$0xff] }
   0x8   :  { %v5370_v26 = vpack.c.bf16 %v32_v24, %v29_v23  ;;  %5369 = vmatprep.subr.bf16.mxu1 %v5368_v21  ;;  %v5180_v30 = vpack.c.bf16 %v43_v27, %v40_v25  ;;  %v5372_v31 = vpack.c.bf16 %v86_v29, %v83_v28  ;;  %v39_v32 = vld [vmem:[%s10442_s1 + $0x60] sm:$0xff]  ;;  %v42_v33 = vld [vmem:[%s10442_s1 + $0x78] sm:$0xff]  ;;  %v49_v38 = vld [vmem:[%s10442_s1 + $0xb0] sm:$0xff] }
   0x9   :  { %v35_v34 = vld [vmem:[%s10442_s1 + $0x40] sm:$0xff]  ;;  %v5182_v35 = vpack.c.bf16 %v42_v33, %v39_v32  ;;  %v38_v36 = vld [vmem:[%s10442_s1 + $0x58] sm:$0xff]  ;;  %v89_v41 = vld [vmem:[%s10442_s1 + $0x1f0] sm:$0xff] }
   0xa   :  { %3750 = vmatmul.mubr.msk.f32.vlgmr.msra.gmra.mrb[0].mxu1 %vm338_vm0, %v6517_v15  ;;  %5179 = vmatpush1.bf16.msra.mxu0 %v5178_v22  ;;  %v46_v37 = vld [vmem:[%s10442_s1 + $0x98] sm:$0xff]  ;;  %v5374_v39 = vpack.c.bf16 %v38_v36, %v35_v34  ;;  %v92_v42 = vld [vmem:[%s10442_s1 + $0x208] sm:$0xff]  ;;  %v45_v43 = vld [vmem:[%s10442_s1 + $0x90] sm:$0xff] }
   0xb   :  { %5371 = vmatpush3.bf16.msra.mxu1 %v5370_v26  ;;  %5181 = vmatprep.subr.bf16.mxu0 %v5180_v30  ;;  %v5184_v40 = vpack.c.bf16 %v49_v38, %v46_v37  ;;  %v5376_v44 = vpack.c.bf16 %v92_v42, %v89_v41  ;;  %v48_v45 = vld [vmem:[%s10442_s1 + $0xa8] sm:$0xff]  ;;  %v41_v46 = vld [vmem:[%s10442_s1 + $0x70] sm:$0xff]  ;;  %v55_v49 = vld [vmem:[%s10442_s1 + $0xe0] sm:$0xff] }
   0xc   :  { %5373 = vmatprep.subr.bf16.mxu1 %v5372_v31  ;;  %v44_v47 = vld [vmem:[%s10442_s1 + $0x88] sm:$0xff]  ;;  %v95_v50 = vld [vmem:[%s10442_s1 + $0x220] sm:$0xff]  ;;  %v5186_v51 = vpack.c.bf16 %v48_v45, %v45_v43  ;;  %v98_v52 = vld [vmem:[%s10442_s1 + $0x238] sm:$0xff] }
   0xd   :  { %v52_v48 = vld [vmem:[%s10442_s1 + $0xc8] sm:$0xff]  ;;  %v5378_v53 = vpack.c.bf16 %v44_v47, %v41_v46  ;;  %v51_v55 = vld [vmem:[%s10442_s1 + $0xc0] sm:$0xff]  ;;  %v54_v56 = vld [vmem:[%s10442_s1 + $0xd8] sm:$0xff]  ;;  %v5380_v58 = vpack.c.bf16 %v98_v52, %v95_v50 }
   0xe   :  { %5183 = vmatpush1.bf16.msra.mxu0 %v5182_v35  ;;  %v5188_v54 = vpack.c.bf16 %v55_v49, %v52_v48  ;;  %v47_v57 = vld [vmem:[%s10442_s1 + $0xa0] sm:$0xff]  ;;  %v50_v59 = vld [vmem:[%s10442_s1 + $0xb8] sm:$0xff]  ;;  %v61_v61 = vld [vmem:[%s10442_s1 + $0x110] sm:$0xff]  ;;  %v5190_v0 = vpack.c.bf16 %v54_v56, %v51_v55 }
   0xf   :  { %5375 = vmatpush3.bf16.msra.mxu1 %v5374_v39  ;;  %5185 = vmatprep.subr.bf16.mxu0 %v5184_v40  ;;  %v58_v60 = vld [vmem:[%s10442_s1 + $0xf8] sm:$0xff]  ;;  %v101_v62 = vld [vmem:[%s10442_s1 + $0x250] sm:$0xff]  ;;  %v104_v63 = vld [vmem:[%s10442_s1 + $0x268] sm:$0xff]  ;;  %v5382_v1 = vpack.c.bf16 %v50_v59, %v47_v57 }
  0x10   :  { %5377 = vmatprep.subr.bf16.mxu1 %v5376_v44  ;;  %v5192_v2 = vpack.c.bf16 %v61_v61, %v58_v60  ;;  %v57_v4 = vld [vmem:[%s10442_s1 + $0xf0] sm:$0xff]  ;;  %v60_v5 = vld [vmem:[%s10442_s1 + $0x108] sm:$0xff]  ;;  %v5384_v7 = vpack.c.bf16 %v104_v63, %v101_v62  ;;  %v67_v10 = vld [vmem:[%s10442_s1 + $0x140] sm:$0xff] }
  0x11   :  { %v53_v6 = vld [vmem:[%s10442_s1 + $0xd0] sm:$0xff]  ;;  %v56_v8 = vld [vmem:[%s10442_s1 + $0xe8] sm:$0xff]  ;;  %v107_v11 = vld [vmem:[%s10442_s1 + $0x280] sm:$0xff]  ;;  %v5194_v13 = vpack.c.bf16 %v60_v5, %v57_v4 }
  0x12   :  { %5187 = vmatpush1.bf16.msra.mxu0 %v5186_v51  ;;  %v64_v9 = vld [vmem:[%s10442_s1 + $0x128] sm:$0xff]  ;;  %v110_v12 = vld [vmem:[%s10442_s1 + $0x298] sm:$0xff]  ;;  %v5386_v14 = vpack.c.bf16 %v56_v8, %v53_v6  ;;  %v63_v17 = vld [vmem:[%s10442_s1 + $0x120] sm:$0xff] }
  0x13   :  { %5379 = vmatpush3.bf16.msra.mxu1 %v5378_v53  ;;  %5189 = vmatprep.subr.bf16.mxu0 %v5188_v54  ;;  %v5196_v16 = vpack.c.bf16 %v67_v10, %v64_v9  ;;  %v66_v18 = vld [vmem:[%s10442_s1 + $0x138] sm:$0xff]  ;;  %v59_v19 = vld [vmem:[%s10442_s1 + $0x100] sm:$0xff]  ;;  %v5388_v20 = vpack.c.bf16 %v110_v12, %v107_v11  ;;  %v73_v23 = vld [vmem:[%s10442_s1 + $0x170] sm:$0xff] }
  0x14   :  { %5381 = vmatprep.subr.bf16.mxu1 %v5380_v58  ;;  %v62_v21 = vld [vmem:[%s10442_s1 + $0x118] sm:$0xff]  ;;  %v113_v24 = vld [vmem:[%s10442_s1 + $0x2b0] sm:$0xff]  ;;  %v116_v25 = vld [vmem:[%s10442_s1 + $0x2c8] sm:$0xff]  ;;  %v5198_v26 = vpack.c.bf16 %v66_v18, %v63_v17 }
  0x15   :  { %v70_v22 = vld [vmem:[%s10442_s1 + $0x158] sm:$0xff]  ;;  %v6674_v27 = vld [vmem:[%s10443_s0 + $0x8] sm:$0xff]  ;;  %v5390_v28 = vpack.c.bf16 %v62_v21, %v59_v19  ;;  %v69_v30 = vld [vmem:[%s10442_s1 + $0x150] sm:$0xff]  ;;  %v5392_v33 = vpack.c.bf16 %v116_v25, %v113_v24 }
  0x16   :  { %5191 = vmatpush1.bf16.msra.mxu0 %v5190_v0  ;;  %v5200_v29 = vpack.c.bf16 %v73_v23, %v70_v22  ;;  %v72_v31 = vld [vmem:[%s10442_s1 + $0x168] sm:$0xff]  ;;  %v65_v32 = vld [vmem:[%s10442_s1 + $0x130] sm:$0xff]  ;;  %v79_v36 = vld [vmem:[%s10442_s1 + $0x1a0] sm:$0xff]  ;;  %690 = vmatprep.mubr.f32.mxu1 %v6674_v27 }
  0x17   :  { %5383 = vmatpush3.bf16.msra.mxu1 %v5382_v1  ;;  %5193 = vmatprep.subr.bf16.mxu0 %v5192_v2  ;;  %v68_v34 = vld [vmem:[%s10442_s1 + $0x148] sm:$0xff]  ;;  %v119_v37 = vld [vmem:[%s10442_s1 + $0x2e0] sm:$0xff]  ;;  %v122_v38 = vld [vmem:[%s10442_s1 + $0x2f8] sm:$0xff]  ;;  %v5202_v39 = vpack.c.bf16 %v72_v31, %v69_v30 }
  0x18   :  { %5385 = vmatprep.subr.bf16.mxu1 %v5384_v7  ;;  %v76_v35 = vld [vmem:[%s10442_s1 + $0x188] sm:$0xff]  ;;  %406 = vmatprep.mubr.f32.mxu0 %v6674_v27  ;;  %v5394_v40 = vpack.c.bf16 %v68_v34, %v65_v32  ;;  %v75_v42 = vld [vmem:[%s10442_s1 + $0x180] sm:$0xff]  ;;  %v78_v43 = vld [vmem:[%s10442_s1 + $0x198] sm:$0xff]  ;;  %v5396_v45 = vpack.c.bf16 %v122_v38, %v119_v37 }
  0x19   :  { %v5204_v41 = vpack.c.bf16 %v79_v36, %v76_v35  ;;  %v71_v44 = vld [vmem:[%s10442_s1 + $0x160] sm:$0xff]  ;;  %v74_v46 = vld [vmem:[%s10442_s1 + $0x178] sm:$0xff]  ;;  %v85_v48 = vld [vmem:[%s10442_s1 + $0x1d0] sm:$0xff]  ;;  %v5206_v51 = vpack.c.bf16 %v78_v43, %v75_v42 }
  0x1a   :  { %5195 = vmatpush1.bf16.msra.mxu0 %v5194_v13  ;;  %v82_v47 = vld [vmem:[%s10442_s1 + $0x1b8] sm:$0xff]  ;;  %v173_v49 = vld [vmem:[%s10442_s1 + $0x490] sm:$0xff]  ;;  %v176_v50 = vld [vmem:[%s10442_s1 + $0x4a8] sm:$0xff]  ;;  %v5398_v52 = vpack.c.bf16 %v74_v46, %v71_v44 }
  0x1b   :  { %5387 = vmatpush3.bf16.msra.mxu1 %v5386_v14  ;;  %5197 = vmatprep.subr.bf16.mxu0 %v5196_v16  ;;  %v5208_v53 = vpack.c.bf16 %v85_v48, %v82_v47  ;;  %v81_v54 = vld [vmem:[%s10442_s1 + $0x1b0] sm:$0xff]  ;;  %v84_v55 = vld [vmem:[%s10442_s1 + $0x1c8] sm:$0xff]  ;;  %v5400_v57 = vpack.c.bf16 %v176_v50, %v173_v49  ;;  %v91_v60 = vld [vmem:[%s10442_s1 + $0x200] sm:$0xff] }
  0x1c   :  { %5389 = vmatprep.subr.bf16.mxu1 %v5388_v20  ;;  %v125_v56 = vld [vmem:[%s10442_s1 + $0x310] sm:$0xff]  ;;  %v128_v58 = vld [vmem:[%s10442_s1 + $0x328] sm:$0xff]  ;;  %v179_v61 = vld [vmem:[%s10442_s1 + $0x4c0] sm:$0xff]  ;;  %v5210_v0 = vpack.c.bf16 %v84_v55, %v81_v54 }
  0x1d   :  { %v88_v59 = vld [vmem:[%s10442_s1 + $0x1e8] sm:$0xff]  ;;  %v182_v62 = vld [vmem:[%s10442_s1 + $0x4d8] sm:$0xff]  ;;  %v6753_v63 = vld [vmem:[%s10443_s0] sm:$0xff]  ;;  %v5402_v1 = vpack.c.bf16 %v128_v58, %v125_v56 }
  0x1e   :  { %5199 = vmatpush1.bf16.msra.mxu0 %v5198_v26  ;;  %v5212_v2 = vpack.c.bf16 %v91_v60, %v88_v59  ;;  %v87_v4 = vld [vmem:[%s10442_s1 + $0x1e0] sm:$0xff]  ;;  %v90_v5 = vld [vmem:[%s10442_s1 + $0x1f8] sm:$0xff]  ;;  %v5404_v7 = vpack.c.bf16 %v182_v62, %v179_v61  ;;  %v97_v10 = vld [vmem:[%s10442_s1 + $0x230] sm:$0xff] }
  0x1f   :  { %5391 = vmatpush3.bf16.msra.mxu1 %v5390_v28  ;;  %5201 = vmatprep.subr.bf16.mxu0 %v5200_v29  ;;  %v131_v6 = vld [vmem:[%s10442_s1 + $0x340] sm:$0xff]  ;;  %v134_v8 = vld [vmem:[%s10442_s1 + $0x358] sm:$0xff]  ;;  %v185_v11 = vld [vmem:[%s10442_s1 + $0x4f0] sm:$0xff]  ;;  %v5214_v13 = vpack.c.bf16 %v90_v5, %v87_v4 }
  0x20   :  { %5393 = vmatprep.subr.bf16.mxu1 %v5392_v33  ;;  %v94_v9 = vld [vmem:[%s10442_s1 + $0x218] sm:$0xff]  ;;  %v188_v12 = vld [vmem:[%s10442_s1 + $0x508] sm:$0xff]  ;;  %v5406_v14 = vpack.c.bf16 %v134_v8, %v131_v6  ;;  %v93_v17 = vld [vmem:[%s10442_s1 + $0x210] sm:$0xff] }
  0x21   :  { %v5216_v16 = vpack.c.bf16 %v97_v10, %v94_v9  ;;  %v96_v18 = vld [vmem:[%s10442_s1 + $0x228] sm:$0xff]  ;;  %v137_v19 = vld [vmem:[%s10442_s1 + $0x370] sm:$0xff]  ;;  %v5408_v20 = vpack.c.bf16 %v188_v12, %v185_v11  ;;  %v103_v23 = vld [vmem:[%s10442_s1 + $0x260] sm:$0xff] }
  0x22   :  { %5203 = vmatpush1.bf16.msra.mxu0 %v5202_v39  ;;  %v140_v21 = vld [vmem:[%s10442_s1 + $0x388] sm:$0xff]  ;;  %v191_v24 = vld [vmem:[%s10442_s1 + $0x520] sm:$0xff]  ;;  %v194_v25 = vld [vmem:[%s10442_s1 + $0x538] sm:$0xff]  ;;  %v5218_v26 = vpack.c.bf16 %v96_v18, %v93_v17 }
  0x23   :  { %5395 = vmatpush3.bf16.msra.mxu1 %v5394_v40  ;;  %5205 = vmatprep.subr.bf16.mxu0 %v5204_v41  ;;  %v100_v22 = vld [vmem:[%s10442_s1 + $0x248] sm:$0xff]  ;;  %v99_v28 = vld [vmem:[%s10442_s1 + $0x240] sm:$0xff]  ;;  %v5410_v29 = vpack.c.bf16 %v140_v21, %v137_v19  ;;  %v102_v31 = vld [vmem:[%s10442_s1 + $0x258] sm:$0xff]  ;;  %v5412_v34 = vpack.c.bf16 %v194_v25, %v191_v24 }
  0x24   :  { %5397 = vmatprep.subr.bf16.mxu1 %v5396_v45  ;;  %v5220_v30 = vpack.c.bf16 %v103_v23, %v100_v22  ;;  %v143_v32 = vld [vmem:[%s10442_s1 + $0x3a0] sm:$0xff]  ;;  %v146_v33 = vld [vmem:[%s10442_s1 + $0x3b8] sm:$0xff]  ;;  %v109_v36 = vld [vmem:[%s10442_s1 + $0x290] sm:$0xff]  ;;  %v5222_v40 = vpack.c.bf16 %v102_v31, %v99_v28 }
  0x25   :  { %v106_v35 = vld [vmem:[%s10442_s1 + $0x278] sm:$0xff]  ;;  %v197_v38 = vld [vmem:[%s10442_s1 + $0x550] sm:$0xff]  ;;  %v200_v39 = vld [vmem:[%s10442_s1 + $0x568] sm:$0xff]  ;;  %v5414_v41 = vpack.c.bf16 %v146_v33, %v143_v32 }
  0x26   :  { %5207 = vmatpush1.bf16.msra.mxu0 %v5206_v51  ;;  %v6825_v37 = vld [vmem:[%s10443_s0 + $0x18] sm:$0xff]  ;;  %v5224_v42 = vpack.c.bf16 %v109_v36, %v106_v35  ;;  %v105_v43 = vld [vmem:[%s10442_s1 + $0x270] sm:$0xff]  ;;  %v108_v44 = vld [vmem:[%s10442_s1 + $0x288] sm:$0xff]  ;;  %v5416_v46 = vpack.c.bf16 %v200_v39, %v197_v38 }
  0x27   :  { %5399 = vmatpush3.bf16.msra.mxu1 %v5398_v52  ;;  %5209 = vmatprep.subr.bf16.mxu0 %v5208_v53  ;;  %v149_v45 = vld [vmem:[%s10442_s1 + $0x3d0] sm:$0xff]  ;;  %v152_v47 = vld [vmem:[%s10442_s1 + $0x3e8] sm:$0xff]  ;;  %v115_v49 = vld [vmem:[%s10442_s1 + $0x2c0] sm:$0xff]  ;;  %v5226_v52 = vpack.c.bf16 %v108_v44, %v105_v43 }
  0x28   :  { %5401 = vmatprep.subr.bf16.mxu1 %v5400_v57  ;;  %v112_v48 = vld [vmem:[%s10442_s1 + $0x2a8] sm:$0xff]  ;;  %v203_v50 = vld [vmem:[%s10442_s1 + $0x580] sm:$0xff]  ;;  %v206_v51 = vld [vmem:[%s10442_s1 + $0x598] sm:$0xff]  ;;  %v5418_v53 = vpack.c.bf16 %v152_v47, %v149_v45 }
  0x29   :  { %v5228_v54 = vpack.c.bf16 %v115_v49, %v112_v48  ;;  %v111_v55 = vld [vmem:[%s10442_s1 + $0x2a0] sm:$0xff]  ;;  %v114_v56 = vld [vmem:[%s10442_s1 + $0x2b8] sm:$0xff]  ;;  %v5420_v58 = vpack.c.bf16 %v206_v51, %v203_v50  ;;  %v121_v61 = vld [vmem:[%s10442_s1 + $0x2f0] sm:$0xff] }
  0x2a   :  { %691 = vmatmul.mubr.f32.vlgmr.msra.gmra.mrb[2].mxu1 %v6753_v63  ;;  %5211 = vmatpush1.bf16.msra.mxu0 %v5210_v0  ;;  %v155_v57 = vld [vmem:[%s10442_s1 + $0x400] sm:$0xff]  ;;  %v158_v59 = vld [vmem:[%s10442_s1 + $0x418] sm:$0xff]  ;;  %v209_v62 = vld [vmem:[%s10442_s1 + $0x5b0] sm:$0xff] }
  0x2b   :  { %5403 = vmatpush3.bf16.msra.mxu1 %v5402_v1  ;;  %5213 = vmatprep.subr.bf16.mxu0 %v5212_v2  ;;  %v118_v60 = vld [vmem:[%s10442_s1 + $0x2d8] sm:$0xff]  ;;  %v212_v0 = vld [vmem:[%s10442_s1 + $0x5c8] sm:$0xff]  ;;  %v5230_v1 = vpack.c.bf16 %v114_v56, %v111_v55  ;;  %v5422_v2 = vpack.c.bf16 %v158_v59, %v155_v57  ;;  %v117_v5 = vld [vmem:[%s10442_s1 + $0x2d0] sm:$0xff] }
  0x2c   :  { %5405 = vmatprep.subr.bf16.mxu1 %v5404_v7  ;;  %760 = vmatprep.mubr.f32.mxu1 %v6825_v37  ;;  %v5232_v4 = vpack.c.bf16 %v121_v61, %v118_v60  ;;  %v120_v6 = vld [vmem:[%s10442_s1 + $0x2e8] sm:$0xff]  ;;  %v161_v7 = vld [vmem:[%s10442_s1 + $0x430] sm:$0xff]  ;;  %v5424_v8 = vpack.c.bf16 %v212_v0, %v209_v62  ;;  %v127_v11 = vld [vmem:[%s10442_s1 + $0x320] sm:$0xff] }
  0x2d   :  { %v164_v9 = vld [vmem:[%s10442_s1 + $0x448] sm:$0xff]  ;;  %v215_v12 = vld [vmem:[%s10442_s1 + $0x5e0] sm:$0xff]  ;;  %v126_v19 = vld [vmem:[%s10442_s1 + $0x318] sm:$0xff] }
  0x2e   :  { %5215 = vmatpush1.bf16.msra.mxu0 %v5214_v13  ;;  %v124_v10 = vld [vmem:[%s10442_s1 + $0x308] sm:$0xff]  ;;  %v218_v13 = vld [vmem:[%s10442_s1 + $0x5f8] sm:$0xff]  ;;  %v123_v18 = vld [vmem:[%s10442_s1 + $0x300] sm:$0xff] }
  0x2f   :  { %5407 = vmatpush3.bf16.msra.mxu1 %v5406_v14  ;;  %5217 = vmatprep.subr.bf16.mxu0 %v5216_v16  ;;  %v5234_v14 = vpack.c.bf16 %v120_v6, %v117_v5  ;;  %v5426_v16 = vpack.c.bf16 %v164_v9, %v161_v7  ;;  %v5236_v17 = vpack.c.bf16 %v127_v11, %v124_v10  ;;  %v170_v22 = vld [vmem:[%s10442_s1 + $0x478] sm:$0xff]  ;;  %v133_v24 = vld [vmem:[%s10442_s1 + $0x350] sm:$0xff]  ;;  %v132_v32 = vld [vmem:[%s10442_s1 + $0x348] sm:$0xff] }
  0x30   :  { %5409 = vmatprep.subr.bf16.mxu1 %v5408_v20  ;;  %v167_v20 = vld [vmem:[%s10442_s1 + $0x460] sm:$0xff]  ;;  %v5428_v21 = vpack.c.bf16 %v218_v13, %v215_v12  ;;  %v130_v23 = vld [vmem:[%s10442_s1 + $0x338] sm:$0xff]  ;;  %v269_v25 = vld [vmem:[%s10442_s1 + $0x790] sm:$0xff]  ;;  %v5238_v28 = vpack.c.bf16 %v126_v19, %v123_v18 }
  0x31   :  { %v129_v31 = vld [vmem:[%s10442_s1 + $0x330] sm:$0xff]  ;;  %v224_v35 = vld [vmem:[%s10442_s1 + $0x628] sm:$0xff]  ;;  %v139_v38 = vld [vmem:[%s10442_s1 + $0x380] sm:$0xff] }
  0x32   :  { %5219 = vmatpush1.bf16.msra.mxu0 %v5218_v26  ;;  %v272_v26 = vld [vmem:[%s10442_s1 + $0x7a8] sm:$0xff]  ;;  %v221_v33 = vld [vmem:[%s10442_s1 + $0x610] sm:$0xff]  ;;  %v275_v39 = vld [vmem:[%s10442_s1 + $0x7c0] sm:$0xff] }
  0x33   :  { %5411 = vmatpush3.bf16.msra.mxu1 %v5410_v29  ;;  %5221 = vmatprep.subr.bf16.mxu0 %v5220_v30  ;;  %v5430_v29 = vpack.c.bf16 %v170_v22, %v167_v20  ;;  %v5240_v30 = vpack.c.bf16 %v133_v24, %v130_v23  ;;  %v136_v36 = vld [vmem:[%s10442_s1 + $0x368] sm:$0xff]  ;;  %v135_v44 = vld [vmem:[%s10442_s1 + $0x360] sm:$0xff]  ;;  %v138_v45 = vld [vmem:[%s10442_s1 + $0x378] sm:$0xff] }
  0x34   :  { %5413 = vmatprep.subr.bf16.mxu1 %v5412_v34  ;;  %v5432_v34 = vpack.c.bf16 %v272_v26, %v269_v25  ;;  %v5244_v43 = vpack.c.bf16 %v139_v38, %v136_v36  ;;  %v142_v48 = vld [vmem:[%s10442_s1 + $0x398] sm:$0xff]  ;;  %v145_v49 = vld [vmem:[%s10442_s1 + $0x3b0] sm:$0xff]  ;;  %v284_v51 = vld [vmem:[%s10442_s1 + $0x808] sm:$0xff] }
  0x35   :  { %v281_v50 = vld [vmem:[%s10442_s1 + $0x7f0] sm:$0xff]  ;;  %v5248_v55 = vpack.c.bf16 %v145_v49, %v142_v48  ;;  %v144_v57 = vld [vmem:[%s10442_s1 + $0x3a8] sm:$0xff]  ;;  %v151_v62 = vld [vmem:[%s10442_s1 + $0x3e0] sm:$0xff] }
  0x36   :  { %5223 = vmatpush1.bf16.msra.mxu0 %v5222_v40  ;;  %v278_v40 = vld [vmem:[%s10442_s1 + $0x7d8] sm:$0xff]  ;;  %v141_v56 = vld [vmem:[%s10442_s1 + $0x390] sm:$0xff]  ;;  %v5440_v59 = vpack.c.bf16 %v284_v51, %v281_v50  ;;  %v236_v60 = vld [vmem:[%s10442_s1 + $0x688] sm:$0xff] }
  0x37   :  { %5415 = vmatpush3.bf16.msra.mxu1 %v5414_v41  ;;  %5225 = vmatprep.subr.bf16.mxu0 %v5224_v42  ;;  %v6958_v41 = vld [vmem:[%s10443_s0 + $0x10] sm:$0xff]  ;;  %v5242_v42 = vpack.c.bf16 %v132_v32, %v129_v31  ;;  %v5436_v47 = vpack.c.bf16 %v278_v40, %v275_v39  ;;  %v148_v61 = vld [vmem:[%s10442_s1 + $0x3c8] sm:$0xff]  ;;  %v287_v0 = vld [vmem:[%s10442_s1 + $0x820] sm:$0xff] }
  0x38   :  { %5417 = vmatprep.subr.bf16.mxu1 %v5416_v46  ;;  %v227_v46 = vld [vmem:[%s10442_s1 + $0x640] sm:$0xff]  ;;  %v5252_v5 = vpack.c.bf16 %v151_v62, %v148_v61  ;;  %v150_v7 = vld [vmem:[%s10442_s1 + $0x3d8] sm:$0xff]  ;;  %v157_v12 = vld [vmem:[%s10442_s1 + $0x410] sm:$0xff] }
  0x39   :  { %v147_v6 = vld [vmem:[%s10442_s1 + $0x3c0] sm:$0xff]  ;;  %v242_v10 = vld [vmem:[%s10442_s1 + $0x6b8] sm:$0xff]  ;;  %v293_v13 = vld [vmem:[%s10442_s1 + $0x850] sm:$0xff] }
  0x3a   :  { %5227 = vmatpush1.bf16.msra.mxu0 %v5226_v52  ;;  %v6988_v52 = vld [vmem:[%s10443_s0 + $0x28] sm:$0xff]  ;;  %v154_v11 = vld [vmem:[%s10442_s1 + $0x3f8] sm:$0xff]  ;;  %v153_v19 = vld [vmem:[%s10442_s1 + $0x3f0] sm:$0xff] }
  0x3b   :  { %5419 = vmatpush3.bf16.msra.mxu1 %v5418_v53  ;;  %5229 = vmatprep.subr.bf16.mxu0 %v5228_v54  ;;  %v5246_v53 = vpack.c.bf16 %v138_v45, %v135_v44  ;;  %v5256_v18 = vpack.c.bf16 %v157_v12, %v154_v11  ;;  %v156_v20 = vld [vmem:[%s10442_s1 + $0x408] sm:$0xff]  ;;  %v163_v25 = vld [vmem:[%s10442_s1 + $0x440] sm:$0xff]  ;;  %v254_v36 = vld [vmem:[%s10442_s1 + $0x718] sm:$0xff] }
  0x3c   :  { %5421 = vmatprep.subr.bf16.mxu1 %v5420_v58  ;;  %v233_v58 = vld [vmem:[%s10442_s1 + $0x670] sm:$0xff]  ;;  %v248_v23 = vld [vmem:[%s10442_s1 + $0x6e8] sm:$0xff]  ;;  %v299_v26 = vld [vmem:[%s10442_s1 + $0x880] sm:$0xff] }
  0x3d   :  { %v160_v24 = vld [vmem:[%s10442_s1 + $0x428] sm:$0xff]  ;;  %v159_v32 = vld [vmem:[%s10442_s1 + $0x420] sm:$0xff]  ;;  %v166_v38 = vld [vmem:[%s10442_s1 + $0x458] sm:$0xff] }
  0x3e   :  { %5231 = vmatpush1.bf16.msra.mxu0 %v5230_v1  ;;  %v290_v1 = vld [vmem:[%s10442_s1 + $0x838] sm:$0xff]  ;;  %v5260_v31 = vpack.c.bf16 %v163_v25, %v160_v24  ;;  %v169_v39 = vld [vmem:[%s10442_s1 + $0x470] sm:$0xff]  ;;  %v260_v48 = vld [vmem:[%s10442_s1 + $0x748] sm:$0xff] }
  0x3f   :  { %5423 = vmatpush3.bf16.msra.mxu1 %v5422_v2  ;;  %5233 = vmatprep.subr.bf16.mxu0 %v5232_v4  ;;  %v5250_v2 = vpack.c.bf16 %v144_v57, %v141_v56  ;;  %v5442_v4 = vpack.c.bf16 %v236_v60, %v233_v58  ;;  %v5444_v9 = vpack.c.bf16 %v290_v1, %v287_v0  ;;  %v305_v40 = vld [vmem:[%s10442_s1 + $0x8b0] sm:$0xff]  ;;  %v172_v49 = vld [vmem:[%s10442_s1 + $0x488] sm:$0xff]  ;;  %v175_v50 = vld [vmem:[%s10442_s1 + $0x4a0] sm:$0xff] }
  0x40   :  { %5425 = vmatprep.subr.bf16.mxu1 %v5424_v8  ;;  %v239_v8 = vld [vmem:[%s10442_s1 + $0x6a0] sm:$0xff]  ;;  %v5264_v44 = vpack.c.bf16 %v169_v39, %v166_v38  ;;  %v165_v45 = vld [vmem:[%s10442_s1 + $0x450] sm:$0xff]  ;;  %v5268_v56 = vpack.c.bf16 %v175_v50, %v172_v49  ;;  %v174_v58 = vld [vmem:[%s10442_s1 + $0x498] sm:$0xff] }
  0x41   :  { %v311_v51 = vld [vmem:[%s10442_s1 + $0x8e0] sm:$0xff]  ;;  %v266_v61 = vld [vmem:[%s10442_s1 + $0x778] sm:$0xff]  ;;  %v181_v0 = vld [vmem:[%s10442_s1 + $0x4d0] sm:$0xff] }
  0x42   :  { %5235 = vmatpush1.bf16.msra.mxu0 %v5234_v14  ;;  %v296_v14 = vld [vmem:[%s10442_s1 + $0x868] sm:$0xff]  ;;  %v171_v57 = vld [vmem:[%s10442_s1 + $0x480] sm:$0xff]  ;;  %v178_v62 = vld [vmem:[%s10442_s1 + $0x4b8] sm:$0xff] }
  0x43   :  { %5427 = vmatpush3.bf16.msra.mxu1 %v5426_v16  ;;  %5237 = vmatprep.subr.bf16.mxu0 %v5236_v17  ;;  %v5254_v16 = vpack.c.bf16 %v150_v7, %v147_v6  ;;  %v5446_v17 = vpack.c.bf16 %v242_v10, %v239_v8  ;;  %v5448_v22 = vpack.c.bf16 %v296_v14, %v293_v13  ;;  %v180_v6 = vld [vmem:[%s10442_s1 + $0x4c8] sm:$0xff]  ;;  %v317_v7 = vld [vmem:[%s10442_s1 + $0x910] sm:$0xff]  ;;  %v187_v10 = vld [vmem:[%s10442_s1 + $0x500] sm:$0xff] }
  0x44   :  { %5429 = vmatprep.subr.bf16.mxu1 %v5428_v21  ;;  %v245_v21 = vld [vmem:[%s10442_s1 + $0x6d0] sm:$0xff]  ;;  %v5270_v1 = vpack.c.bf16 %v174_v58, %v171_v57  ;;  %v320_v8 = vld [vmem:[%s10442_s1 + $0x928] sm:$0xff]  ;;  %v3753_v11 = vld [vmem:[%s10442_s1 + $0x938] sm:$0xff] }
  0x45   :  { %407 = vmatmul.mubr.f32.vlgmr.msra.gmra.mrb[0].mxu0 %v6753_v63  ;;  %v5434_v63 = vpack.c.bf16 %v224_v35, %v221_v33  ;;  %v162_v33 = vld [vmem:[%s10442_s1 + $0x438] sm:$0xff]  ;;  %v3756_v12 = vld [vmem:[%s10442_s1 + $0x950] sm:$0xff]  ;;  %v7157_v13 = vld [vmem:[%s10443_s0 + $0x20] sm:$0xff] }
  0x46   :  { %5239 = vmatpush1.bf16.msra.mxu0 %v5238_v28  ;;  %477 = vmatprep.mubr.f32.mxu0 %v6825_v37  ;;  %v230_v37 = vld [vmem:[%s10442_s1 + $0x658] sm:$0xff]  ;;  %v193_v25 = vld [vmem:[%s10442_s1 + $0x530] sm:$0xff]  ;;  %v196_v38 = vld [vmem:[%s10442_s1 + $0x548] sm:$0xff] }
  0x47   :  { %5431 = vmatpush3.bf16.msra.mxu1 %v5430_v29  ;;  %5241 = vmatprep.subr.bf16.mxu0 %v5240_v30  ;;  %v5438_v54 = vpack.c.bf16 %v230_v37, %v227_v46  ;;  %v302_v28 = vld [vmem:[%s10442_s1 + $0x898] sm:$0xff]  ;;  %v5258_v29 = vpack.c.bf16 %v156_v20, %v153_v19  ;;  %v5450_v30 = vpack.c.bf16 %v248_v23, %v245_v21  ;;  %v168_v46 = vld [vmem:[%s10442_s1 + $0x468] sm:$0xff]  ;;  %v3752_v19 = vld [vmem:[%s10442_s1 + $0x930] sm:$0xff]  ;;  %v6451_v20 = vmov 0.0|0.0  }
  0x48   :  { %5433 = vmatprep.subr.bf16.mxu1 %v5432_v34  ;;  %v251_v34 = vld [vmem:[%s10442_s1 + $0x700] sm:$0xff]  ;;  %v5452_v35 = vpack.c.bf16 %v302_v28, %v299_v26  ;;  %v3755_v23 = vld [vmem:[%s10442_s1 + $0x948] sm:$0xff]  ;;  %v190_v24 = vld [vmem:[%s10442_s1 + $0x518] sm:$0xff] }
  0x49   :  { %v3759_v26 = vld [vmem:[%s10442_s1 + $0x968] sm:$0xff]  ;;  %v3762_v28 = vld [vmem:[%s10442_s1 + $0x980] sm:$0xff]  ;;  %v205_v49 = vld [vmem:[%s10442_s1 + $0x590] sm:$0xff] }
  0x4a   :  { %761 = vmatmul.mubr.f32.vlgmr.msra.gmra.mrb[4].mxu1 %v6958_v41  ;;  %5243 = vmatpush1.bf16.msra.mxu0 %v5242_v42  ;;  %v308_v42 = vld [vmem:[%s10442_s1 + $0x8c8] sm:$0xff]  ;;  %v199_v39 = vld [vmem:[%s10442_s1 + $0x560] sm:$0xff] }
  0x4b   :  { %5435 = vmatpush3.bf16.msra.mxu1 %v5434_v63  ;;  %5245 = vmatprep.subr.bf16.mxu0 %v5244_v43  ;;  %v5262_v63 = vpack.c.bf16 %v162_v33, %v159_v32  ;;  %v5454_v43 = vpack.c.bf16 %v254_v36, %v251_v34  ;;  %v5456_v37 = vpack.c.bf16 %v308_v42, %v305_v40  ;;  %v189_v32 = vld [vmem:[%s10442_s1 + $0x510] sm:$0xff]  ;;  %v192_v33 = vld [vmem:[%s10442_s1 + $0x528] sm:$0xff]  ;;  %v3758_v34 = vld [vmem:[%s10442_s1 + $0x960] sm:$0xff] }
  0x4c   :  { %5437 = vmatprep.subr.bf16.mxu1 %v5436_v47  ;;  %830 = vmatprep.mubr.f32.mxu1 %v6988_v52  ;;  %v257_v47 = vld [vmem:[%s10442_s1 + $0x730] sm:$0xff]  ;;  %v3761_v36 = vld [vmem:[%s10442_s1 + $0x978] sm:$0xff]  ;;  %v3771_v50 = vld [vmem:[%s10442_s1 + $0x9c8] sm:$0xff] }
  0x4d   :  { %v3765_v40 = vld [vmem:[%s10442_s1 + $0x998] sm:$0xff]  ;;  %v3768_v42 = vld [vmem:[%s10442_s1 + $0x9b0] sm:$0xff]  ;;  %v3770_v57 = vld [vmem:[%s10442_s1 + $0x9c0] sm:$0xff] }
  0x4e   :  { %5247 = vmatpush1.bf16.msra.mxu0 %v5246_v53  ;;  %v314_v53 = vld [vmem:[%s10442_s1 + $0x8f8] sm:$0xff] }
  0x4f   :  { %5439 = vmatpush3.bf16.msra.mxu1 %v5438_v54  ;;  %5249 = vmatprep.subr.bf16.mxu0 %v5248_v55  ;;  %v5266_v54 = vpack.c.bf16 %v168_v46, %v165_v45  ;;  %v5458_v55 = vpack.c.bf16 %v260_v48, %v257_v47  ;;  %v5460_v60 = vpack.c.bf16 %v314_v53, %v311_v51  ;;  %v195_v45 = vld [vmem:[%s10442_s1 + $0x540] sm:$0xff]  ;;  %v198_v46 = vld [vmem:[%s10442_s1 + $0x558] sm:$0xff]  ;;  %v3764_v47 = vld [vmem:[%s10442_s1 + $0x990] sm:$0xff] }
  0x50   :  { %5441 = vmatprep.subr.bf16.mxu1 %v5440_v59  ;;  %v263_v59 = vld [vmem:[%s10442_s1 + $0x760] sm:$0xff]  ;;  %v202_v48 = vld [vmem:[%s10442_s1 + $0x578] sm:$0xff]  ;;  %v5286_v53 = vpack.c.bf16 %v198_v46, %v195_v45  ;;  %v225_v46 = vld [vmem:[%s10442_s1 + $0x630] sm:$0xff] }
  0x51   :  { %v3774_v51 = vld [vmem:[%s10442_s1 + $0x9e0] sm:$0xff] }
  0x52   :  { %5251 = vmatpush1.bf16.msra.mxu0 %v5250_v2  ;;  %v5462_v2 = vpack.c.bf16 %v266_v61, %v263_v59  ;;  %v5479_v58 = vpack.c.bf16 %v3774_v51, %v3771_v50  ;;  %v3773_v59 = vld [vmem:[%s10442_s1 + $0x9d8] sm:$0xff]  ;;  %v211_v61 = vld [vmem:[%s10442_s1 + $0x5c0] sm:$0xff] }
  0x53   :  { %5443 = vmatpush3.bf16.msra.mxu1 %v5442_v4  ;;  %5253 = vmatprep.subr.bf16.mxu0 %v5252_v5  ;;  %v5272_v4 = vpack.c.bf16 %v181_v0, %v178_v62  ;;  %v177_v5 = vld [vmem:[%s10442_s1 + $0x4b0] sm:$0xff]  ;;  %v3777_v62 = vld [vmem:[%s10442_s1 + $0x9f8] sm:$0xff]  ;;  %v235_v50 = vld [vmem:[%s10442_s1 + $0x680] sm:$0xff] }
  0x54   :  { %5445 = vmatprep.subr.bf16.mxu1 %v5444_v9  ;;  %v184_v9 = vld [vmem:[%s10442_s1 + $0x4e8] sm:$0xff]  ;;  %v5274_v14 = vpack.c.bf16 %v180_v6, %v177_v5  ;;  %v3780_v0 = vld [vmem:[%s10442_s1 + $0xa10] sm:$0xff]  ;;  %v207_v5 = vld [vmem:[%s10442_s1 + $0x5a0] sm:$0xff] }
  0x55   :  { %v5276_v21 = vpack.c.bf16 %v187_v10, %v184_v9  ;;  %v210_v6 = vld [vmem:[%s10442_s1 + $0x5b8] sm:$0xff]  ;;  %v3779_v9 = vld [vmem:[%s10442_s1 + $0xa08] sm:$0xff] }
  0x56   :  { %5255 = vmatpush1.bf16.msra.mxu0 %v5254_v16  ;;  %v5465_v16 = vpack.c.bf16 %v320_v8, %v317_v7  ;;  %v3776_v7 = vld [vmem:[%s10442_s1 + $0x9f0] sm:$0xff]  ;;  %v5483_v8 = vpack.c.bf16 %v3780_v0, %v3777_v62  ;;  %v214_v10 = vld [vmem:[%s10442_s1 + $0x5d8] sm:$0xff]  ;;  %v3810_v62 = vld [vmem:[%s10442_s1 + $0xb00] sm:$0xff] }
  0x57   :  { %5447 = vmatpush3.bf16.msra.mxu1 %v5446_v17  ;;  %5257 = vmatprep.subr.bf16.mxu0 %v5256_v18  ;;  %v183_v17 = vld [vmem:[%s10442_s1 + $0x4e0] sm:$0xff]  ;;  %v186_v18 = vld [vmem:[%s10442_s1 + $0x4f8] sm:$0xff] }
  0x58   :  { %5449 = vmatprep.subr.bf16.mxu1 %v5448_v22  ;;  %v5467_v22 = vpack.c.bf16 %v3756_v12, %v3753_v11  ;;  %v217_v11 = vld [vmem:[%s10442_s1 + $0x5f0] sm:$0xff]  ;;  %v3783_v12 = vld [vmem:[%s10442_s1 + $0xa28] sm:$0xff]  ;;  %v3801_v51 = vld [vmem:[%s10442_s1 + $0xab8] sm:$0xff] }
  0x5a   :  { %5259 = vmatpush1.bf16.msra.mxu0 %v5258_v29  ;;  %v5278_v29 = vpack.c.bf16 %v186_v18, %v183_v17  ;;  %v5485_v17 = vpack.c.bf16 %v3779_v9, %v3776_v7  ;;  %v5296_v18 = vpack.c.bf16 %v217_v11, %v214_v10  ;;  %v244_v9 = vld [vmem:[%s10442_s1 + $0x6c8] sm:$0xff]  ;;  %v247_v10 = vld [vmem:[%s10442_s1 + $0x6e0] sm:$0xff]  ;;  %v3813_v11 = vld [vmem:[%s10442_s1 + $0xb18] sm:$0xff] }
  0x5b   :  { %5451 = vmatpush3.bf16.msra.mxu1 %v5450_v30  ;;  %5261 = vmatprep.subr.bf16.mxu0 %v5260_v31  ;;  %v5469_v30 = vpack.c.bf16 %v3755_v23, %v3752_v19  ;;  %v5280_v31 = vpack.c.bf16 %v193_v25, %v190_v24  ;;  %v213_v19 = vld [vmem:[%s10442_s1 + $0x5d0] sm:$0xff]  ;;  %v3785_v24 = vld [vmem:[%s10442_s1 + $0xa38] sm:$0xff]  ;;  %v220_v25 = vld [vmem:[%s10442_s1 + $0x608] sm:$0xff] }
  0x5c   :  { %5453 = vmatprep.subr.bf16.mxu1 %v5452_v35  ;;  %v5471_v35 = vpack.c.bf16 %v3762_v28, %v3759_v26  ;;  %v223_v26 = vld [vmem:[%s10442_s1 + $0x620] sm:$0xff]  ;;  %v3789_v28 = vld [vmem:[%s10442_s1 + $0xa58] sm:$0xff] }
  0x5e   :  { %5263 = vmatpush1.bf16.msra.mxu0 %v5262_v63  ;;  %v5282_v63 = vpack.c.bf16 %v192_v33, %v189_v32  ;;  %v5300_v32 = vpack.c.bf16 %v223_v26, %v220_v25  ;;  %v219_v33 = vld [vmem:[%s10442_s1 + $0x600] sm:$0xff]  ;;  %v253_v25 = vld [vmem:[%s10442_s1 + $0x710] sm:$0xff]  ;;  %v3819_v26 = vld [vmem:[%s10442_s1 + $0xb48] sm:$0xff] }
  0x5f   :  { %5455 = vmatpush3.bf16.msra.mxu1 %v5454_v43  ;;  %5265 = vmatprep.subr.bf16.mxu0 %v5264_v44  ;;  %v5473_v43 = vpack.c.bf16 %v3761_v36, %v3758_v34  ;;  %v5284_v44 = vpack.c.bf16 %v199_v39, %v196_v38  ;;  %v222_v34 = vld [vmem:[%s10442_s1 + $0x618] sm:$0xff]  ;;  %v3791_v38 = vld [vmem:[%s10442_s1 + $0xa68] sm:$0xff] }
  0x60   :  { %5457 = vmatprep.subr.bf16.mxu1 %v5456_v37  ;;  %v3767_v37 = vld [vmem:[%s10442_s1 + $0x9a8] sm:$0xff]  ;;  %v226_v39 = vld [vmem:[%s10442_s1 + $0x638] sm:$0xff] }
  0x62   :  { %5267 = vmatpush1.bf16.msra.mxu0 %v5266_v54  ;;  %v5477_v54 = vpack.c.bf16 %v3767_v37, %v3764_v47  ;;  %v228_v47 = vld [vmem:[%s10442_s1 + $0x648] sm:$0xff] }
  0x63   :  { %5459 = vmatpush3.bf16.msra.mxu1 %v5458_v55  ;;  %5269 = vmatprep.subr.bf16.mxu0 %v5268_v56  ;;  %v5288_v55 = vpack.c.bf16 %v205_v49, %v202_v48  ;;  %v201_v56 = vld [vmem:[%s10442_s1 + $0x570] sm:$0xff]  ;;  %v3797_v48 = vld [vmem:[%s10442_s1 + $0xa98] sm:$0xff]  ;;  %v232_v49 = vld [vmem:[%s10442_s1 + $0x668] sm:$0xff] }
  0x64   :  { %5461 = vmatprep.subr.bf16.mxu1 %v5460_v60  ;;  %v208_v60 = vld [vmem:[%s10442_s1 + $0x5a8] sm:$0xff] }
  0x66   :  { %5271 = vmatpush1.bf16.msra.mxu0 %v5270_v1 }
  0x67   :  { %5463 = vmatpush3.bf16.msra.mxu1 %v5462_v2  ;;  %5273 = vmatprep.subr.bf16.mxu0 %v5272_v4  ;;  %v5481_v2 = vpack.c.bf16 %v3773_v59, %v3770_v57  ;;  %v5292_v4 = vpack.c.bf16 %v211_v61, %v208_v60  ;;  %v3800_v57 = vld [vmem:[%s10442_s1 + $0xab0] sm:$0xff]  ;;  %v238_v59 = vld [vmem:[%s10442_s1 + $0x698] sm:$0xff]  ;;  %v3807_v61 = vld [vmem:[%s10442_s1 + $0xae8] sm:$0xff] }
  0x68   :  { %5464 = vmatprep.subr.bf16.mxu1 %v6451_v20  ;;  %v241_v60 = vld [vmem:[%s10442_s1 + $0x6b0] sm:$0xff]  ;;  %v5503_v7 = vpack.c.bf16 %v3810_v62, %v3807_v61 }
  0x69   :  { %v3840_v61 = vld [vmem:[%s10442_s1 + $0xbf0] sm:$0xff] }
  0x6a   :  { %831 = vmatmul.mubr.f32.vlgmr.msra.gmra.mrb[6].mxu1 %v7157_v13  ;;  %5275 = vmatpush1.bf16.msra.mxu0 %v5274_v14  ;;  %v3786_v14 = vld [vmem:[%s10442_s1 + $0xa40] sm:$0xff] }
  0x6b   :  { %5466 = vmatpush3.bf16.msra.mxu1 %v5465_v16  ;;  %5127 = vmatprep.mubr.msk.f32.mxu1 %vm6452_vm1, %v6450_v3  ;;  %v5294_v16 = vpack.c.bf16 %v210_v6, %v207_v5  ;;  %v5487_v23 = vpack.c.bf16 %v3786_v14, %v3783_v12  ;;  %v240_v5 = vld [vmem:[%s10442_s1 + $0x6a8] sm:$0xff]  ;;  %v3806_v6 = vld [vmem:[%s10442_s1 + $0xae0] sm:$0xff]  ;;  %v3816_v12 = vld [vmem:[%s10442_s1 + $0xb30] sm:$0xff] }
  0x6c   :  { %5277 = vmatprep.subr.bf16.mxu0 %v5276_v21  ;;  %5468 = vmatprep.subr.bf16.mxu1 %v5467_v22  ;;  %v216_v21 = vld [vmem:[%s10442_s1 + $0x5e8] sm:$0xff]  ;;  %v3782_v22 = vld [vmem:[%s10442_s1 + $0xa20] sm:$0xff] }
  0x6e   :  { %5128 = vmatmul.mubr.msk.f32.vlgmr.msra.gmra.mrb[8].mxu1 %vm338_vm0, %v6517_v15  ;;  %5279 = vmatpush1.bf16.msra.mxu0 %v5278_v29  ;;  %v5475_v15 = vpack.c.bf16 %v3768_v42, %v3765_v40  ;;  %v3792_v29 = vld [vmem:[%s10442_s1 + $0xa70] sm:$0xff]  ;;  %v3795_v42 = vld [vmem:[%s10442_s1 + $0xa88] sm:$0xff] }
  0x6f   :  { %5470 = vmatpush1.bf16.msra.mxu1 %v5469_v30  ;;  %5281 = vmatprep.subr.bf16.mxu0 %v5280_v31  ;;  %v5298_v30 = vpack.c.bf16 %v216_v21, %v213_v19  ;;  %v5489_v31 = vpack.c.bf16 %v3785_v24, %v3782_v22  ;;  %v5491_v36 = vpack.c.bf16 %v3792_v29, %v3789_v28  ;;  %v229_v40 = vld [vmem:[%s10442_s1 + $0x650] sm:$0xff]  ;;  %v246_v19 = vld [vmem:[%s10442_s1 + $0x6d8] sm:$0xff]  ;;  %v3822_v28 = vld [vmem:[%s10442_s1 + $0xb60] sm:$0xff] }
  0x70   :  { %5472 = vmatprep.subr.bf16.mxu1 %v5471_v35  ;;  %1283 = vmatprep.mubr.f32.mxu1 %v6674_v27  ;;  %v204_v27 = vld [vmem:[%s10442_s1 + $0x588] sm:$0xff]  ;;  %v3788_v35 = vld [vmem:[%s10442_s1 + $0xa50] sm:$0xff]  ;;  %v5304_v45 = vpack.c.bf16 %v229_v40, %v226_v39  ;;  %v5507_v22 = vpack.c.bf16 %v3816_v12, %v3813_v11  ;;  %v250_v24 = vld [vmem:[%s10442_s1 + $0x6f8] sm:$0xff] }
  0x71   :  { %v5290_v1 = vpack.c.bf16 %v204_v27, %v201_v56  ;;  %v5308_v56 = vpack.c.bf16 %v235_v50, %v232_v49  ;;  %v234_v27 = vld [vmem:[%s10442_s1 + $0x678] sm:$0xff]  ;;  %v3812_v21 = vld [vmem:[%s10442_s1 + $0xb10] sm:$0xff]  ;;  %v259_v39 = vld [vmem:[%s10442_s1 + $0x740] sm:$0xff] }
  0x72   :  { %5283 = vmatpush1.bf16.msra.mxu0 %v5282_v63  ;;  %v3798_v63 = vld [vmem:[%s10442_s1 + $0xaa0] sm:$0xff]  ;;  %v3825_v40 = vld [vmem:[%s10442_s1 + $0xb78] sm:$0xff]  ;;  %v265_v49 = vld [vmem:[%s10442_s1 + $0x770] sm:$0xff] }
  0x73   :  { %5474 = vmatpush1.bf16.msra.mxu1 %v5473_v43  ;;  %5285 = vmatprep.subr.bf16.mxu0 %v5284_v44  ;;  %v5302_v43 = vpack.c.bf16 %v222_v34, %v219_v33  ;;  %v5493_v44 = vpack.c.bf16 %v3791_v38, %v3788_v35  ;;  %v5495_v37 = vpack.c.bf16 %v3798_v63, %v3795_v42  ;;  %v252_v33 = vld [vmem:[%s10442_s1 + $0x708] sm:$0xff]  ;;  %v3818_v34 = vld [vmem:[%s10442_s1 + $0xb40] sm:$0xff]  ;;  %v3828_v42 = vld [vmem:[%s10442_s1 + $0xb90] sm:$0xff] }
  0x74   :  { %5476 = vmatprep.subr.bf16.mxu1 %v5475_v15  ;;  %v3794_v15 = vld [vmem:[%s10442_s1 + $0xa80] sm:$0xff]  ;;  %v5511_v35 = vpack.c.bf16 %v3822_v28, %v3819_v26  ;;  %v256_v38 = vld [vmem:[%s10442_s1 + $0x728] sm:$0xff]  ;;  %v3852_v26 = vld [vmem:[%s10442_s1 + $0xc50] sm:$0xff] }
  0x75   :  { %v3831_v50 = vld [vmem:[%s10442_s1 + $0xba8] sm:$0xff]  ;;  %v3846_v11 = vld [vmem:[%s10442_s1 + $0xc20] sm:$0xff] }
  0x76   :  { %5287 = vmatpush1.bf16.msra.mxu0 %v5286_v53  ;;  %v3804_v53 = vld [vmem:[%s10442_s1 + $0xad0] sm:$0xff] }
  0x77   :  { %5478 = vmatpush1.bf16.msra.mxu1 %v5477_v54  ;;  %5289 = vmatprep.subr.bf16.mxu0 %v5288_v55  ;;  %v5306_v54 = vpack.c.bf16 %v228_v47, %v225_v46  ;;  %v5497_v55 = vpack.c.bf16 %v3797_v48, %v3794_v15  ;;  %v258_v46 = vld [vmem:[%s10442_s1 + $0x738] sm:$0xff]  ;;  %v3824_v47 = vld [vmem:[%s10442_s1 + $0xb70] sm:$0xff]  ;;  %v5515_v15 = vpack.c.bf16 %v3828_v42, %v3825_v40  ;;  %v3858_v40 = vld [vmem:[%s10442_s1 + $0xc80] sm:$0xff] }
  0x78   :  { %5480 = vmatprep.subr.bf16.mxu1 %v5479_v58  ;;  %v5499_v58 = vpack.c.bf16 %v3804_v53, %v3801_v51  ;;  %v262_v48 = vld [vmem:[%s10442_s1 + $0x758] sm:$0xff]  ;;  %v3834_v51 = vld [vmem:[%s10442_s1 + $0xbc0] sm:$0xff] }
  0x7a   :  { %5291 = vmatpush1.bf16.msra.mxu0 %v5290_v1 }
  0x7b   :  { %5482 = vmatpush1.bf16.msra.mxu1 %v5481_v2  ;;  %5293 = vmatprep.subr.bf16.mxu0 %v5292_v4  ;;  %v5312_v2 = vpack.c.bf16 %v241_v60, %v238_v59  ;;  %v237_v4 = vld [vmem:[%s10442_s1 + $0x690] sm:$0xff]  ;;  %v271_v59 = vld [vmem:[%s10442_s1 + $0x7a0] sm:$0xff]  ;;  %v3837_v60 = vld [vmem:[%s10442_s1 + $0xbd8] sm:$0xff] }
  0x7c   :  { %5484 = vmatprep.subr.bf16.mxu1 %v5483_v8  ;;  %v3809_v8 = vld [vmem:[%s10442_s1 + $0xaf8] sm:$0xff]  ;;  %v5314_v14 = vpack.c.bf16 %v240_v5, %v237_v4  ;;  %v3836_v5 = vld [vmem:[%s10442_s1 + $0xbd0] sm:$0xff] }
  0x7d   :  { %v270_v4 = vld [vmem:[%s10442_s1 + $0x798] sm:$0xff] }
  0x7e   :  { %5295 = vmatpush1.bf16.msra.mxu0 %v5294_v16  ;;  %v5505_v16 = vpack.c.bf16 %v3809_v8, %v3806_v6  ;;  %v5523_v6 = vpack.c.bf16 %v3840_v61, %v3837_v60  ;;  %v274_v8 = vld [vmem:[%s10442_s1 + $0x7b8] sm:$0xff]  ;;  %v3867_v61 = vld [vmem:[%s10442_s1 + $0xcc8] sm:$0xff] }
  0x7f   :  { %5486 = vmatpush1.bf16.msra.mxu1 %v5485_v17  ;;  %5297 = vmatprep.subr.bf16.mxu0 %v5296_v18  ;;  %v5316_v17 = vpack.c.bf16 %v247_v10, %v244_v9  ;;  %v243_v18 = vld [vmem:[%s10442_s1 + $0x6c0] sm:$0xff]  ;;  %v277_v9 = vld [vmem:[%s10442_s1 + $0x7d0] sm:$0xff]  ;;  %v3843_v10 = vld [vmem:[%s10442_s1 + $0xc08] sm:$0xff] }
  0x80   :  { %5488 = vmatprep.subr.bf16.mxu1 %v5487_v23  ;;  %v3815_v23 = vld [vmem:[%s10442_s1 + $0xb28] sm:$0xff]  ;;  %v5318_v29 = vpack.c.bf16 %v246_v19, %v243_v18  ;;  %v3842_v19 = vld [vmem:[%s10442_s1 + $0xc00] sm:$0xff]  ;;  %v7627_v60 = vld [vmem:[%s10443_s0 + $0x18] sm:$0xff] }
  0x81   :  { %v276_v18 = vld [vmem:[%s10442_s1 + $0x7c8] sm:$0xff] }
  0x82   :  { %5299 = vmatpush1.bf16.msra.mxu0 %v5298_v30  ;;  %v5509_v30 = vpack.c.bf16 %v3815_v23, %v3812_v21  ;;  %v5527_v21 = vpack.c.bf16 %v3846_v11, %v3843_v10  ;;  %v280_v23 = vld [vmem:[%s10442_s1 + $0x7e8] sm:$0xff]  ;;  %v307_v10 = vld [vmem:[%s10442_s1 + $0x8c0] sm:$0xff]  ;;  %v3873_v11 = vld [vmem:[%s10442_s1 + $0xcf8] sm:$0xff] }
  0x83   :  { %5490 = vmatpush1.bf16.msra.mxu1 %v5489_v31  ;;  %5301 = vmatprep.subr.bf16.mxu0 %v5300_v32  ;;  %v5320_v31 = vpack.c.bf16 %v253_v25, %v250_v24  ;;  %v249_v32 = vld [vmem:[%s10442_s1 + $0x6f0] sm:$0xff]  ;;  %v283_v24 = vld [vmem:[%s10442_s1 + $0x800] sm:$0xff]  ;;  %v3849_v25 = vld [vmem:[%s10442_s1 + $0xc38] sm:$0xff] }
  0x84   :  { %5492 = vmatprep.subr.bf16.mxu1 %v5491_v36  ;;  %v3821_v36 = vld [vmem:[%s10442_s1 + $0xb58] sm:$0xff]  ;;  %v5322_v63 = vpack.c.bf16 %v252_v33, %v249_v32  ;;  %v3848_v33 = vld [vmem:[%s10442_s1 + $0xc30] sm:$0xff] }
  0x85   :  { %478 = vmatmul.mubr.f32.vlgmr.msra.gmra.mrb[0].mxu0 %v6958_v41  ;;  %v231_v41 = vld [vmem:[%s10442_s1 + $0x660] sm:$0xff]  ;;  %v282_v32 = vld [vmem:[%s10442_s1 + $0x7f8] sm:$0xff] }
  0x86   :  { %5303 = vmatpush1.bf16.msra.mxu0 %v5302_v43  ;;  %548 = vmatprep.mubr.f32.mxu0 %v6988_v52  ;;  %v3803_v52 = vld [vmem:[%s10442_s1 + $0xac8] sm:$0xff]  ;;  %v5310_v0 = vpack.c.bf16 %v234_v27, %v231_v41  ;;  %v5513_v43 = vpack.c.bf16 %v3821_v36, %v3818_v34  ;;  %v3830_v27 = vld [vmem:[%s10442_s1 + $0xba0] sm:$0xff]  ;;  %v5531_v34 = vpack.c.bf16 %v3852_v26, %v3849_v25  ;;  %v286_v36 = vld [vmem:[%s10442_s1 + $0x818] sm:$0xff] }
  0x87   :  { %5494 = vmatpush1.bf16.msra.mxu1 %v5493_v44  ;;  %5305 = vmatprep.subr.bf16.mxu0 %v5304_v45  ;;  %v5501_v1 = vpack.c.bf16 %v3803_v52, %v3800_v57  ;;  %v5324_v44 = vpack.c.bf16 %v259_v39, %v256_v38  ;;  %v255_v45 = vld [vmem:[%s10442_s1 + $0x720] sm:$0xff]  ;;  %v264_v41 = vld [vmem:[%s10442_s1 + $0x768] sm:$0xff]  ;;  %v5519_v57 = vpack.c.bf16 %v3834_v51, %v3831_v50  ;;  %v289_v38 = vld [vmem:[%s10442_s1 + $0x830] sm:$0xff] }
  0x88   :  { %5496 = vmatprep.subr.bf16.mxu1 %v5495_v37  ;;  %v3827_v37 = vld [vmem:[%s10442_s1 + $0xb88] sm:$0xff]  ;;  %v5326_v53 = vpack.c.bf16 %v258_v46, %v255_v45  ;;  %v3854_v46 = vld [vmem:[%s10442_s1 + $0xc60] sm:$0xff]  ;;  %v3864_v50 = vld [vmem:[%s10442_s1 + $0xcb0] sm:$0xff] }
  0x89   :  { %v268_v52 = vld [vmem:[%s10442_s1 + $0x788] sm:$0xff]  ;;  %v7603_v51 = vld [vmem:[%s10443_s0] sm:$0xff]  ;;  %v313_v25 = vld [vmem:[%s10442_s1 + $0x8f0] sm:$0xff] }
  0x8a   :  { %5307 = vmatpush1.bf16.msra.mxu0 %v5306_v54  ;;  %v5517_v54 = vpack.c.bf16 %v3827_v37, %v3824_v47  ;;  %v3855_v39 = vld [vmem:[%s10442_s1 + $0xc68] sm:$0xff] }
  0x8b   :  { %5498 = vmatpush1.bf16.msra.mxu1 %v5497_v55  ;;  %5309 = vmatprep.subr.bf16.mxu0 %v5308_v56  ;;  %v5328_v55 = vpack.c.bf16 %v265_v49, %v262_v48  ;;  %v261_v56 = vld [vmem:[%s10442_s1 + $0x750] sm:$0xff]  ;;  %v288_v45 = vld [vmem:[%s10442_s1 + $0x828] sm:$0xff]  ;;  %v5535_v47 = vpack.c.bf16 %v3858_v40, %v3855_v39  ;;  %v295_v48 = vld [vmem:[%s10442_s1 + $0x860] sm:$0xff] }
  0x8c   :  { %5500 = vmatprep.subr.bf16.mxu1 %v5499_v58  ;;  %v3833_v58 = vld [vmem:[%s10442_s1 + $0xbb8] sm:$0xff]  ;;  %v5330_v62 = vpack.c.bf16 %v264_v41, %v261_v56  ;;  %v292_v37 = vld [vmem:[%s10442_s1 + $0x848] sm:$0xff]  ;;  %v291_v56 = vld [vmem:[%s10442_s1 + $0x840] sm:$0xff] }
  0x8d   :  { %v3861_v49 = vld [vmem:[%s10442_s1 + $0xc98] sm:$0xff]  ;;  %v3879_v26 = vld [vmem:[%s10442_s1 + $0xd28] sm:$0xff] }
  0x8e   :  { %5311 = vmatpush1.bf16.msra.mxu0 %v5310_v0  ;;  %v5521_v0 = vpack.c.bf16 %v3833_v58, %v3830_v27  ;;  %v294_v41 = vld [vmem:[%s10442_s1 + $0x858] sm:$0xff]  ;;  %v3860_v27 = vld [vmem:[%s10442_s1 + $0xc90] sm:$0xff]  ;;  %v3863_v58 = vld [vmem:[%s10442_s1 + $0xca8] sm:$0xff] }
  0x8f   :  { %5502 = vmatpush1.bf16.msra.mxu1 %v5501_v1  ;;  %5313 = vmatprep.subr.bf16.mxu0 %v5312_v2  ;;  %v5332_v1 = vpack.c.bf16 %v271_v59, %v268_v52  ;;  %v267_v2 = vld [vmem:[%s10442_s1 + $0x780] sm:$0xff]  ;;  %v298_v52 = vld [vmem:[%s10442_s1 + $0x878] sm:$0xff]  ;;  %v301_v59 = vld [vmem:[%s10442_s1 + $0x890] sm:$0xff] }
  0x90   :  { %5504 = vmatprep.subr.bf16.mxu1 %v5503_v7  ;;  %v3839_v7 = vld [vmem:[%s10442_s1 + $0xbe8] sm:$0xff]  ;;  %v5334_v12 = vpack.c.bf16 %v270_v4, %v267_v2  ;;  %v5352_v2 = vpack.c.bf16 %v301_v59, %v298_v52  ;;  %v297_v4 = vld [vmem:[%s10442_s1 + $0x870] sm:$0xff]  ;;  %v3805_v39 = vld [vmem:[%s10442_s1 + $0xad8] sm:$0xff] }
  0x91   :  { %v3885_v40 = vld [vmem:[%s10442_s1 + $0xd58] sm:$0xff]  ;;  %v3814_v59 = vld [vmem:[%s10442_s1 + $0xb20] sm:$0xff] }
  0x92   :  { %5315 = vmatpush1.bf16.msra.mxu0 %v5314_v14  ;;  %v5525_v14 = vpack.c.bf16 %v3839_v7, %v3836_v5  ;;  %v300_v5 = vld [vmem:[%s10442_s1 + $0x888] sm:$0xff]  ;;  %v3893_v52 = vld [vmem:[%s10442_s1 + $0xd98] sm:$0xff] }
  0x93   :  { %5506 = vmatpush1.bf16.msra.mxu1 %v5505_v16  ;;  %5317 = vmatprep.subr.bf16.mxu0 %v5316_v17  ;;  %v5336_v16 = vpack.c.bf16 %v277_v9, %v274_v8  ;;  %v273_v17 = vld [vmem:[%s10442_s1 + $0x7b0] sm:$0xff]  ;;  %v3869_v8 = vld [vmem:[%s10442_s1 + $0xcd8] sm:$0xff]  ;;  %v304_v9 = vld [vmem:[%s10442_s1 + $0x8a8] sm:$0xff] }
  0x94   :  { %5508 = vmatprep.subr.bf16.mxu1 %v5507_v22  ;;  %v3845_v22 = vld [vmem:[%s10442_s1 + $0xc18] sm:$0xff]  ;;  %v5338_v28 = vpack.c.bf16 %v276_v18, %v273_v17  ;;  %v5356_v17 = vpack.c.bf16 %v307_v10, %v304_v9  ;;  %v303_v18 = vld [vmem:[%s10442_s1 + $0x8a0] sm:$0xff]  ;;  %v3899_v9 = vld [vmem:[%s10442_s1 + $0xdc8] sm:$0xff] }
  0x95   :  { %v3820_v10 = vld [vmem:[%s10442_s1 + $0xb50] sm:$0xff] }
  0x96   :  { %5319 = vmatpush1.bf16.msra.mxu0 %v5318_v29  ;;  %v5529_v29 = vpack.c.bf16 %v3845_v22, %v3842_v19  ;;  %v306_v19 = vld [vmem:[%s10442_s1 + $0x8b8] sm:$0xff] }
  0x97   :  { %5510 = vmatpush1.bf16.msra.mxu1 %v5509_v30  ;;  %5321 = vmatprep.subr.bf16.mxu0 %v5320_v31  ;;  %v5340_v30 = vpack.c.bf16 %v283_v24, %v280_v23  ;;  %v279_v31 = vld [vmem:[%s10442_s1 + $0x7e0] sm:$0xff]  ;;  %v3875_v23 = vld [vmem:[%s10442_s1 + $0xd08] sm:$0xff]  ;;  %v310_v24 = vld [vmem:[%s10442_s1 + $0x8d8] sm:$0xff] }
  0x98   :  { %5512 = vmatprep.subr.bf16.mxu1 %v5511_v35  ;;  %v3851_v35 = vld [vmem:[%s10442_s1 + $0xc48] sm:$0xff]  ;;  %v5342_v42 = vpack.c.bf16 %v282_v32, %v279_v31  ;;  %v5360_v31 = vpack.c.bf16 %v313_v25, %v310_v24  ;;  %v309_v32 = vld [vmem:[%s10442_s1 + $0x8d0] sm:$0xff]  ;;  %v3905_v24 = vld [vmem:[%s10442_s1 + $0xdf8] sm:$0xff] }
  0x99   :  { %v3826_v25 = vld [vmem:[%s10442_s1 + $0xb80] sm:$0xff] }
  0x9a   :  { %5323 = vmatpush1.bf16.msra.mxu0 %v5322_v63  ;;  %v5533_v63 = vpack.c.bf16 %v3851_v35, %v3848_v33  ;;  %v312_v33 = vld [vmem:[%s10442_s1 + $0x8e8] sm:$0xff] }
  0x9b   :  { %5514 = vmatpush1.bf16.msra.mxu1 %v5513_v43  ;;  %5325 = vmatprep.subr.bf16.mxu0 %v5324_v44  ;;  %v5344_v43 = vpack.c.bf16 %v289_v38, %v286_v36  ;;  %v285_v44 = vld [vmem:[%s10442_s1 + $0x810] sm:$0xff]  ;;  %v3881_v36 = vld [vmem:[%s10442_s1 + $0xd38] sm:$0xff]  ;;  %v3802_v38 = vld [vmem:[%s10442_s1 + $0xac0] sm:$0xff] }
  0x9c   :  { %5516 = vmatprep.subr.bf16.mxu1 %v5515_v15  ;;  %v3857_v15 = vld [vmem:[%s10442_s1 + $0xc78] sm:$0xff] }
  0x9e   :  { %5327 = vmatpush1.bf16.msra.mxu0 %v5326_v53  ;;  %v5346_v53 = vpack.c.bf16 %v288_v45, %v285_v44  ;;  %v5663_v44 = vpack.c.bf16 %v3805_v39, %v3802_v38  ;;  %v3884_v45 = vld [vmem:[%s10442_s1 + $0xd50] sm:$0xff]  ;;  %v3911_v38 = vld [vmem:[%s10442_s1 + $0xe28] sm:$0xff] }
  0x9f   :  { %5518 = vmatpush1.bf16.msra.mxu1 %v5517_v54  ;;  %5329 = vmatprep.subr.bf16.mxu0 %v5328_v55  ;;  %v5537_v54 = vpack.c.bf16 %v3857_v15, %v3854_v46  ;;  %v5348_v55 = vpack.c.bf16 %v295_v48, %v292_v37  ;;  %v3754_v46 = vld [vmem:[%s10442_s1 + $0x940] sm:$0xff]  ;;  %v3887_v37 = vld [vmem:[%s10442_s1 + $0xd68] sm:$0xff]  ;;  %v3808_v48 = vld [vmem:[%s10442_s1 + $0xaf0] sm:$0xff] }
  0xa0   :  { %5520 = vmatprep.subr.bf16.mxu1 %v5519_v57  ;;  %v5539_v57 = vpack.c.bf16 %v3864_v50, %v3861_v49  ;;  %v3811_v49 = vld [vmem:[%s10442_s1 + $0xb08] sm:$0xff]  ;;  %v3832_v39 = vld [vmem:[%s10442_s1 + $0xbb0] sm:$0xff] }
  0xa1   :  { %v3891_v50 = vld [vmem:[%s10442_s1 + $0xd88] sm:$0xff] }
  0xa2   :  { %5331 = vmatpush1.bf16.msra.mxu0 %v5330_v62  ;;  %v3870_v62 = vld [vmem:[%s10442_s1 + $0xce0] sm:$0xff] }
  0xa3   :  { %5522 = vmatpush1.bf16.msra.mxu1 %v5521_v0  ;;  %5333 = vmatprep.subr.bf16.mxu0 %v5332_v1  ;;  %v5350_v0 = vpack.c.bf16 %v294_v41, %v291_v56  ;;  %v5541_v1 = vpack.c.bf16 %v3863_v58, %v3860_v27  ;;  %v5543_v7 = vpack.c.bf16 %v3870_v62, %v3867_v61  ;;  %v3890_v41 = vld [vmem:[%s10442_s1 + $0xd80] sm:$0xff]  ;;  %v3760_v27 = vld [vmem:[%s10442_s1 + $0x970] sm:$0xff]  ;;  %v3817_v61 = vld [vmem:[%s10442_s1 + $0xb38] sm:$0xff] }
  0xa4   :  { %5524 = vmatprep.subr.bf16.mxu1 %v5523_v6  ;;  %v3866_v6 = vld [vmem:[%s10442_s1 + $0xcc0] sm:$0xff]  ;;  %v5667_v56 = vpack.c.bf16 %v3811_v49, %v3808_v48  ;;  %v3897_v62 = vld [vmem:[%s10442_s1 + $0xdb8] sm:$0xff] }
  0xa5   :  { %v3917_v48 = vld [vmem:[%s10442_s1 + $0xe58] sm:$0xff]  ;;  %v3838_v49 = vld [vmem:[%s10442_s1 + $0xbe0] sm:$0xff] }
  0xa6   :  { %5335 = vmatpush1.bf16.msra.mxu0 %v5334_v12  ;;  %v3876_v12 = vld [vmem:[%s10442_s1 + $0xd10] sm:$0xff] }
  0xa7   :  { %5526 = vmatpush1.bf16.msra.mxu1 %v5525_v14  ;;  %5337 = vmatprep.subr.bf16.mxu0 %v5336_v16  ;;  %v5354_v14 = vpack.c.bf16 %v300_v5, %v297_v4  ;;  %v5545_v16 = vpack.c.bf16 %v3869_v8, %v3866_v6  ;;  %v5547_v22 = vpack.c.bf16 %v3876_v12, %v3873_v11  ;;  %v3896_v5 = vld [vmem:[%s10442_s1 + $0xdb0] sm:$0xff]  ;;  %v3766_v6 = vld [vmem:[%s10442_s1 + $0x9a0] sm:$0xff]  ;;  %v3823_v11 = vld [vmem:[%s10442_s1 + $0xb68] sm:$0xff] }
  0xa8   :  { %5528 = vmatprep.subr.bf16.mxu1 %v5527_v21  ;;  %v3872_v21 = vld [vmem:[%s10442_s1 + $0xcf0] sm:$0xff]  ;;  %v5671_v4 = vpack.c.bf16 %v3817_v61, %v3814_v59  ;;  %v3903_v12 = vld [vmem:[%s10442_s1 + $0xde8] sm:$0xff] }
  0xa9   :  { %v3923_v59 = vld [vmem:[%s10442_s1 + $0xe88] sm:$0xff]  ;;  %v3844_v61 = vld [vmem:[%s10442_s1 + $0xc10] sm:$0xff] }
  0xaa   :  { %5339 = vmatpush1.bf16.msra.mxu0 %v5338_v28  ;;  %v3882_v28 = vld [vmem:[%s10442_s1 + $0xd40] sm:$0xff] }
  0xab   :  { %5530 = vmatpush1.bf16.msra.mxu1 %v5529_v29  ;;  %5341 = vmatprep.subr.bf16.mxu0 %v5340_v30  ;;  %v5358_v29 = vpack.c.bf16 %v306_v19, %v303_v18  ;;  %v5549_v30 = vpack.c.bf16 %v3875_v23, %v3872_v21  ;;  %v5551_v35 = vpack.c.bf16 %v3882_v28, %v3879_v26  ;;  %v3902_v19 = vld [vmem:[%s10442_s1 + $0xde0] sm:$0xff]  ;;  %v3772_v21 = vld [vmem:[%s10442_s1 + $0x9d0] sm:$0xff]  ;;  %v3829_v26 = vld [vmem:[%s10442_s1 + $0xb98] sm:$0xff] }
  0xac   :  { %5532 = vmatprep.subr.bf16.mxu1 %v5531_v34  ;;  %v3878_v34 = vld [vmem:[%s10442_s1 + $0xd20] sm:$0xff]  ;;  %v5675_v18 = vpack.c.bf16 %v3823_v11, %v3820_v10  ;;  %v3909_v28 = vld [vmem:[%s10442_s1 + $0xe18] sm:$0xff] }
  0xad   :  { %v3929_v10 = vld [vmem:[%s10442_s1 + $0xeb8] sm:$0xff]  ;;  %v3898_v11 = vld [vmem:[%s10442_s1 + $0xdc0] sm:$0xff] }
  0xae   :  { %5343 = vmatpush1.bf16.msra.mxu0 %v5342_v42  ;;  %1284 = vmatmul.mubr.f32.vlgmr.msra.gmra.mrb[10].mxu1 %v7603_v51  ;;  %v3888_v42 = vld [vmem:[%s10442_s1 + $0xd70] sm:$0xff] }
  0xaf   :  { %5534 = vmatpush1.bf16.msra.mxu1 %v5533_v63  ;;  %5345 = vmatprep.subr.bf16.mxu0 %v5344_v43  ;;  %v5362_v63 = vpack.c.bf16 %v312_v33, %v309_v32  ;;  %v5553_v43 = vpack.c.bf16 %v3881_v36, %v3878_v34  ;;  %v5555_v15 = vpack.c.bf16 %v3888_v42, %v3885_v40  ;;  %v3908_v33 = vld [vmem:[%s10442_s1 + $0xe10] sm:$0xff]  ;;  %v3778_v34 = vld [vmem:[%s10442_s1 + $0xa00] sm:$0xff]  ;;  %v3835_v40 = vld [vmem:[%s10442_s1 + $0xbc8] sm:$0xff] }
  0xb0   :  { %5536 = vmatprep.subr.bf16.mxu1 %v5535_v47  ;;  %1354 = vmatprep.mubr.f32.mxu1 %v7627_v60  ;;  %v3757_v47 = vld [vmem:[%s10442_s1 + $0x958] sm:$0xff]  ;;  %v5679_v32 = vpack.c.bf16 %v3829_v26, %v3826_v25  ;;  %v3915_v42 = vld [vmem:[%s10442_s1 + $0xe48] sm:$0xff] }
  0xb1   :  { %v3853_v25 = vld [vmem:[%s10442_s1 + $0xc58] sm:$0xff] }
  0xb2   :  { %5347 = vmatpush1.bf16.msra.mxu0 %v5346_v53  ;;  %v3894_v53 = vld [vmem:[%s10442_s1 + $0xda0] sm:$0xff] }
  0xb3   :  { %5538 = vmatpush1.bf16.msra.mxu1 %v5537_v54  ;;  %5349 = vmatprep.subr.bf16.mxu0 %v5348_v55  ;;  %v5665_v54 = vpack.c.bf16 %v3757_v47, %v3754_v46  ;;  %v5557_v55 = vpack.c.bf16 %v3887_v37, %v3884_v45  ;;  %v5559_v58 = vpack.c.bf16 %v3894_v53, %v3891_v50  ;;  %v3914_v46 = vld [vmem:[%s10442_s1 + $0xe40] sm:$0xff]  ;;  %v3784_v47 = vld [vmem:[%s10442_s1 + $0xa30] sm:$0xff]  ;;  %v3841_v50 = vld [vmem:[%s10442_s1 + $0xbf8] sm:$0xff] }
  0xb4   :  { %5540 = vmatprep.subr.bf16.mxu1 %v5539_v57  ;;  %v3763_v57 = vld [vmem:[%s10442_s1 + $0x988] sm:$0xff]  ;;  %v5683_v45 = vpack.c.bf16 %v3835_v40, %v3832_v39  ;;  %v3921_v53 = vld [vmem:[%s10442_s1 + $0xe78] sm:$0xff] }
  0xb5   :  { %v3859_v39 = vld [vmem:[%s10442_s1 + $0xc88] sm:$0xff] }
  0xb6   :  { %5351 = vmatpush1.bf16.msra.mxu0 %v5350_v0  ;;  %v3900_v0 = vld [vmem:[%s10442_s1 + $0xdd0] sm:$0xff] }
  0xb7   :  { %5542 = vmatpush1.bf16.msra.mxu1 %v5541_v1  ;;  %5353 = vmatprep.subr.bf16.mxu0 %v5352_v2  ;;  %v5669_v1 = vpack.c.bf16 %v3763_v57, %v3760_v27  ;;  %v7760_v2 = vld [vmem:[%s10443_s0 + $0x8] sm:$0xff]  ;;  %v5563_v8 = vpack.c.bf16 %v3900_v0, %v3897_v62  ;;  %v3920_v27 = vld [vmem:[%s10442_s1 + $0xe70] sm:$0xff]  ;;  %v3790_v57 = vld [vmem:[%s10442_s1 + $0xa60] sm:$0xff] }
  0xb8   :  { %5544 = vmatprep.subr.bf16.mxu1 %v5543_v7  ;;  %v3769_v7 = vld [vmem:[%s10442_s1 + $0x9b8] sm:$0xff]  ;;  %v3847_v62 = vld [vmem:[%s10442_s1 + $0xc28] sm:$0xff] }
  0xb9   :  { %v3927_v0 = vld [vmem:[%s10442_s1 + $0xea8] sm:$0xff] }
  0xba   :  { %5355 = vmatpush1.bf16.msra.mxu0 %v5354_v14  ;;  %v3906_v14 = vld [vmem:[%s10442_s1 + $0xe00] sm:$0xff] }
  0xbb   :  { %5546 = vmatpush1.bf16.msra.mxu1 %v5545_v16  ;;  %5357 = vmatprep.subr.bf16.mxu0 %v5356_v17  ;;  %v5673_v16 = vpack.c.bf16 %v3769_v7, %v3766_v6  ;;  %v5565_v17 = vpack.c.bf16 %v3899_v9, %v3896_v5  ;;  %v5567_v23 = vpack.c.bf16 %v3906_v14, %v3903_v12  ;;  %v3926_v6 = vld [vmem:[%s10442_s1 + $0xea0] sm:$0xff]  ;;  %v3796_v7 = vld [vmem:[%s10442_s1 + $0xa90] sm:$0xff]  ;;  %v3901_v12 = vld [vmem:[%s10442_s1 + $0xdd8] sm:$0xff] }
  0xbc   :  { %5548 = vmatprep.subr.bf16.mxu1 %v5547_v22  ;;  %v3775_v22 = vld [vmem:[%s10442_s1 + $0x9e8] sm:$0xff]  ;;  %v5691_v5 = vpack.c.bf16 %v3847_v62, %v3844_v61  ;;  %v3953_v61 = vld [vmem:[%s10442_s1 + $0xf78] sm:$0xff]  ;;  %v3922_v62 = vld [vmem:[%s10442_s1 + $0xe80] sm:$0xff] }
  0xbe   :  { %5359 = vmatpush1.bf16.msra.mxu0 %v5358_v29  ;;  %v3912_v29 = vld [vmem:[%s10442_s1 + $0xe30] sm:$0xff] }
  0xbf   :  { %5550 = vmatpush1.bf16.msra.mxu1 %v5549_v30  ;;  %5361 = vmatprep.subr.bf16.mxu0 %v5360_v31  ;;  %v5677_v30 = vpack.c.bf16 %v3775_v22, %v3772_v21  ;;  %v5569_v31 = vpack.c.bf16 %v3905_v24, %v3902_v19  ;;  %v5571_v36 = vpack.c.bf16 %v3912_v29, %v3909_v28  ;;  %v3850_v24 = vld [vmem:[%s10442_s1 + $0xc40] sm:$0xff]  ;;  %v3935_v28 = vld [vmem:[%s10442_s1 + $0xee8] sm:$0xff]  ;;  %v3904_v29 = vld [vmem:[%s10442_s1 + $0xdf0] sm:$0xff] }
  0xc0   :  { %5552 = vmatprep.subr.bf16.mxu1 %v5551_v35  ;;  %v3781_v35 = vld [vmem:[%s10442_s1 + $0xa18] sm:$0xff]  ;;  %v5585_v21 = vpack.c.bf16 %v3929_v10, %v3926_v6  ;;  %v5695_v22 = vpack.c.bf16 %v3901_v12, %v3898_v11  ;;  %v3959_v12 = vld [vmem:[%s10442_s1 + $0xfa8] sm:$0xff] }
  0xc1   :  { %v3877_v10 = vld [vmem:[%s10442_s1 + $0xd18] sm:$0xff] }
  0xc2   :  { %5363 = vmatpush1.bf16.msra.mxu0 %v5362_v63  ;;  %v3918_v63 = vld [vmem:[%s10442_s1 + $0xe60] sm:$0xff] }
  0xc3   :  { %5554 = vmatpush1.bf16.msra.mxu1 %v5553_v43  ;;  %5664 = vmatprep.subr.bf16.mxu0 %v5663_v44  ;;  %v5681_v43 = vpack.c.bf16 %v3781_v35, %v3778_v34  ;;  %v5573_v44 = vpack.c.bf16 %v3911_v38, %v3908_v33  ;;  %v5575_v37 = vpack.c.bf16 %v3918_v63, %v3915_v42  ;;  %v3856_v38 = vld [vmem:[%s10442_s1 + $0xc70] sm:$0xff]  ;;  %v3941_v42 = vld [vmem:[%s10442_s1 + $0xf18] sm:$0xff]  ;;  %v3910_v63 = vld [vmem:[%s10442_s1 + $0xe20] sm:$0xff] }
  0xc4   :  { %5556 = vmatprep.subr.bf16.mxu1 %v5555_v15  ;;  %v3787_v15 = vld [vmem:[%s10442_s1 + $0xa48] sm:$0xff]  ;;  %v5697_v33 = vpack.c.bf16 %v3853_v25, %v3850_v24 }
  0xc5   :  { %549 = vmatmul.mubr.f32.vlgmr.msra.gmra.mrb[0].mxu0 %v7157_v13  ;;  %v5561_v13 = vpack.c.bf16 %v3893_v52, %v3890_v41  ;;  %v5687_v41 = vpack.c.bf16 %v3841_v50, %v3838_v49  ;;  %v3916_v50 = vld [vmem:[%s10442_s1 + $0xe50] sm:$0xff] }
  0xc6   :  { %5666 = vmatpush3.bf16.msra.mxu0 %v5665_v54  ;;  %1567 = vmatprep.mubr.f32.mxu0 %v7760_v2  ;;  %v3924_v54 = vld [vmem:[%s10442_s1 + $0xe90] sm:$0xff] }
  0xc7   :  { %5558 = vmatpush1.bf16.msra.mxu1 %v5557_v55  ;;  %5668 = vmatprep.subr.bf16.mxu0 %v5667_v56  ;;  %v5685_v55 = vpack.c.bf16 %v3787_v15, %v3784_v47  ;;  %v5577_v56 = vpack.c.bf16 %v3917_v48, %v3914_v46  ;;  %v5579_v52 = vpack.c.bf16 %v3924_v54, %v3921_v53  ;;  %v3865_v48 = vld [vmem:[%s10442_s1 + $0xcb8] sm:$0xff]  ;;  %v3919_v53 = vld [vmem:[%s10442_s1 + $0xe68] sm:$0xff] }
  0xc8   :  { %5560 = vmatprep.subr.bf16.mxu1 %v5559_v58  ;;  %v3793_v58 = vld [vmem:[%s10442_s1 + $0xa78] sm:$0xff]  ;;  %v5701_v46 = vpack.c.bf16 %v3859_v39, %v3856_v38  ;;  %v3951_v54 = vld [vmem:[%s10442_s1 + $0xf68] sm:$0xff] }
  0xca   :  { %5670 = vmatpush3.bf16.msra.mxu0 %v5669_v1  ;;  %v3930_v1 = vld [vmem:[%s10442_s1 + $0xec0] sm:$0xff] }
  0xcb   :  { %5562 = vmatpush1.bf16.msra.mxu1 %v5561_v13  ;;  %5672 = vmatprep.subr.bf16.mxu0 %v5671_v4  ;;  %v5689_v13 = vpack.c.bf16 %v3793_v58, %v3790_v57  ;;  %v5581_v4 = vpack.c.bf16 %v3923_v59, %v3920_v27  ;;  %v5583_v9 = vpack.c.bf16 %v3930_v1, %v3927_v0  ;;  %v3950_v57 = vld [vmem:[%s10442_s1 + $0xf60] sm:$0xff]  ;;  %v3868_v58 = vld [vmem:[%s10442_s1 + $0xcd0] sm:$0xff]  ;;  %v3925_v0 = vld [vmem:[%s10442_s1 + $0xe98] sm:$0xff] }
  0xcc   :  { %5564 = vmatprep.subr.bf16.mxu1 %v5563_v8  ;;  %v3799_v8 = vld [vmem:[%s10442_s1 + $0xaa8] sm:$0xff]  ;;  %v5707_v27 = vpack.c.bf16 %v3919_v53, %v3916_v50  ;;  %v3957_v1 = vld [vmem:[%s10442_s1 + $0xf98] sm:$0xff]  ;;  %v5601_v6 = vpack.c.bf16 %v3953_v61, %v3950_v57  ;;  %v3984_v57 = vld [vmem:[%s10442_s1 + $0x1070] sm:$0xff] }
  0xcd   :  { %v5693_v19 = vpack.c.bf16 %v3799_v8, %v3796_v7  ;;  %v5711_v7 = vpack.c.bf16 %v3925_v0, %v3922_v62  ;;  %v3956_v8 = vld [vmem:[%s10442_s1 + $0xf90] sm:$0xff]  ;;  %v3895_v50 = vld [vmem:[%s10442_s1 + $0xda8] sm:$0xff] }
  0xce   :  { %5674 = vmatpush3.bf16.msra.mxu0 %v5673_v16  ;;  %v3933_v16 = vld [vmem:[%s10442_s1 + $0xed8] sm:$0xff]  ;;  %v5605_v24 = vpack.c.bf16 %v3959_v12, %v3956_v8  ;;  %v3980_v0 = vld [vmem:[%s10442_s1 + $0x1050] sm:$0xff]  ;;  %v4003_v8 = vld [vmem:[%s10442_s1 + $0x1108] sm:$0xff] }
  0xcf   :  { %5566 = vmatpush1.bf16.msra.mxu1 %v5565_v17  ;;  %5676 = vmatprep.subr.bf16.mxu0 %v5675_v18  ;;  %v3936_v17 = vld [vmem:[%s10442_s1 + $0xef0] sm:$0xff] }
  0xd0   :  { %5568 = vmatprep.subr.bf16.mxu1 %v5567_v23  ;;  %v3932_v23 = vld [vmem:[%s10442_s1 + $0xed0] sm:$0xff]  ;;  %v5587_v26 = vpack.c.bf16 %v3936_v17, %v3933_v16  ;;  %v3931_v17 = vld [vmem:[%s10442_s1 + $0xec8] sm:$0xff] }
  0xd1   :  { %v5589_v34 = vpack.c.bf16 %v3935_v28, %v3932_v23  ;;  %v3928_v16 = vld [vmem:[%s10442_s1 + $0xeb0] sm:$0xff] }
  0xd2   :  { %5678 = vmatpush3.bf16.msra.mxu0 %v5677_v30  ;;  %v3907_v30 = vld [vmem:[%s10442_s1 + $0xe08] sm:$0xff]  ;;  %v5715_v25 = vpack.c.bf16 %v3931_v17, %v3928_v16  ;;  %v3880_v28 = vld [vmem:[%s10442_s1 + $0xd30] sm:$0xff]  ;;  %v3986_v17 = vld [vmem:[%s10442_s1 + $0x1080] sm:$0xff] }
  0xd3   :  { %5570 = vmatpush1.bf16.msra.mxu1 %v5569_v31  ;;  %5680 = vmatprep.subr.bf16.mxu0 %v5679_v32  ;;  %v3939_v31 = vld [vmem:[%s10442_s1 + $0xf08] sm:$0xff]  ;;  %v3942_v32 = vld [vmem:[%s10442_s1 + $0xf20] sm:$0xff]  ;;  %v5699_v35 = vpack.c.bf16 %v3907_v30, %v3904_v29 }
  0xd4   :  { %5572 = vmatprep.subr.bf16.mxu1 %v5571_v36  ;;  %v3938_v36 = vld [vmem:[%s10442_s1 + $0xf00] sm:$0xff]  ;;  %v5591_v40 = vpack.c.bf16 %v3942_v32, %v3939_v31  ;;  %v3883_v29 = vld [vmem:[%s10442_s1 + $0xd48] sm:$0xff]  ;;  %v3965_v31 = vld [vmem:[%s10442_s1 + $0xfd8] sm:$0xff] }
  0xd5   :  { %v5593_v47 = vpack.c.bf16 %v3941_v42, %v3938_v36  ;;  %v3934_v32 = vld [vmem:[%s10442_s1 + $0xee0] sm:$0xff]  ;;  %v5717_v36 = vpack.c.bf16 %v3883_v29, %v3880_v28  ;;  %v3993_v28 = vld [vmem:[%s10442_s1 + $0x10b8] sm:$0xff]  ;;  %v3996_v29 = vld [vmem:[%s10442_s1 + $0x10d0] sm:$0xff] }
  0xd6   :  { %5682 = vmatpush3.bf16.msra.mxu0 %v5681_v43  ;;  %v3913_v43 = vld [vmem:[%s10442_s1 + $0xe38] sm:$0xff]  ;;  %v3886_v42 = vld [vmem:[%s10442_s1 + $0xd60] sm:$0xff] }
  0xd7   :  { %5574 = vmatpush1.bf16.msra.mxu1 %v5573_v44  ;;  %5684 = vmatprep.subr.bf16.mxu0 %v5683_v45  ;;  %v3945_v44 = vld [vmem:[%s10442_s1 + $0xf38] sm:$0xff]  ;;  %v3948_v45 = vld [vmem:[%s10442_s1 + $0xf50] sm:$0xff]  ;;  %v5703_v15 = vpack.c.bf16 %v3913_v43, %v3910_v63 }
  0xd8   :  { %5576 = vmatprep.subr.bf16.mxu1 %v5575_v37  ;;  %v3862_v37 = vld [vmem:[%s10442_s1 + $0xca0] sm:$0xff]  ;;  %v5595_v49 = vpack.c.bf16 %v3948_v45, %v3945_v44  ;;  %v3889_v63 = vld [vmem:[%s10442_s1 + $0xd78] sm:$0xff]  ;;  %v3971_v44 = vld [vmem:[%s10442_s1 + $0x1008] sm:$0xff] }
  0xd9   :  { %v3940_v45 = vld [vmem:[%s10442_s1 + $0xf10] sm:$0xff] }
  0xda   :  { %5686 = vmatpush3.bf16.msra.mxu0 %v5685_v55  ;;  %v3954_v55 = vld [vmem:[%s10442_s1 + $0xf80] sm:$0xff] }
  0xdb   :  { %5578 = vmatpush1.bf16.msra.mxu1 %v5577_v56  ;;  %5688 = vmatprep.subr.bf16.mxu0 %v5687_v41  ;;  %v5705_v56 = vpack.c.bf16 %v3865_v48, %v3862_v37  ;;  %v5599_v59 = vpack.c.bf16 %v3954_v55, %v3951_v54  ;;  %v3977_v54 = vld [vmem:[%s10442_s1 + $0x1038] sm:$0xff]  ;;  %v3994_v55 = vld [vmem:[%s10442_s1 + $0x10c0] sm:$0xff] }
  0xdc   :  { %5580 = vmatprep.subr.bf16.mxu1 %v5579_v52  ;;  %v3871_v52 = vld [vmem:[%s10442_s1 + $0xce8] sm:$0xff] }
  0xdd   :  { %v7901_v14 = vpop.f32.mrb[0].mxu1 }
  0xde   :  { %v7909_v18 = vpop.f32.mrb[1].mxu1  ;;  %5690 = vmatpush3.bf16.msra.mxu0 %v5689_v13  ;;  %v3960_v13 = vld [vmem:[%s10442_s1 + $0xfb0] sm:$0xff] }
  0xdf   :  { %5582 = vmatpush1.bf16.msra.mxu1 %v5581_v4  ;;  %5692 = vmatprep.subr.bf16.mxu0 %v5691_v5  ;;  %v8012_v4 = vld [vmem:[%s10443_s0 + $0x10] sm:$0xff]  ;;  %v5709_v5 = vpack.c.bf16 %v3871_v52, %v3868_v58  ;;  %v5603_v11 = vpack.c.bf16 %v3960_v13, %v3957_v1  ;;  %v3946_v1 = vld [vmem:[%s10442_s1 + $0xf40] sm:$0xff]  ;;  %v3949_v13 = vld [vmem:[%s10442_s1 + $0xf58] sm:$0xff] }
  0xe0   :  { %5584 = vmatprep.subr.bf16.mxu1 %v5583_v9  ;;  %v3874_v9 = vld [vmem:[%s10442_s1 + $0xd00] sm:$0xff] }
  0xe1   :  { %v5713_v23 = vpack.c.bf16 %v3877_v10, %v3874_v9  ;;  %v3987_v9 = vld [vmem:[%s10442_s1 + $0x1088] sm:$0xff]  ;;  %v3990_v10 = vld [vmem:[%s10442_s1 + $0x10a0] sm:$0xff] }
  0xe2   :  { %5694 = vmatpush3.bf16.msra.mxu0 %v5693_v19  ;;  %v8036_v19 = vld [vmem:[%s10443_s0 + $0x28] sm:$0xff] }
  0xe3   :  { %5586 = vmatpush1.bf16.msra.mxu1 %v5585_v21  ;;  %5696 = vmatprep.subr.bf16.mxu0 %v5695_v22  ;;  %v3963_v21 = vld [vmem:[%s10442_s1 + $0xfc8] sm:$0xff]  ;;  %v3966_v22 = vld [vmem:[%s10442_s1 + $0xfe0] sm:$0xff] }
  0xe4   :  { %5588 = vmatprep.subr.bf16.mxu1 %v5587_v26  ;;  %v3962_v26 = vld [vmem:[%s10442_s1 + $0xfc0] sm:$0xff]  ;;  %v5607_v30 = vpack.c.bf16 %v3966_v22, %v3963_v21  ;;  %v3952_v21 = vld [vmem:[%s10442_s1 + $0xf70] sm:$0xff]  ;;  %v3955_v22 = vld [vmem:[%s10442_s1 + $0xf88] sm:$0xff] }
  0xe5   :  { %1568 = vmatmul.mubr.f32.vlgmr.msra.gmra.mrb[2].mxu0 %v7603_v51  ;;  %v3944_v51 = vld [vmem:[%s10442_s1 + $0xf30] sm:$0xff]  ;;  %v5609_v38 = vpack.c.bf16 %v3965_v31, %v3962_v26  ;;  %v4009_v26 = vld [vmem:[%s10442_s1 + $0x1138] sm:$0xff] }
  0xe6   :  { %5698 = vmatpush3.bf16.msra.mxu0 %v5697_v33  ;;  %1637 = vmatprep.mubr.f32.mxu0 %v7627_v60  ;;  %v3947_v60 = vld [vmem:[%s10442_s1 + $0xf48] sm:$0xff]  ;;  %v3937_v33 = vld [vmem:[%s10442_s1 + $0xef8] sm:$0xff] }
  0xe7   :  { %5590 = vmatpush1.bf16.msra.mxu1 %v5589_v34  ;;  %5700 = vmatprep.subr.bf16.mxu0 %v5699_v35  ;;  %v5597_v41 = vpack.c.bf16 %v3947_v60, %v3944_v51  ;;  %v3969_v34 = vld [vmem:[%s10442_s1 + $0xff8] sm:$0xff]  ;;  %v3972_v35 = vld [vmem:[%s10442_s1 + $0x1010] sm:$0xff]  ;;  %v5719_v39 = vpack.c.bf16 %v3937_v33, %v3934_v32  ;;  %v5721_v51 = vpack.c.bf16 %v3889_v63, %v3886_v42  ;;  %v3958_v33 = vld [vmem:[%s10442_s1 + $0xfa0] sm:$0xff] }
  0xe8   :  { %5592 = vmatprep.subr.bf16.mxu1 %v5591_v40  ;;  %v3968_v40 = vld [vmem:[%s10442_s1 + $0xff0] sm:$0xff]  ;;  %v5611_v43 = vpack.c.bf16 %v3972_v35, %v3969_v34  ;;  %v3961_v34 = vld [vmem:[%s10442_s1 + $0xfb8] sm:$0xff]  ;;  %v5627_v35 = vpack.c.bf16 %v3996_v29, %v3993_v28  ;;  %v3982_v28 = vld [vmem:[%s10442_s1 + $0x1060] sm:$0xff] }
  0xe9   :  { %v5613_v37 = vpack.c.bf16 %v3971_v44, %v3968_v40  ;;  %v3892_v60 = vld [vmem:[%s10442_s1 + $0xd90] sm:$0xff]  ;;  %v4002_v40 = vld [vmem:[%s10442_s1 + $0x1100] sm:$0xff]  ;;  %v5737_v42 = vpack.c.bf16 %v3961_v34, %v3958_v33  ;;  %v3985_v29 = vld [vmem:[%s10442_s1 + $0x1078] sm:$0xff] }
  0xea   :  { %5702 = vmatpush3.bf16.msra.mxu0 %v5701_v46  ;;  %v3943_v46 = vld [vmem:[%s10442_s1 + $0xf28] sm:$0xff]  ;;  %v5725_v52 = vpack.c.bf16 %v3895_v50, %v3892_v60  ;;  %v3998_v44 = vld [vmem:[%s10442_s1 + $0x10e0] sm:$0xff]  ;;  %v323_v50 = vlaneseq }
  0xeb   :  { %5594 = vmatpush1.bf16.msra.mxu1 %v5593_v47  ;;  %5704 = vmatprep.subr.bf16.mxu0 %v5703_v15  ;;  %v3975_v47 = vld [vmem:[%s10442_s1 + $0x1028] sm:$0xff]  ;;  %v3978_v15 = vld [vmem:[%s10442_s1 + $0x1040] sm:$0xff]  ;;  %v5723_v48 = vpack.c.bf16 %v3943_v46, %v3940_v45  ;;  %v3964_v45 = vld [vmem:[%s10442_s1 + $0xfd0] sm:$0xff] }
  0xec   :  { %5596 = vmatprep.subr.bf16.mxu1 %v5595_v49  ;;  %v3974_v49 = vld [vmem:[%s10442_s1 + $0x1020] sm:$0xff]  ;;  %v5615_v53 = vpack.c.bf16 %v3978_v15, %v3975_v47  ;;  %v3967_v46 = vld [vmem:[%s10442_s1 + $0xfe8] sm:$0xff]  ;;  %v4001_v15 = vld [vmem:[%s10442_s1 + $0x10f8] sm:$0xff] }
  0xed   :  { %v5617_v61 = vpack.c.bf16 %v3977_v54, %v3974_v49  ;;  %v4008_v49 = vld [vmem:[%s10442_s1 + $0x1130] sm:$0xff]  ;;  %v5741_v60 = vpack.c.bf16 %v3967_v46, %v3964_v45  ;;  %v4023_v33 = vld [vmem:[%s10442_s1 + $0x11a8] sm:$0xff]  ;;  %v4026_v34 = vld [vmem:[%s10442_s1 + $0x11c0] sm:$0xff] }
  0xee   :  { %1355 = vmatmul.mubr.f32.vlgmr.msra.gmra.mrb[10].mxu1 %v8012_v4  ;;  %5706 = vmatpush3.bf16.msra.mxu0 %v5705_v56  ;;  %v3997_v56 = vld [vmem:[%s10442_s1 + $0x10d8] sm:$0xff]  ;;  %v4053_v45 = vld [vmem:[%s10442_s1 + $0x1280] sm:$0xff] }
  0xef   :  { %5598 = vmatpush1.bf16.msra.mxu1 %v5597_v41  ;;  %5708 = vmatprep.subr.bf16.mxu0 %v5707_v27  ;;  %v3981_v27 = vld [vmem:[%s10442_s1 + $0x1058] sm:$0xff]  ;;  %v5727_v62 = vpack.c.bf16 %v3997_v56, %v3994_v55  ;;  %v4004_v55 = vld [vmem:[%s10442_s1 + $0x1110] sm:$0xff]  ;;  %v3970_v56 = vld [vmem:[%s10442_s1 + $0x1000] sm:$0xff] }
  0xf0   :  { %5600 = vmatprep.subr.bf16.mxu1 %v5599_v59  ;;  %1425 = vmatprep.mubr.f32.mxu1 %v8036_v19 }
  0xf2   :  { %5710 = vmatpush3.bf16.msra.mxu0 %v5709_v5  ;;  %v5619_v5 = vpack.c.bf16 %v3984_v57, %v3981_v27  ;;  %v4007_v57 = vld [vmem:[%s10442_s1 + $0x1128] sm:$0xff] }
  0xf3   :  { %5602 = vmatpush1.bf16.msra.mxu1 %v5601_v6  ;;  %5712 = vmatprep.subr.bf16.mxu0 %v5711_v7  ;;  %v3983_v6 = vld [vmem:[%s10442_s1 + $0x1068] sm:$0xff]  ;;  %v4000_v7 = vld [vmem:[%s10442_s1 + $0x10f0] sm:$0xff] }
  0xf4   :  { %5604 = vmatprep.subr.bf16.mxu1 %v5603_v11  ;;  %v5729_v11 = vpack.c.bf16 %v3949_v13, %v3946_v1  ;;  %v5621_v12 = vpack.c.bf16 %v3983_v6, %v3980_v0  ;;  %v5731_v16 = vpack.c.bf16 %v4003_v8, %v4000_v7  ;;  %v8241_v1 = vshrl.u32 %v323_v50, 7  ;;  %v4010_v6 = vld [vmem:[%s10442_s1 + $0x1140] sm:$0xff]  ;;  %v3976_v7 = vld [vmem:[%s10442_s1 + $0x1030] sm:$0xff]  ;;  %v3979_v8 = vld [vmem:[%s10442_s1 + $0x1048] sm:$0xff] }
  0xf5   :  { %v5637_v13 = vpack.c.bf16 %v4007_v57, %v4004_v55  ;;  %v4052_v55 = vld [vmem:[%s10442_s1 + $0x1278] sm:$0xff] }
  0xf6   :  { %5714 = vmatpush3.bf16.msra.mxu0 %v5713_v23  ;;  %v5623_v23 = vpack.c.bf16 %v3990_v10, %v3987_v9  ;;  %v4013_v10 = vld [vmem:[%s10442_s1 + $0x1158] sm:$0xff] }
  0xf7   :  { %5606 = vmatpush1.bf16.msra.mxu1 %v5605_v24  ;;  %5716 = vmatprep.subr.bf16.mxu0 %v5715_v25  ;;  %v3989_v24 = vld [vmem:[%s10442_s1 + $0x1098] sm:$0xff]  ;;  %v4006_v25 = vld [vmem:[%s10442_s1 + $0x1120] sm:$0xff] }
  0xf8   :  { %5608 = vmatprep.subr.bf16.mxu1 %v5607_v30  ;;  %v5733_v30 = vpack.c.bf16 %v3955_v22, %v3952_v21  ;;  %v5625_v31 = vpack.c.bf16 %v3989_v24, %v3986_v17  ;;  %v5735_v32 = vpack.c.bf16 %v4009_v26, %v4006_v25  ;;  %v4020_v17 = vld [vmem:[%s10442_s1 + $0x1190] sm:$0xff]  ;;  %v321_v21 = vld [vmem:[%s10444_s2] sm:$0x7]  ;;  %v5749_v22 = vpack.c.bf16 %v3979_v8, %v3976_v7  ;;  %v4037_v8 = vld [vmem:[%s10442_s1 + $0x1218] sm:$0xff] }
  0xf9   :  { %v5641_v24 = vpack.c.bf16 %v4013_v10, %v4010_v6  ;;  %v4016_v26 = vld [vmem:[%s10442_s1 + $0x1170] sm:$0xff]  ;;  %v4058_v6 = vld [vmem:[%s10442_s1 + $0x12a8] sm:$0xff]  ;;  %v4065_v10 = vld [vmem:[%s10442_s1 + $0x12e0] sm:$0xff] }
  0xfa   :  { %5718 = vmatpush3.bf16.msra.mxu0 %v5717_v36  ;;  %v4012_v36 = vld [vmem:[%s10442_s1 + $0x1150] sm:$0xff] }
  0xfb   :  { %5610 = vmatpush1.bf16.msra.mxu1 %v5609_v38  ;;  %5720 = vmatprep.subr.bf16.mxu0 %v5719_v39  ;;  %v4015_v38 = vld [vmem:[%s10442_s1 + $0x1168] sm:$0xff] }
  0xfc   :  { %5612 = vmatprep.subr.bf16.mxu1 %v5611_v43  ;;  %v3999_v39 = vld [vmem:[%s10442_s1 + $0x10e8] sm:$0xff]  ;;  %v5739_v43 = vpack.c.bf16 %v4015_v38, %v4012_v36 }
  0xfd   :  { %v4678_v41 = vpop.f32.mrb[2].mxu1  ;;  %v5631_v47 = vpack.c.bf16 %v4002_v40, %v3999_v39  ;;  %v4025_v40 = vld [vmem:[%s10442_s1 + $0x11b8] sm:$0xff] }
  0xfe   :  { %v4679_v58 = vpop.f32.mrb[3].mxu1  ;;  %5722 = vmatpush3.bf16.msra.mxu0 %v5721_v51  ;;  %v4018_v51 = vld [vmem:[%s10442_s1 + $0x1180] sm:$0xff] }
  0xff   :  { %v8117_v59 = vadd.f32 %v4679_v58, %v4678_v41  ;;  %5614 = vmatpush1.bf16.msra.mxu1 %v5613_v37  ;;  %5724 = vmatprep.subr.bf16.mxu0 %v5723_v48  ;;  %v4021_v37 = vld [vmem:[%s10442_s1 + $0x1198] sm:$0xff]  ;;  %v4024_v58 = vld [vmem:[%s10442_s1 + $0x11b0] sm:$0xff] }
 0x100   :  { %5616 = vmatprep.subr.bf16.mxu1 %v5615_v53  ;;  %v4005_v48 = vld [vmem:[%s10442_s1 + $0x1118] sm:$0xff]  ;;  %v5633_v53 = vpack.c.bf16 %v4001_v15, %v3998_v44  ;;  %v5743_v54 = vpack.c.bf16 %v4021_v37, %v4018_v51  ;;  %v4050_v44 = vld [vmem:[%s10442_s1 + $0x1268] sm:$0xff]  ;;  %v4032_v15 = vld [vmem:[%s10442_s1 + $0x11f0] sm:$0xff] }
 0x101   :  { %v3973_v41 = vld [vmem:[%s10442_s1 + $0x1018] sm:$0xff]  ;;  %v5635_v27 = vpack.c.bf16 %v4008_v49, %v4005_v48  ;;  %v5762_v50 = vpack.c.bf16 %v4053_v45, %v4050_v44  ;;  %v4099_v44 = vld [vmem:[%s10442_s1 + $0x13f0] sm:$0xff]  ;;  %v4102_v45 = vld [vmem:[%s10442_s1 + $0x1408] sm:$0xff] }
 0x102   :  { %5726 = vmatpush3.bf16.msra.mxu0 %v5725_v52  ;;  %v4027_v52 = vld [vmem:[%s10442_s1 + $0x11c8] sm:$0xff]  ;;  %v5745_v0 = vpack.c.bf16 %v3973_v41, %v3970_v56  ;;  %v4056_v41 = vld [vmem:[%s10442_s1 + $0x1298] sm:$0xff] }
 0x103   :  { %5618 = vmatpush1.bf16.msra.mxu1 %v5617_v61  ;;  %5728 = vmatprep.subr.bf16.mxu0 %v5727_v62  ;;  %v4011_v61 = vld [vmem:[%s10442_s1 + $0x1148] sm:$0xff]  ;;  %v4014_v62 = vld [vmem:[%s10442_s1 + $0x1160] sm:$0xff] }
 0x104   :  { %5620 = vmatprep.subr.bf16.mxu1 %v5619_v5  ;;  %v5747_v5 = vpack.c.bf16 %v4027_v52, %v4024_v58  ;;  %v5639_v9 = vpack.c.bf16 %v4014_v62, %v4011_v61  ;;  %v4035_v58 = vld [vmem:[%s10442_s1 + $0x1208] sm:$0xff]  ;;  %v4038_v52 = vld [vmem:[%s10442_s1 + $0x1220] sm:$0xff] }
 0x105   :  { %1638 = vmatmul.mubr.f32.vlgmr.msra.gmra.mrb[4].mxu0 %v8012_v4  ;;  %v3992_v4 = vld [vmem:[%s10442_s1 + $0x10b0] sm:$0xff]  ;;  %v5655_v7 = vpack.c.bf16 %v4038_v52, %v4035_v58 }
 0x106   :  { %5730 = vmatpush3.bf16.msra.mxu0 %v5729_v11  ;;  %1707 = vmatprep.mubr.f32.mxu0 %v8036_v19  ;;  %v3995_v19 = vld [vmem:[%s10442_s1 + $0x10c8] sm:$0xff]  ;;  %v4030_v11 = vld [vmem:[%s10442_s1 + $0x11e0] sm:$0xff] }
 0x107   :  { %5622 = vmatpush1.bf16.msra.mxu1 %v5621_v12  ;;  %5732 = vmatprep.subr.bf16.mxu0 %v5731_v16  ;;  %v5629_v63 = vpack.c.bf16 %v3995_v19, %v3992_v4  ;;  %v4033_v12 = vld [vmem:[%s10442_s1 + $0x11f8] sm:$0xff]  ;;  %v4039_v4 = vld [vmem:[%s10442_s1 + $0x1228] sm:$0xff]  ;;  %v4022_v19 = vld [vmem:[%s10442_s1 + $0x11a0] sm:$0xff] }
 0x108   :  { %5624 = vmatprep.subr.bf16.mxu1 %v5623_v23  ;;  %v4017_v16 = vld [vmem:[%s10442_s1 + $0x1178] sm:$0xff]  ;;  %v8271_v23 = vsub.s32 2, %v8241_v1  ;;  %v5751_v25 = vpack.c.bf16 %v4033_v12, %v4030_v11  ;;  %v5649_v37 = vpack.c.bf16 %v4025_v40, %v4022_v19  ;;  %v8370_v11 = vld [vmem:[%s10443_s0 + $0x20] sm:$0xff]  ;;  %v4074_v19 = vld [vmem:[%s10442_s1 + $0x1328] sm:$0xff] }
 0x109   :  { %v4041_v12 = vld [vmem:[%s10442_s1 + $0x1238] sm:$0xff]  ;;  %v4073_v40 = vld [vmem:[%s10442_s1 + $0x1320] sm:$0xff] }
 0x10a   :  { %5734 = vmatpush3.bf16.msra.mxu0 %v5733_v30  ;;  %v5643_v30 = vpack.c.bf16 %v4020_v17, %v4017_v16  ;;  %v334_v36 = vrot.slane %v321_v21, %v8271_v23  ;;  %v4044_v16 = vld [vmem:[%s10442_s1 + $0x1250] sm:$0xff] }
 0x10b   :  { %5626 = vmatpush1.bf16.msra.mxu1 %v5625_v31  ;;  %5736 = vmatprep.subr.bf16.mxu0 %v5735_v32  ;;  %v4019_v31 = vld [vmem:[%s10442_s1 + $0x1188] sm:$0xff]  ;;  %v4036_v32 = vld [vmem:[%s10442_s1 + $0x1210] sm:$0xff] }
 0x10c   :  { %5628 = vmatprep.subr.bf16.mxu1 %v5627_v35  ;;  %v5753_v35 = vpack.c.bf16 %v3985_v29, %v3982_v28  ;;  %v5645_v38 = vpack.c.bf16 %v4019_v31, %v4016_v26  ;;  %v5755_v39 = vpack.c.bf16 %v4039_v4, %v4036_v32  ;;  %v693_v49 = vadd.f32 %v8117_v59, %v334_v36  ;;  %v4031_v59 = vld [vmem:[%s10442_s1 + $0x11e8] sm:$0xff]  ;;  %v4064_v26 = vld [vmem:[%s10442_s1 + $0x12d8] sm:$0xff]  ;;  %v4071_v31 = vld [vmem:[%s10442_s1 + $0x1310] sm:$0xff] }
 0x10d   :  { %v5659_v28 = vpack.c.bf16 %v4044_v16, %v4041_v12  ;;  %v4043_v29 = vld [vmem:[%s10442_s1 + $0x1248] sm:$0xff]  ;;  %v4077_v36 = vld [vmem:[%s10442_s1 + $0x1340] sm:$0xff] }
 0x10e   :  { %5738 = vmatpush3.bf16.msra.mxu0 %v5737_v42  ;;  %v3988_v42 = vld [vmem:[%s10442_s1 + $0x1090] sm:$0xff] }
 0x10f   :  { %5630 = vmatpush1.bf16.msra.mxu1 %v5629_v63  ;;  %5740 = vmatprep.subr.bf16.mxu0 %v5739_v43  ;;  %v3991_v63 = vld [vmem:[%s10442_s1 + $0x10a8] sm:$0xff]  ;;  %v5647_v43 = vpack.c.bf16 %v4026_v34, %v4023_v33  ;;  %v4067_v34 = vld [vmem:[%s10442_s1 + $0x12f0] sm:$0xff] }
 0x110   :  { %5632 = vmatprep.subr.bf16.mxu1 %v5631_v47  ;;  %v4029_v47 = vld [vmem:[%s10442_s1 + $0x11d8] sm:$0xff]  ;;  %v5757_v48 = vpack.c.bf16 %v3991_v63, %v3988_v42  ;;  %v4042_v63 = vld [vmem:[%s10442_s1 + $0x1240] sm:$0xff] }
 0x111   :  { %v5651_v56 = vpack.c.bf16 %v4032_v15, %v4029_v47  ;;  %v4076_v42 = vld [vmem:[%s10442_s1 + $0x1338] sm:$0xff]  ;;  %v4083_v47 = vld [vmem:[%s10442_s1 + $0x1370] sm:$0xff] }
 0x112   :  { %5742 = vmatpush3.bf16.msra.mxu0 %v5741_v60  ;;  %v5780_v15 = vpack.c.bf16 %v4076_v42, %v4073_v40  ;;  %v4104_v40 = vld [vmem:[%s10442_s1 + $0x1418] sm:$0xff]  ;;  %v4107_v42 = vld [vmem:[%s10442_s1 + $0x1430] sm:$0xff] }
 0x113   :  { %5634 = vmatpush1.bf16.msra.mxu1 %v5633_v53  ;;  %5744 = vmatprep.subr.bf16.mxu0 %v5743_v54  ;;  %v4028_v53 = vld [vmem:[%s10442_s1 + $0x11d0] sm:$0xff]  ;;  %v4049_v54 = vld [vmem:[%s10442_s1 + $0x1260] sm:$0xff] }
 0x114   :  { %5636 = vmatprep.subr.bf16.mxu1 %v5635_v27  ;;  %v4059_v27 = vld [vmem:[%s10442_s1 + $0x12b0] sm:$0xff]  ;;  %v5764_v61 = vpack.c.bf16 %v4052_v55, %v4049_v54  ;;  %v5653_v62 = vpack.c.bf16 %v4031_v59, %v4028_v53  ;;  %v4054_v53 = vld [vmem:[%s10442_s1 + $0x1288] sm:$0xff]  ;;  %v4089_v55 = vld [vmem:[%s10442_s1 + $0x13a0] sm:$0xff] }
 0x115   :  { %v4086_v54 = vld [vmem:[%s10442_s1 + $0x1388] sm:$0xff]  ;;  %v4108_v59 = vld [vmem:[%s10442_s1 + $0x1438] sm:$0xff] }
 0x116   :  { %5746 = vmatpush3.bf16.msra.mxu0 %v5745_v0  ;;  %v5766_v0 = vpack.c.bf16 %v4059_v27, %v4056_v41  ;;  %v8464_v41 = vld [vmem:[%s10443_s0 + $0x30] sm:$0xff]  ;;  %v5786_v52 = vpack.c.bf16 %v4089_v55, %v4086_v54  ;;  %v4113_v54 = vld [vmem:[%s10442_s1 + $0x1460] sm:$0xff] }
 0x117   :  { %5638 = vmatpush1.bf16.msra.mxu1 %v5637_v13  ;;  %5748 = vmatprep.subr.bf16.mxu0 %v5747_v5  ;;  %v4034_v13 = vld [vmem:[%s10442_s1 + $0x1200] sm:$0xff]  ;;  %v4055_v5 = vld [vmem:[%s10442_s1 + $0x1290] sm:$0xff] }
 0x118   :  { %5640 = vmatprep.subr.bf16.mxu1 %v5639_v9  ;;  %v4062_v9 = vld [vmem:[%s10442_s1 + $0x12c8] sm:$0xff]  ;;  %v5768_v17 = vpack.c.bf16 %v4058_v6, %v4055_v5  ;;  %v5657_v21 = vpack.c.bf16 %v4037_v8, %v4034_v13  ;;  %v4060_v5 = vld [vmem:[%s10442_s1 + $0x12b8] sm:$0xff]  ;;  %v4111_v8 = vld [vmem:[%s10442_s1 + $0x1450] sm:$0xff] }
 0x119   :  { %v4092_v6 = vld [vmem:[%s10442_s1 + $0x13b8] sm:$0xff]  ;;  %v4129_v55 = vld [vmem:[%s10442_s1 + $0x14e0] sm:$0xff] }
 0x11a   :  { %5750 = vmatpush3.bf16.msra.mxu0 %v5749_v22  ;;  %v5770_v22 = vpack.c.bf16 %v4065_v10, %v4062_v9  ;;  %v4114_v9 = vld [vmem:[%s10442_s1 + $0x1468] sm:$0xff] }
 0x11b   :  { %5642 = vmatpush1.bf16.msra.mxu1 %v5641_v24  ;;  %5752 = vmatprep.subr.bf16.mxu0 %v5751_v25  ;;  %v4040_v24 = vld [vmem:[%s10442_s1 + $0x1230] sm:$0xff]  ;;  %v4061_v25 = vld [vmem:[%s10442_s1 + $0x12c0] sm:$0xff] }
 0x11c   :  { %5644 = vmatprep.subr.bf16.mxu1 %v5643_v30  ;;  %v4068_v30 = vld [vmem:[%s10442_s1 + $0x12f8] sm:$0xff]  ;;  %v5772_v32 = vpack.c.bf16 %v4064_v26, %v4061_v25  ;;  %v5661_v4 = vpack.c.bf16 %v4043_v29, %v4040_v24  ;;  %v5966_v24 = vpack.c.bf16 %v4114_v9, %v4111_v8  ;;  %v4066_v25 = vld [vmem:[%s10442_s1 + $0x12e8] sm:$0xff] }
 0x11d   :  { %v4713_v46 = vpop.f32.mrb[4].mxu1  ;;  %v5774_v33 = vpack.c.bf16 %v4071_v31, %v4068_v30  ;;  %v4098_v26 = vld [vmem:[%s10442_s1 + $0x13e8] sm:$0xff]  ;;  %v4117_v30 = vld [vmem:[%s10442_s1 + $0x1480] sm:$0xff]  ;;  %v4120_v31 = vld [vmem:[%s10442_s1 + $0x1498] sm:$0xff] }
 0x11e   :  { %v4714_v51 = vpop.f32.mrb[5].mxu1  ;;  %5754 = vmatpush3.bf16.msra.mxu0 %v5753_v35  ;;  %v4070_v35 = vld [vmem:[%s10442_s1 + $0x1308] sm:$0xff] }
 0x11f   :  { %v4715_v60 = vadd.f32 %v4714_v51, %v4713_v46  ;;  %5646 = vmatpush1.bf16.msra.mxu1 %v5645_v38  ;;  %5756 = vmatprep.subr.bf16.mxu0 %v5755_v39  ;;  %v5776_v38 = vpack.c.bf16 %v4070_v35, %v4067_v34  ;;  %v5778_v39 = vpack.c.bf16 %v4077_v36, %v4074_v19  ;;  %v4080_v46 = vld [vmem:[%s10442_s1 + $0x1358] sm:$0xff]  ;;  %v4097_v19 = vld [vmem:[%s10442_s1 + $0x13e0] sm:$0xff]  ;;  %v4138_v8 = vld [vmem:[%s10442_s1 + $0x1528] sm:$0xff] }
 0x120   :  { %5648 = vmatprep.subr.bf16.mxu1 %v5647_v43  ;;  %v4045_v43 = vld [vmem:[%s10442_s1 + $0x1258] sm:$0xff] }
 0x121   :  { %v8341_v57 = vadd.f32 %v4715_v60, %v693_v49  ;;  %v5760_v51 = vpack.c.bf16 %v4045_v43, %v4042_v63  ;;  %v4082_v49 = vld [vmem:[%s10442_s1 + $0x1368] sm:$0xff]  ;;  %v5958_v60 = vpack.c.bf16 %v4102_v45, %v4099_v44  ;;  %v4100_v36 = vld [vmem:[%s10442_s1 + $0x13f8] sm:$0xff]  ;;  %v4123_v44 = vld [vmem:[%s10442_s1 + $0x14b0] sm:$0xff] }
 0x122   :  { %5758 = vmatpush3.bf16.msra.mxu0 %v5757_v48  ;;  %v4079_v48 = vld [vmem:[%s10442_s1 + $0x1350] sm:$0xff]  ;;  %v4126_v45 = vld [vmem:[%s10442_s1 + $0x14c8] sm:$0xff] }
 0x123   :  { %5650 = vmatpush1.bf16.msra.mxu1 %v5649_v37  ;;  %5763 = vmatprep.subr.bf16.mxu0 %v5762_v50  ;;  %v4051_v37 = vld [vmem:[%s10442_s1 + $0x1270] sm:$0xff]  ;;  %v5782_v50 = vpack.c.bf16 %v4083_v47, %v4080_v46  ;;  %v5784_v27 = vpack.c.bf16 %v4082_v49, %v4079_v48  ;;  %v5796_v47 = vpack.c.bf16 %v4100_v36, %v4097_v19  ;;  %v4106_v49 = vld [vmem:[%s10442_s1 + $0x1428] sm:$0xff]  ;;  %v4128_v19 = vld [vmem:[%s10442_s1 + $0x14d8] sm:$0xff] }
 0x124   :  { %5652 = vmatprep.subr.bf16.mxu1 %v5651_v56  ;;  %v4105_v56 = vld [vmem:[%s10442_s1 + $0x1420] sm:$0xff]  ;;  %v5960_v58 = vpack.c.bf16 %v4054_v53, %v4051_v37  ;;  %v5798_v37 = vpack.c.bf16 %v4107_v42, %v4104_v40  ;;  %v4103_v48 = vld [vmem:[%s10442_s1 + $0x1410] sm:$0xff]  ;;  %v4110_v53 = vld [vmem:[%s10442_s1 + $0x1448] sm:$0xff] }
 0x125   :  { %1708 = vmatmul.mubr.f32.vlgmr.msra.gmra.mrb[6].mxu0 %v8370_v11  ;;  %v5962_v13 = vpack.c.bf16 %v4108_v59, %v4105_v56  ;;  %v4132_v56 = vld [vmem:[%s10442_s1 + $0x14f8] sm:$0xff]  ;;  %v5800_v59 = vpack.c.bf16 %v4106_v49, %v4103_v48  ;;  %v4131_v36 = vld [vmem:[%s10442_s1 + $0x14f0] sm:$0xff] }
 0x126   :  { %5765 = vmatpush1.bf16.msra.mxu0 %v5764_v61  ;;  %2160 = vmatprep.mubr.f32.mxu0 %v7760_v2  ;;  %v4057_v61 = vld [vmem:[%s10442_s1 + $0x12a0] sm:$0xff]  ;;  %v4204_v48 = vld [vmem:[%s10442_s1 + $0x1738] sm:$0xff] }
 0x127   :  { %5654 = vmatpush1.bf16.msra.mxu1 %v5653_v62  ;;  %5767 = vmatprep.subr.bf16.mxu0 %v5766_v0  ;;  %v4085_v62 = vld [vmem:[%s10442_s1 + $0x1380] sm:$0xff]  ;;  %v4088_v0 = vld [vmem:[%s10442_s1 + $0x1398] sm:$0xff]  ;;  %v5964_v12 = vpack.c.bf16 %v4060_v5, %v4057_v61 }
 0x128   :  { %5656 = vmatprep.subr.bf16.mxu1 %v5655_v7  ;;  %v4095_v7 = vld [vmem:[%s10442_s1 + $0x13d0] sm:$0xff]  ;;  %v5788_v10 = vpack.c.bf16 %v4088_v0, %v4085_v62  ;;  %v4109_v61 = vld [vmem:[%s10442_s1 + $0x1440] sm:$0xff]  ;;  %v4112_v62 = vld [vmem:[%s10442_s1 + $0x1458] sm:$0xff]  ;;  %v5978_v0 = vpack.c.bf16 %v4132_v56, %v4129_v55 }
 0x129   :  { %v5790_v16 = vpack.c.bf16 %v4095_v7, %v4092_v6  ;;  %v4116_v5 = vld [vmem:[%s10442_s1 + $0x1478] sm:$0xff]  ;;  %v4119_v6 = vld [vmem:[%s10442_s1 + $0x1490] sm:$0xff]  ;;  %v5804_v9 = vpack.c.bf16 %v4112_v62, %v4109_v61  ;;  %v4210_v61 = vld [vmem:[%s10442_s1 + $0x1768] sm:$0xff] }
 0x12a   :  { %5769 = vmatpush1.bf16.msra.mxu0 %v5768_v17  ;;  %v4063_v17 = vld [vmem:[%s10442_s1 + $0x12d0] sm:$0xff]  ;;  %v4136_v55 = vld [vmem:[%s10442_s1 + $0x1518] sm:$0xff]  ;;  %v6438_v62 = vld [vmem:[%s10443_s0] sm:$0xff] }
 0x12b   :  { %5658 = vmatpush1.bf16.msra.mxu1 %v5657_v21  ;;  %5771 = vmatprep.subr.bf16.mxu0 %v5770_v22  ;;  %v4091_v21 = vld [vmem:[%s10442_s1 + $0x13b0] sm:$0xff]  ;;  %v4094_v22 = vld [vmem:[%s10442_s1 + $0x13c8] sm:$0xff]  ;;  %v5968_v34 = vpack.c.bf16 %v4066_v25, %v4063_v17 }
 0x12c   :  { %5660 = vmatprep.subr.bf16.mxu1 %v5659_v28  ;;  %v4101_v28 = vld [vmem:[%s10442_s1 + $0x1400] sm:$0xff]  ;;  %v4135_v7 = vld [vmem:[%s10442_s1 + $0x1510] sm:$0xff]  ;;  %v4122_v25 = vld [vmem:[%s10442_s1 + $0x14a8] sm:$0xff] }
 0x12d   :  { %v5794_v35 = vpack.c.bf16 %v4101_v28, %v4098_v26  ;;  %v4115_v17 = vld [vmem:[%s10442_s1 + $0x1470] sm:$0xff]  ;;  %v4125_v26 = vld [vmem:[%s10442_s1 + $0x14c0] sm:$0xff] }
 0x12e   :  { %1426 = vmatmul.mubr.f32.vlgmr.msra.gmra.mrb[10].mxu1 %v8370_v11  ;;  %5773 = vmatpush1.bf16.msra.mxu0 %v5772_v32  ;;  %v4141_v28 = vld [vmem:[%s10442_s1 + $0x1540] sm:$0xff] }
 0x12f   :  { %5662 = vmatpush1.bf16.msra.mxu1 %v5661_v4  ;;  %5775 = vmatprep.subr.bf16.mxu0 %v5774_v33  ;;  %v5792_v4 = vpack.c.bf16 %v4094_v22, %v4091_v21  ;;  %v4118_v21 = vld [vmem:[%s10442_s1 + $0x1488] sm:$0xff]  ;;  %v5982_v22 = vpack.c.bf16 %v4138_v8, %v4135_v7  ;;  %v4139_v7 = vld [vmem:[%s10442_s1 + $0x1530] sm:$0xff] }
 0x130   :  { %1496 = vmatprep.mubr.f32.mxu1 %v6450_v3  ;;  %5759 = vmatprep.subr.bf16.mxu1 %v6451_v20  ;;  %v4142_v8 = vld [vmem:[%s10442_s1 + $0x1548] sm:$0xff] }
 0x132   :  { %5777 = vmatpush1.bf16.msra.mxu0 %v5776_v38  ;;  %v5970_v38 = vpack.c.bf16 %v4120_v31, %v4117_v30  ;;  %v5808_v30 = vpack.c.bf16 %v4118_v21, %v4115_v17  ;;  %v6439_v17 = vld [vmem:[%s10443_s0 + $0x18] sm:$0xff]  ;;  %v4213_v21 = vld [vmem:[%s10442_s1 + $0x1780] sm:$0xff] }
 0x133   :  { %5779 = vmatprep.subr.bf16.mxu0 %v5778_v39  ;;  %v4072_v39 = vld [vmem:[%s10442_s1 + $0x1318] sm:$0xff] }
 0x136   :  { %4047 = vmatmul.mubr.msk.f32.vlgmr.msra.gmra.mrb[10].mxu1 %vm338_vm0, %v8464_v41  ;;  %5781 = vmatpush1.bf16.msra.mxu0 %v5780_v15 }
 0x137   :  { %5761 = vmatpush3.bf16.msra.mxu1 %v5760_v51  ;;  %5134 = vmatprep.mubr.msk.f32.mxu1 %vm6452_vm1, %v6450_v3 }
 0x138   :  { %5959 = vmatprep.subr.bf16.mxu1 %v5958_v60  ;;  %5783 = vmatprep.subr.bf16.mxu0 %v5782_v50  ;;  %v5974_v60 = vpack.c.bf16 %v4126_v45, %v4123_v44  ;;  %v4078_v50 = vld [vmem:[%s10442_s1 + $0x1348] sm:$0xff]  ;;  %v4127_v44 = vld [vmem:[%s10442_s1 + $0x14d0] sm:$0xff] }
 0x139   :  { %v4130_v45 = vld [vmem:[%s10442_s1 + $0x14e8] sm:$0xff] }
 0x13a   :  { %5135 = vmatmul.mubr.msk.f32.vlgmr.msra.gmra.mrb[12].mxu1 %vm338_vm0, %v8464_v41  ;;  %5785 = vmatpush1.bf16.msra.mxu0 %v5784_v27  ;;  %v5816_v49 = vpack.c.bf16 %v4130_v45, %v4127_v44  ;;  %v4161_v44 = vld [vmem:[%s10442_s1 + $0x15e0] sm:$0xff] }
 0x13b   :  { %5961 = vmatpush3.bf16.msra.mxu1 %v5960_v58  ;;  %5787 = vmatprep.subr.bf16.mxu0 %v5786_v52  ;;  %v5802_v58 = vpack.c.bf16 %v4113_v54, %v4110_v53  ;;  %v4081_v52 = vld [vmem:[%s10442_s1 + $0x1360] sm:$0xff] }
 0x13c   :  { %5963 = vmatprep.subr.bf16.mxu1 %v5962_v13  ;;  %2444 = vmatprep.mubr.f32.mxu1 %v7760_v2  ;;  %v4069_v2 = vld [vmem:[%s10442_s1 + $0x1300] sm:$0xff]  ;;  %v4084_v13 = vld [vmem:[%s10442_s1 + $0x1378] sm:$0xff] }
 0x13d   :  { %v4748_v29 = vpop.f32.mrb[6].mxu1  ;;  %v5972_v51 = vpack.c.bf16 %v4072_v39, %v4069_v2  ;;  %v4096_v2 = vld [vmem:[%s10442_s1 + $0x13d8] sm:$0xff]  ;;  %v4198_v39 = vld [vmem:[%s10442_s1 + $0x1708] sm:$0xff]  ;;  %v4153_v53 = vld [vmem:[%s10442_s1 + $0x15a0] sm:$0xff] }
 0x13e   :  { %v4749_v32 = vpop.f32.mrb[7].mxu1  ;;  %5789 = vmatpush1.bf16.msra.mxu0 %v5788_v10  ;;  %v5980_v10 = vpack.c.bf16 %v4084_v13, %v4081_v52  ;;  %v4133_v54 = vld [vmem:[%s10442_s1 + $0x1500] sm:$0xff]  ;;  %v4207_v52 = vld [vmem:[%s10442_s1 + $0x1750] sm:$0xff] }
 0x13f   :  { %v4750_v33 = vadd.f32 %v4749_v32, %v4748_v29  ;;  %5965 = vmatpush3.bf16.msra.mxu1 %v5964_v12  ;;  %5791 = vmatprep.subr.bf16.mxu0 %v5790_v16  ;;  %v5806_v12 = vpack.c.bf16 %v4119_v6, %v4116_v5  ;;  %v4087_v16 = vld [vmem:[%s10442_s1 + $0x1390] sm:$0xff]  ;;  %v4144_v29 = vld [vmem:[%s10442_s1 + $0x1558] sm:$0xff]  ;;  %v5810_v32 = vpack.c.bf16 %v4125_v26, %v4122_v25  ;;  %v4225_v45 = vld [vmem:[%s10442_s1 + $0x17e0] sm:$0xff] }
 0x140   :  { %5967 = vmatprep.subr.bf16.mxu1 %v5966_v24  ;;  %v4090_v24 = vld [vmem:[%s10442_s1 + $0x13a8] sm:$0xff]  ;;  %v4159_v6 = vld [vmem:[%s10442_s1 + $0x15d0] sm:$0xff] }
 0x141   :  { %v833_v63 = vadd.f32 %v4750_v33, %v8341_v57  ;;  %v902_v43 = vpop.f32.mrb[8].mxu1  ;;  %v4075_v57 = vld [vmem:[%s10442_s1 + $0x1330] sm:$0xff]  ;;  %v5984_v31 = vpack.c.bf16 %v4090_v24, %v4087_v16  ;;  %v4121_v33 = vld [vmem:[%s10442_s1 + $0x14a0] sm:$0xff]  ;;  %v5824_v24 = vpack.c.bf16 %v4142_v8, %v4139_v7  ;;  %v4240_v8 = vld [vmem:[%s10442_s1 + $0x1858] sm:$0xff] }
 0x142   :  { %v5129_v46 = vpop.f32.mrb[9].mxu1  ;;  %5793 = vmatpush1.bf16.msra.mxu0 %v5792_v4  ;;  %v5976_v27 = vpack.c.bf16 %v4078_v50, %v4075_v57  ;;  %v4093_v4 = vld [vmem:[%s10442_s1 + $0x13c0] sm:$0xff] }
 0x143   :  { %v8546_v15 = vadd.f32 %v902_v43, %v833_v63  ;;  %5969 = vmatpush3.bf16.msra.mxu1 %v5968_v34  ;;  %5795 = vmatprep.subr.bf16.mxu0 %v5794_v35  ;;  %v4124_v34 = vld [vmem:[%s10442_s1 + $0x14b8] sm:$0xff]  ;;  %v5986_v35 = vpack.c.bf16 %v4144_v29, %v4141_v28  ;;  %v5988_v42 = vpack.c.bf16 %v4096_v2, %v4093_v4  ;;  %v4147_v43 = vld [vmem:[%s10442_s1 + $0x1570] sm:$0xff]  ;;  %v4201_v57 = vld [vmem:[%s10442_s1 + $0x1720] sm:$0xff] }
 0x144   :  { %5971 = vmatprep.subr.bf16.mxu1 %v5970_v38  ;;  %v4195_v38 = vld [vmem:[%s10442_s1 + $0x16f0] sm:$0xff]  ;;  %v5812_v40 = vpack.c.bf16 %v4124_v34, %v4121_v33  ;;  %v5814_v63 = vpack.c.bf16 %v4131_v36, %v4128_v19  ;;  %v5994_v56 = vpack.c.bf16 %v4204_v48, %v4201_v57  ;;  %v4149_v16 = vld [vmem:[%s10442_s1 + $0x1580] sm:$0xff]  ;;  %v4152_v4 = vld [vmem:[%s10442_s1 + $0x1598] sm:$0xff] }
 0x145   :  { %v5990_v46 = vpack.c.bf16 %v4198_v39, %v4195_v38  ;;  %v4165_v28 = vld [vmem:[%s10442_s1 + $0x1600] sm:$0xff]  ;;  %v4155_v33 = vld [vmem:[%s10442_s1 + $0x15b0] sm:$0xff] }
 0x146   :  { %5797 = vmatpush1.bf16.msra.mxu0 %v5796_v47  ;;  %v4150_v47 = vld [vmem:[%s10442_s1 + $0x1588] sm:$0xff]  ;;  %v4145_v29 = vld [vmem:[%s10442_s1 + $0x1560] sm:$0xff]  ;;  %v4219_v34 = vld [vmem:[%s10442_s1 + $0x17b0] sm:$0xff]  ;;  %v5830_v36 = vpack.c.bf16 %v4155_v33, %v4152_v4 }
 0x147   :  { %5973 = vmatpush3.bf16.msra.mxu1 %v5972_v51  ;;  %5799 = vmatprep.subr.bf16.mxu0 %v5798_v37  ;;  %v4134_v51 = vld [vmem:[%s10442_s1 + $0x1508] sm:$0xff]  ;;  %v4137_v37 = vld [vmem:[%s10442_s1 + $0x1520] sm:$0xff]  ;;  %v4171_v38 = vld [vmem:[%s10442_s1 + $0x1630] sm:$0xff] }
 0x148   :  { %5975 = vmatprep.subr.bf16.mxu1 %v5974_v60  ;;  %v5992_v60 = vpack.c.bf16 %v4150_v47, %v4147_v43  ;;  %v5818_v50 = vpack.c.bf16 %v4137_v37, %v4134_v51  ;;  %v4151_v39 = vld [vmem:[%s10442_s1 + $0x1590] sm:$0xff]  ;;  %v4158_v43 = vld [vmem:[%s10442_s1 + $0x15c8] sm:$0xff]  ;;  %v4177_v57 = vld [vmem:[%s10442_s1 + $0x1660] sm:$0xff] }
 0x149   :  { %v5834_v37 = vpack.c.bf16 %v4161_v44, %v4158_v43  ;;  %v4157_v48 = vld [vmem:[%s10442_s1 + $0x15c0] sm:$0xff]  ;;  %v4243_v4 = vld [vmem:[%s10442_s1 + $0x1870] sm:$0xff] }
 0x14a   :  { %5801 = vmatpush1.bf16.msra.mxu0 %v5800_v59  ;;  %v4156_v59 = vld [vmem:[%s10442_s1 + $0x15b8] sm:$0xff]  ;;  %v4237_v7 = vld [vmem:[%s10442_s1 + $0x1840] sm:$0xff]  ;;  %v4175_v33 = vld [vmem:[%s10442_s1 + $0x1650] sm:$0xff] }
 0x14b   :  { %5977 = vmatpush3.bf16.msra.mxu1 %v5976_v27  ;;  %5803 = vmatprep.subr.bf16.mxu0 %v5802_v58  ;;  %v4140_v27 = vld [vmem:[%s10442_s1 + $0x1538] sm:$0xff]  ;;  %v4143_v58 = vld [vmem:[%s10442_s1 + $0x1550] sm:$0xff]  ;;  %v5996_v13 = vpack.c.bf16 %v4156_v59, %v4153_v53  ;;  %v4249_v43 = vld [vmem:[%s10442_s1 + $0x18a0] sm:$0xff] }
 0x14c   :  { %5979 = vmatprep.subr.bf16.mxu1 %v5978_v0  ;;  %v5820_v0 = vpack.c.bf16 %v4136_v55, %v4133_v54  ;;  %v5822_v5 = vpack.c.bf16 %v4143_v58, %v4140_v27  ;;  %v4164_v53 = vld [vmem:[%s10442_s1 + $0x15f8] sm:$0xff]  ;;  %v4167_v54 = vld [vmem:[%s10442_s1 + $0x1610] sm:$0xff]  ;;  %v4181_v44 = vld [vmem:[%s10442_s1 + $0x1680] sm:$0xff] }
 0x14d   :  { %v4231_v55 = vld [vmem:[%s10442_s1 + $0x1810] sm:$0xff]  ;;  %v5838_v58 = vpack.c.bf16 %v4167_v54, %v4164_v53 }
 0x14e   :  { %5805 = vmatpush1.bf16.msra.mxu0 %v5804_v9  ;;  %v5998_v9 = vpack.c.bf16 %v4210_v61, %v4207_v52  ;;  %v4183_v52 = vld [vmem:[%s10442_s1 + $0x1690] sm:$0xff] }
 0x14f   :  { %5981 = vmatpush3.bf16.msra.mxu1 %v5980_v10  ;;  %5807 = vmatprep.subr.bf16.mxu0 %v5806_v12  ;;  %v4162_v10 = vld [vmem:[%s10442_s1 + $0x15e8] sm:$0xff]  ;;  %v4163_v61 = vld [vmem:[%s10442_s1 + $0x15f0] sm:$0xff] }
 0x150   :  { %5983 = vmatprep.subr.bf16.mxu1 %v5982_v22  ;;  %v4146_v12 = vld [vmem:[%s10442_s1 + $0x1568] sm:$0xff]  ;;  %v4216_v22 = vld [vmem:[%s10442_s1 + $0x1798] sm:$0xff]  ;;  %v6000_v25 = vpack.c.bf16 %v4162_v10, %v4159_v6  ;;  %v4173_v6 = vld [vmem:[%s10442_s1 + $0x1640] sm:$0xff] }
 0x151   :  { %v5826_v26 = vpack.c.bf16 %v4149_v16, %v4146_v12  ;;  %v4189_v16 = vld [vmem:[%s10442_s1 + $0x16c0] sm:$0xff]  ;;  %v4255_v54 = vld [vmem:[%s10442_s1 + $0x18d0] sm:$0xff] }
 0x152   :  { %5809 = vmatpush1.bf16.msra.mxu0 %v5808_v30  ;;  %v4148_v30 = vld [vmem:[%s10442_s1 + $0x1578] sm:$0xff] }
 0x153   :  { %5985 = vmatpush3.bf16.msra.mxu1 %v5984_v31  ;;  %5811 = vmatprep.subr.bf16.mxu0 %v5810_v32  ;;  %v6002_v31 = vpack.c.bf16 %v4216_v22, %v4213_v21  ;;  %v4168_v32 = vld [vmem:[%s10442_s1 + $0x1618] sm:$0xff]  ;;  %v5828_v2 = vpack.c.bf16 %v4148_v30, %v4145_v29  ;;  %v6018_v22 = vpack.c.bf16 %v4240_v8, %v4237_v7  ;;  %v4294_v29 = vld [vmem:[%s10442_s1 + $0x1a08] sm:$0xff]  ;;  %v4261_v7 = vld [vmem:[%s10442_s1 + $0x1900] sm:$0xff] }
 0x154   :  { %5987 = vmatprep.subr.bf16.mxu1 %v5986_v35  ;;  %v4222_v35 = vld [vmem:[%s10442_s1 + $0x17c8] sm:$0xff]  ;;  %v6004_v19 = vpack.c.bf16 %v4168_v32, %v4165_v28  ;;  %v4172_v21 = vld [vmem:[%s10442_s1 + $0x1638] sm:$0xff]  ;;  %v4291_v28 = vld [vmem:[%s10442_s1 + $0x19f0] sm:$0xff] }
 0x155   :  { %v4193_v8 = vld [vmem:[%s10442_s1 + $0x16e0] sm:$0xff] }
 0x156   :  { %5813 = vmatpush1.bf16.msra.mxu0 %v5812_v40  ;;  %v4154_v40 = vld [vmem:[%s10442_s1 + $0x15a8] sm:$0xff] }
 0x157   :  { %5989 = vmatpush3.bf16.msra.mxu1 %v5988_v42  ;;  %5815 = vmatprep.subr.bf16.mxu0 %v5814_v63  ;;  %v6006_v42 = vpack.c.bf16 %v4222_v35, %v4219_v34  ;;  %v4174_v63 = vld [vmem:[%s10442_s1 + $0x1648] sm:$0xff]  ;;  %v5832_v47 = vpack.c.bf16 %v4154_v40, %v4151_v39  ;;  %v6022_v35 = vpack.c.bf16 %v4294_v29, %v4291_v28  ;;  %v4300_v39 = vld [vmem:[%s10442_s1 + $0x1a38] sm:$0xff]  ;;  %v4267_v28 = vld [vmem:[%s10442_s1 + $0x1930] sm:$0xff] }
 0x158   :  { %5991 = vmatprep.subr.bf16.mxu1 %v5990_v46  ;;  %v4228_v46 = vld [vmem:[%s10442_s1 + $0x17f8] sm:$0xff]  ;;  %v6008_v51 = vpack.c.bf16 %v4174_v63, %v4171_v38  ;;  %v4178_v34 = vld [vmem:[%s10442_s1 + $0x1668] sm:$0xff]  ;;  %v4297_v38 = vld [vmem:[%s10442_s1 + $0x1a20] sm:$0xff] }
 0x159   :  { %v5848_v40 = vpack.c.bf16 %v4178_v34, %v4175_v33  ;;  %v4199_v29 = vld [vmem:[%s10442_s1 + $0x1710] sm:$0xff]  ;;  %v4209_v33 = vld [vmem:[%s10442_s1 + $0x1760] sm:$0xff] }
 0x15a   :  { %2445 = vmatmul.mubr.f32.vlgmr.msra.gmra.mrb[14].mxu1 %v6438_v62  ;;  %5817 = vmatpush1.bf16.msra.mxu0 %v5816_v49  ;;  %v4160_v49 = vld [vmem:[%s10442_s1 + $0x15d8] sm:$0xff]  ;;  %v4321_v34 = vld [vmem:[%s10442_s1 + $0x1ae0] sm:$0xff] }
 0x15b   :  { %5993 = vmatpush3.bf16.msra.mxu1 %v5992_v60  ;;  %5819 = vmatprep.subr.bf16.mxu0 %v5818_v50  ;;  %v6010_v60 = vpack.c.bf16 %v4228_v46, %v4225_v45  ;;  %v4180_v50 = vld [vmem:[%s10442_s1 + $0x1678] sm:$0xff]  ;;  %v5836_v59 = vpack.c.bf16 %v4160_v49, %v4157_v48  ;;  %v6026_v46 = vpack.c.bf16 %v4300_v39, %v4297_v38  ;;  %v4306_v48 = vld [vmem:[%s10442_s1 + $0x1a68] sm:$0xff]  ;;  %v8893_v49 = vld [vmem:[%s10443_s0 + $0x10] sm:$0xff] }
 0x15c   :  { %5995 = vmatprep.subr.bf16.mxu1 %v5994_v56  ;;  %2514 = vmatprep.mubr.f32.mxu1 %v6439_v17  ;;  %v4234_v56 = vld [vmem:[%s10442_s1 + $0x1828] sm:$0xff]  ;;  %v6012_v27 = vpack.c.bf16 %v4180_v50, %v4177_v57  ;;  %v4184_v45 = vld [vmem:[%s10442_s1 + $0x1698] sm:$0xff]  ;;  %v4303_v57 = vld [vmem:[%s10442_s1 + $0x1a50] sm:$0xff] }
 0x15d   :  { %v4273_v38 = vld [vmem:[%s10442_s1 + $0x1960] sm:$0xff] }
 0x15e   :  { %5821 = vmatpush1.bf16.msra.mxu0 %v5820_v0  ;;  %v6014_v0 = vpack.c.bf16 %v4234_v56, %v4231_v55  ;;  %v4187_v55 = vld [vmem:[%s10442_s1 + $0x16b0] sm:$0xff]  ;;  %v4190_v56 = vld [vmem:[%s10442_s1 + $0x16c8] sm:$0xff]  ;;  %v4205_v39 = vld [vmem:[%s10442_s1 + $0x1740] sm:$0xff] }
 0x15f   :  { %5997 = vmatpush3.bf16.msra.mxu1 %v5996_v13  ;;  %5823 = vmatprep.subr.bf16.mxu0 %v5822_v5  ;;  %v4186_v13 = vld [vmem:[%s10442_s1 + $0x16a8] sm:$0xff] }
 0x160   :  { %5999 = vmatprep.subr.bf16.mxu1 %v5998_v9  ;;  %v4170_v5 = vld [vmem:[%s10442_s1 + $0x1628] sm:$0xff]  ;;  %v6016_v10 = vpack.c.bf16 %v4186_v13, %v4183_v52  ;;  %v4197_v52 = vld [vmem:[%s10442_s1 + $0x1700] sm:$0xff]  ;;  %v5856_v13 = vpack.c.bf16 %v4190_v56, %v4187_v55 }
 0x161   :  { %v5842_v12 = vpack.c.bf16 %v4173_v6, %v4170_v5  ;;  %v4221_v55 = vld [vmem:[%s10442_s1 + $0x17c0] sm:$0xff] }
 0x162   :  { %5825 = vmatpush1.bf16.msra.mxu0 %v5824_v24  ;;  %v4192_v24 = vld [vmem:[%s10442_s1 + $0x16d8] sm:$0xff]  ;;  %v4333_v56 = vld [vmem:[%s10442_s1 + $0x1b40] sm:$0xff] }
 0x163   :  { %6001 = vmatpush3.bf16.msra.mxu1 %v6000_v25  ;;  %5827 = vmatprep.subr.bf16.mxu0 %v5826_v26  ;;  %v4176_v25 = vld [vmem:[%s10442_s1 + $0x1658] sm:$0xff]  ;;  %v4179_v26 = vld [vmem:[%s10442_s1 + $0x1670] sm:$0xff] }
 0x164   :  { %6003 = vmatprep.subr.bf16.mxu1 %v6002_v31  ;;  %v6020_v31 = vpack.c.bf16 %v4192_v24, %v4189_v16  ;;  %v5846_v32 = vpack.c.bf16 %v4179_v26, %v4176_v25  ;;  %v4200_v16 = vld [vmem:[%s10442_s1 + $0x1718] sm:$0xff] }
 0x165   :  { %2161 = vmatmul.mubr.f32.vlgmr.msra.gmra.mrb[8].mxu0 %v6438_v62  ;;  %v4166_v62 = vld [vmem:[%s10442_s1 + $0x1608] sm:$0xff] }
 0x166   :  { %5829 = vmatpush1.bf16.msra.mxu0 %v5828_v2  ;;  %2231 = vmatprep.mubr.f32.mxu0 %v6439_v17  ;;  %v5840_v9 = vpack.c.bf16 %v4166_v62, %v4163_v61  ;;  %v4169_v17 = vld [vmem:[%s10442_s1 + $0x1620] sm:$0xff]  ;;  %v4246_v2 = vld [vmem:[%s10442_s1 + $0x1888] sm:$0xff] }
 0x167   :  { %6005 = vmatpush3.bf16.msra.mxu1 %v6004_v19  ;;  %5831 = vmatprep.subr.bf16.mxu0 %v5830_v36  ;;  %v5844_v30 = vpack.c.bf16 %v4172_v21, %v4169_v17  ;;  %v4182_v19 = vld [vmem:[%s10442_s1 + $0x1688] sm:$0xff]  ;;  %v4185_v36 = vld [vmem:[%s10442_s1 + $0x16a0] sm:$0xff]  ;;  %v4203_v17 = vld [vmem:[%s10442_s1 + $0x1730] sm:$0xff] }
 0x168   :  { %6007 = vmatprep.subr.bf16.mxu1 %v6006_v42  ;;  %v6024_v42 = vpack.c.bf16 %v4246_v2, %v4243_v4  ;;  %v5850_v63 = vpack.c.bf16 %v4185_v36, %v4182_v19  ;;  %v8917_v61 = vld [vmem:[%s10443_s0 + $0x28] sm:$0xff]  ;;  %v4309_v62 = vld [vmem:[%s10442_s1 + $0x1a80] sm:$0xff]  ;;  %v4315_v21 = vld [vmem:[%s10442_s1 + $0x1ab0] sm:$0xff]  ;;  %v5862_v26 = vpack.c.bf16 %v4203_v17, %v4200_v16 }
 0x169   :  { %v4206_v4 = vld [vmem:[%s10442_s1 + $0x1748] sm:$0xff] }
 0x16a   :  { %5833 = vmatpush1.bf16.msra.mxu0 %v5832_v47  ;;  %v4252_v47 = vld [vmem:[%s10442_s1 + $0x18b8] sm:$0xff]  ;;  %v5866_v36 = vpack.c.bf16 %v4209_v33, %v4206_v4 }
 0x16b   :  { %6009 = vmatpush3.bf16.msra.mxu1 %v6008_v51  ;;  %5835 = vmatprep.subr.bf16.mxu0 %v5834_v37  ;;  %v4188_v51 = vld [vmem:[%s10442_s1 + $0x16b8] sm:$0xff]  ;;  %v4191_v37 = vld [vmem:[%s10442_s1 + $0x16d0] sm:$0xff]  ;;  %v6028_v50 = vpack.c.bf16 %v4252_v47, %v4249_v43 }
 0x16c   :  { %6011 = vmatprep.subr.bf16.mxu1 %v6010_v60  ;;  %v5852_v60 = vpack.c.bf16 %v4184_v45, %v4181_v44  ;;  %v5854_v53 = vpack.c.bf16 %v4191_v37, %v4188_v51  ;;  %v4212_v43 = vld [vmem:[%s10442_s1 + $0x1778] sm:$0xff]  ;;  %v4215_v44 = vld [vmem:[%s10442_s1 + $0x1790] sm:$0xff] }
 0x16d   :  { %v4327_v45 = vld [vmem:[%s10442_s1 + $0x1b10] sm:$0xff]  ;;  %v5870_v37 = vpack.c.bf16 %v4215_v44, %v4212_v43  ;;  %v4353_v44 = vld [vmem:[%s10442_s1 + $0x1bc8] sm:$0xff] }
 0x16e   :  { %5837 = vmatpush1.bf16.msra.mxu0 %v5836_v59  ;;  %v6030_v59 = vpack.c.bf16 %v4306_v48, %v4303_v57  ;;  %v4279_v57 = vld [vmem:[%s10442_s1 + $0x1990] sm:$0xff] }
 0x16f   :  { %6013 = vmatpush3.bf16.msra.mxu1 %v6012_v27  ;;  %5839 = vmatprep.subr.bf16.mxu0 %v5838_v58  ;;  %v4258_v27 = vld [vmem:[%s10442_s1 + $0x18e8] sm:$0xff]  ;;  %v4211_v48 = vld [vmem:[%s10442_s1 + $0x1770] sm:$0xff] }
 0x170   :  { %6015 = vmatprep.subr.bf16.mxu1 %v6014_v0  ;;  %v4194_v58 = vld [vmem:[%s10442_s1 + $0x16e8] sm:$0xff]  ;;  %v4312_v0 = vld [vmem:[%s10442_s1 + $0x1a98] sm:$0xff]  ;;  %v6032_v5 = vpack.c.bf16 %v4258_v27, %v4255_v54 }
 0x171   :  { %v5858_v6 = vpack.c.bf16 %v4197_v52, %v4194_v58  ;;  %v4218_v54 = vld [vmem:[%s10442_s1 + $0x17a8] sm:$0xff] }
 0x172   :  { %5841 = vmatpush1.bf16.msra.mxu0 %v5840_v9  ;;  %v4196_v9 = vld [vmem:[%s10442_s1 + $0x16f8] sm:$0xff]  ;;  %v5874_v52 = vpack.c.bf16 %v4221_v55, %v4218_v54  ;;  %v4242_v54 = vld [vmem:[%s10442_s1 + $0x1868] sm:$0xff]  ;;  %v4245_v55 = vld [vmem:[%s10442_s1 + $0x1880] sm:$0xff] }
 0x173   :  { %6017 = vmatpush3.bf16.msra.mxu1 %v6016_v10  ;;  %5843 = vmatprep.subr.bf16.mxu0 %v5842_v12  ;;  %v6034_v10 = vpack.c.bf16 %v4312_v0, %v4309_v62  ;;  %v4264_v12 = vld [vmem:[%s10442_s1 + $0x1918] sm:$0xff]  ;;  %v5860_v24 = vpack.c.bf16 %v4196_v9, %v4193_v8  ;;  %v4285_v62 = vld [vmem:[%s10442_s1 + $0x19c0] sm:$0xff]  ;;  %v4227_v8 = vld [vmem:[%s10442_s1 + $0x17f0] sm:$0xff]  ;;  %v9041_v9 = vsub.s32 0, %v8241_v1 }
 0x174   :  { %6019 = vmatprep.subr.bf16.mxu1 %v6018_v22  ;;  %v4318_v22 = vld [vmem:[%s10442_s1 + $0x1ac8] sm:$0xff]  ;;  %v6036_v25 = vpack.c.bf16 %v4264_v12, %v4261_v7  ;;  %v4217_v0 = vld [vmem:[%s10442_s1 + $0x17a0] sm:$0xff]  ;;  %v4224_v7 = vld [vmem:[%s10442_s1 + $0x17d8] sm:$0xff]  ;;  %v9044_v12 = vsub.s32 1, %v8241_v1 }
 0x175   :  { %v5878_v17 = vpack.c.bf16 %v4227_v8, %v4224_v7  ;;  %v4342_v1 = vld [vmem:[%s10442_s1 + $0x1b88] sm:$0xff] }
 0x176   :  { %5845 = vmatpush1.bf16.msra.mxu0 %v5844_v30  ;;  %v4202_v30 = vld [vmem:[%s10442_s1 + $0x1728] sm:$0xff] }
 0x177   :  { %6021 = vmatpush3.bf16.msra.mxu1 %v6020_v31  ;;  %5847 = vmatprep.subr.bf16.mxu0 %v5846_v32  ;;  %v6038_v31 = vpack.c.bf16 %v4318_v22, %v4315_v21  ;;  %v4270_v32 = vld [vmem:[%s10442_s1 + $0x1948] sm:$0xff]  ;;  %v5864_v2 = vpack.c.bf16 %v4202_v30, %v4199_v29  ;;  %v4223_v21 = vld [vmem:[%s10442_s1 + $0x17d0] sm:$0xff] }
 0x178   :  { %6023 = vmatprep.subr.bf16.mxu1 %v6022_v35  ;;  %v4324_v35 = vld [vmem:[%s10442_s1 + $0x1af8] sm:$0xff]  ;;  %v6040_v19 = vpack.c.bf16 %v4270_v32, %v4267_v28  ;;  %v4226_v22 = vld [vmem:[%s10442_s1 + $0x17e8] sm:$0xff]  ;;  %v4350_v29 = vld [vmem:[%s10442_s1 + $0x1bb0] sm:$0xff] }
 0x179   :  { %v4230_v30 = vld [vmem:[%s10442_s1 + $0x1808] sm:$0xff]  ;;  %v5880_v4 = vpack.c.bf16 %v4226_v22, %v4223_v21  ;;  %v4364_v22 = vld [vmem:[%s10442_s1 + $0x1c20] sm:$0xff] }
 0x17a   :  { %2515 = vmatmul.mubr.f32.vlgmr.msra.gmra.mrb[16].mxu1 %v8893_v49  ;;  %5849 = vmatpush1.bf16.msra.mxu0 %v5848_v40  ;;  %v4208_v40 = vld [vmem:[%s10442_s1 + $0x1758] sm:$0xff]  ;;  %v9156_v7 = vld [vmem:[%s10443_s0 + $0x8] sm:$0xff] }
 0x17b   :  { %6025 = vmatpush3.bf16.msra.mxu1 %v6024_v42  ;;  %5851 = vmatprep.subr.bf16.mxu0 %v5850_v63  ;;  %v6042_v42 = vpack.c.bf16 %v4324_v35, %v4321_v34  ;;  %v4276_v63 = vld [vmem:[%s10442_s1 + $0x1978] sm:$0xff]  ;;  %v5868_v47 = vpack.c.bf16 %v4208_v40, %v4205_v39  ;;  %v4346_v34 = vld [vmem:[%s10442_s1 + $0x1b90] sm:$0xff]  ;;  %v4229_v35 = vld [vmem:[%s10442_s1 + $0x1800] sm:$0xff] }
 0x17c   :  { %6027 = vmatprep.subr.bf16.mxu1 %v6026_v46  ;;  %2584 = vmatprep.mubr.f32.mxu1 %v8917_v61  ;;  %v4330_v46 = vld [vmem:[%s10442_s1 + $0x1b28] sm:$0xff]  ;;  %v6044_v51 = vpack.c.bf16 %v4276_v63, %v4273_v38  ;;  %v4236_v40 = vld [vmem:[%s10442_s1 + $0x1838] sm:$0xff] }
 0x17d   :  { %v4349_v39 = vld [vmem:[%s10442_s1 + $0x1ba8] sm:$0xff] }
 0x17e   :  { %5853 = vmatpush1.bf16.msra.mxu0 %v5852_v60  ;;  %v4214_v60 = vld [vmem:[%s10442_s1 + $0x1788] sm:$0xff] }
 0x17f   :  { %6029 = vmatpush3.bf16.msra.mxu1 %v6028_v50  ;;  %5855 = vmatprep.subr.bf16.mxu0 %v5854_v53  ;;  %v6046_v50 = vpack.c.bf16 %v4330_v46, %v4327_v45  ;;  %v4282_v53 = vld [vmem:[%s10442_s1 + $0x19a8] sm:$0xff]  ;;  %v5872_v27 = vpack.c.bf16 %v4214_v60, %v4211_v48  ;;  %v4356_v45 = vld [vmem:[%s10442_s1 + $0x1be0] sm:$0xff] }
 0x180   :  { %6031 = vmatprep.subr.bf16.mxu1 %v6030_v59  ;;  %v4336_v59 = vld [vmem:[%s10442_s1 + $0x1b58] sm:$0xff]  ;;  %v6048_v58 = vpack.c.bf16 %v4282_v53, %v4279_v57  ;;  %v4352_v48 = vld [vmem:[%s10442_s1 + $0x1bc0] sm:$0xff]  ;;  %v4238_v60 = vld [vmem:[%s10442_s1 + $0x1848] sm:$0xff] }
 0x181   :  { %v4355_v53 = vld [vmem:[%s10442_s1 + $0x1bd8] sm:$0xff]  ;;  %v4365_v8 = vld [vmem:[%s10442_s1 + $0x1c28] sm:$0xff] }
 0x182   :  { %5857 = vmatpush1.bf16.msra.mxu0 %v5856_v13  ;;  %v4220_v13 = vld [vmem:[%s10442_s1 + $0x17b8] sm:$0xff] }
 0x183   :  { %6033 = vmatpush3.bf16.msra.mxu1 %v6032_v5  ;;  %5859 = vmatprep.subr.bf16.mxu0 %v5858_v6  ;;  %v6050_v5 = vpack.c.bf16 %v4336_v59, %v4333_v56  ;;  %v4288_v6 = vld [vmem:[%s10442_s1 + $0x19d8] sm:$0xff]  ;;  %v4362_v56 = vld [vmem:[%s10442_s1 + $0x1c10] sm:$0xff] }
 0x184   :  { %6035 = vmatprep.subr.bf16.mxu1 %v6034_v10  ;;  %v5876_v10 = vpack.c.bf16 %v4220_v13, %v4217_v0  ;;  %v6052_v16 = vpack.c.bf16 %v4288_v6, %v4285_v62  ;;  %v4241_v62 = vld [vmem:[%s10442_s1 + $0x1860] sm:$0xff]  ;;  %v4244_v0 = vld [vmem:[%s10442_s1 + $0x1878] sm:$0xff]  ;;  %v4361_v13 = vld [vmem:[%s10442_s1 + $0x1c08] sm:$0xff] }
 0x185   :  { %v4251_v6 = vld [vmem:[%s10442_s1 + $0x18b0] sm:$0xff] }
 0x186   :  { %5861 = vmatpush1.bf16.msra.mxu0 %v5860_v24  ;;  %v4339_v24 = vld [vmem:[%s10442_s1 + $0x1b70] sm:$0xff] }
 0x187   :  { %6037 = vmatpush3.bf16.msra.mxu1 %v6036_v25  ;;  %5863 = vmatprep.subr.bf16.mxu0 %v5862_v26  ;;  %v4347_v25 = vld [vmem:[%s10442_s1 + $0x1b98] sm:$0xff]  ;;  %v6442_v26 = vld [vmem:[%s10444_s2] sm:$0x7]  ;;  %v6055_v33 = vpack.c.bf16 %v4342_v1, %v4339_v24  ;;  %v4247_v24 = vld [vmem:[%s10442_s1 + $0x1890] sm:$0xff] }
 0x188   :  { %6039 = vmatprep.subr.bf16.mxu1 %v6038_v31  ;;  %v326_v28 = vrot.slane %v6442_v26, %v9041_v9  ;;  %v4233_v31 = vld [vmem:[%s10442_s1 + $0x1820] sm:$0xff]  ;;  %v330_v32 = vrot.slane %v6442_v26, %v9044_v12  ;;  %v4250_v1 = vld [vmem:[%s10442_s1 + $0x18a8] sm:$0xff]  ;;  %v4367_v26 = vld [vmem:[%s10442_s1 + $0x1c38] sm:$0xff] }
 0x189   :  { %v5882_v38 = vpack.c.bf16 %v4233_v31, %v4230_v30  ;;  %v4371_v30 = vld [vmem:[%s10442_s1 + $0x1c58] sm:$0xff]  ;;  %v4374_v31 = vld [vmem:[%s10442_s1 + $0x1c70] sm:$0xff] }
 0x18a   :  { %5865 = vmatpush1.bf16.msra.mxu0 %v5864_v2  ;;  %v4232_v2 = vld [vmem:[%s10442_s1 + $0x1818] sm:$0xff] }
 0x18b   :  { %6041 = vmatpush3.bf16.msra.mxu1 %v6040_v19  ;;  %5867 = vmatprep.subr.bf16.mxu0 %v5866_v36  ;;  %v6057_v36 = vpack.c.bf16 %v4350_v29, %v4347_v25  ;;  %v4257_v29 = vld [vmem:[%s10442_s1 + $0x18e0] sm:$0xff] }
 0x18c   :  { %6043 = vmatprep.subr.bf16.mxu1 %v6042_v42  ;;  %v4239_v42 = vld [vmem:[%s10442_s1 + $0x1850] sm:$0xff] }
 0x18d   :  { %v5886_v57 = vpack.c.bf16 %v4239_v42, %v4236_v40 }
 0x18e   :  { %5869 = vmatpush1.bf16.msra.mxu0 %v5868_v47  ;;  %v5884_v47 = vpack.c.bf16 %v4232_v2, %v4229_v35  ;;  %v4256_v35 = vld [vmem:[%s10442_s1 + $0x18d8] sm:$0xff]  ;;  %v6073_v2 = vpack.c.bf16 %v4374_v31, %v4371_v30 }
 0x18f   :  { %6045 = vmatpush3.bf16.msra.mxu1 %v6044_v51  ;;  %5871 = vmatprep.subr.bf16.mxu0 %v5870_v37  ;;  %v6059_v37 = vpack.c.bf16 %v4349_v39, %v4346_v34  ;;  %v4253_v34 = vld [vmem:[%s10442_s1 + $0x18c0] sm:$0xff]  ;;  %v4280_v30 = vld [vmem:[%s10442_s1 + $0x1998] sm:$0xff] }
 0x190   :  { %6047 = vmatprep.subr.bf16.mxu1 %v6046_v50  ;;  %v6061_v50 = vpack.c.bf16 %v4356_v45, %v4353_v44  ;;  %v4380_v39 = vld [vmem:[%s10442_s1 + $0x1ca0] sm:$0xff]  ;;  %v5900_v40 = vpack.c.bf16 %v4256_v35, %v4253_v34  ;;  %v4259_v44 = vld [vmem:[%s10442_s1 + $0x18f0] sm:$0xff]  ;;  %v4262_v45 = vld [vmem:[%s10442_s1 + $0x1908] sm:$0xff] }
 0x191   :  { %v4401_v34 = vld [vmem:[%s10442_s1 + $0x1d48] sm:$0xff]  ;;  %v4404_v35 = vld [vmem:[%s10442_s1 + $0x1d60] sm:$0xff] }
 0x192   :  { %5873 = vmatpush1.bf16.msra.mxu0 %v5872_v27  ;;  %v6063_v27 = vpack.c.bf16 %v4355_v53, %v4352_v48  ;;  %v4383_v48 = vld [vmem:[%s10442_s1 + $0x1cb8] sm:$0xff] }
 0x193   :  { %6049 = vmatpush3.bf16.msra.mxu1 %v6048_v58  ;;  %5875 = vmatprep.subr.bf16.mxu0 %v5874_v52  ;;  %v5890_v58 = vpack.c.bf16 %v4245_v55, %v4242_v54  ;;  %v4358_v52 = vld [vmem:[%s10442_s1 + $0x1bf0] sm:$0xff]  ;;  %v4265_v55 = vld [vmem:[%s10442_s1 + $0x1920] sm:$0xff] }
 0x194   :  { %6051 = vmatprep.subr.bf16.mxu1 %v6050_v5  ;;  %v4248_v5 = vld [vmem:[%s10442_s1 + $0x1898] sm:$0xff]  ;;  %v4382_v54 = vld [vmem:[%s10442_s1 + $0x1cb0] sm:$0xff] }
 0x195   :  { %v5894_v21 = vpack.c.bf16 %v4251_v6, %v4248_v5  ;;  %v4388_v5 = vld [vmem:[%s10442_s1 + $0x1ce0] sm:$0xff]  ;;  %v4271_v6 = vld [vmem:[%s10442_s1 + $0x1950] sm:$0xff] }
 0x196   :  { %5877 = vmatpush1.bf16.msra.mxu0 %v5876_v10  ;;  %v4368_v10 = vld [vmem:[%s10442_s1 + $0x1c40] sm:$0xff] }
 0x197   :  { %6053 = vmatpush3.bf16.msra.mxu1 %v6052_v16  ;;  %5879 = vmatprep.subr.bf16.mxu0 %v5878_v17  ;;  %v5892_v16 = vpack.c.bf16 %v4244_v0, %v4241_v62  ;;  %v6067_v17 = vpack.c.bf16 %v4361_v13, %v4358_v52  ;;  %v6069_v25 = vpack.c.bf16 %v4368_v10, %v4365_v8  ;;  %v4389_v52 = vld [vmem:[%s10442_s1 + $0x1ce8] sm:$0xff]  ;;  %v4392_v62 = vld [vmem:[%s10442_s1 + $0x1d00] sm:$0xff] }
 0x198   :  { %v550_v19 = vpop.f32.mrb[0].mxu0  ;;  %6054 = vmatprep.subr.bf16.mxu1 %v6451_v20  ;;  %v4274_v8 = vld [vmem:[%s10442_s1 + $0x1968] sm:$0xff]  ;;  %v6085_v10 = vpack.c.bf16 %v4392_v62, %v4389_v52  ;;  %v4412_v62 = vld [vmem:[%s10442_s1 + $0x1da0] sm:$0xff] }
 0x199   :  { %v6396_v63 = vadd.f32 %v550_v19, %v326_v28  ;;  %v552_v43 = vpop.f32.mrb[1].mxu0  ;;  %v4254_v28 = vld [vmem:[%s10442_s1 + $0x18c8] sm:$0xff]  ;;  %v4260_v19 = vld [vmem:[%s10442_s1 + $0x18f8] sm:$0xff] }
 0x19a   :  { %2585 = vmatmul.mubr.f32.vlgmr.msra.gmra.mrb[18].mxu1 %v8370_v11  ;;  %v6398_v46 = vadd.f32 %v552_v43, %v330_v32  ;;  %5881 = vmatpush1.bf16.msra.mxu0 %v5880_v4  ;;  %v4235_v11 = vld [vmem:[%s10442_s1 + $0x1830] sm:$0xff]  ;;  %v5896_v32 = vpack.c.bf16 %v4250_v1, %v4247_v24  ;;  %v6071_v4 = vpack.c.bf16 %v4367_v26, %v4364_v22  ;;  %v4376_v43 = vld [vmem:[%s10442_s1 + $0x1c80] sm:$0xff]  ;;  %v4395_v22 = vld [vmem:[%s10442_s1 + $0x1d18] sm:$0xff] }
 0x19b   :  { %v9102_v51 = vadd.f32 %v6396_v63, %v7901_v14  ;;  %6056 = vmatpush3.bf16.msra.mxu1 %v6055_v33  ;;  %5141 = vmatprep.mubr.msk.f32.mxu1 %vm6452_vm1, %v6450_v3  ;;  %v5888_v59 = vpack.c.bf16 %v4238_v60, %v4235_v11  ;;  %v5898_v33 = vpack.c.bf16 %v4257_v29, %v4254_v28  ;;  %v4386_v11 = vld [vmem:[%s10442_s1 + $0x1cd0] sm:$0xff]  ;;  %v4277_v29 = vld [vmem:[%s10442_s1 + $0x1980] sm:$0xff] }
 0x19c   :  { %v9116_v14 = vadd.f32 %v6398_v46, %v7909_v18  ;;  %6058 = vmatprep.subr.bf16.mxu1 %v6057_v36  ;;  %5883 = vmatprep.subr.bf16.mxu0 %v5882_v38  ;;  %v4359_v18 = vld [vmem:[%s10442_s1 + $0x1bf8] sm:$0xff]  ;;  %v4263_v36 = vld [vmem:[%s10442_s1 + $0x1910] sm:$0xff]  ;;  %v4377_v38 = vld [vmem:[%s10442_s1 + $0x1c88] sm:$0xff]  ;;  %v5904_v60 = vpack.c.bf16 %v4262_v45, %v4259_v44  ;;  %v5912_v1 = vpack.c.bf16 %v4274_v8, %v4271_v6 }
 0x19d   :  { %v5902_v63 = vpack.c.bf16 %v4263_v36, %v4260_v19  ;;  %v6077_v46 = vpack.c.bf16 %v4380_v39, %v4377_v38  ;;  %v4398_v24 = vld [vmem:[%s10442_s1 + $0x1d30] sm:$0xff]  ;;  %v4400_v39 = vld [vmem:[%s10442_s1 + $0x1d40] sm:$0xff]  ;;  %v4290_v44 = vld [vmem:[%s10442_s1 + $0x19e8] sm:$0xff] }
 0x19e   :  { %5142 = vmatmul.mubr.msk.f32.vlgmr.msra.gmra.mrb[20].mxu1 %vm338_vm0, %v8464_v41  ;;  %5885 = vmatpush1.bf16.msra.mxu0 %v5884_v47  ;;  %v6065_v41 = vpack.c.bf16 %v4362_v56, %v4359_v18  ;;  %v4379_v47 = vld [vmem:[%s10442_s1 + $0x1c98] sm:$0xff]  ;;  %v6081_v56 = vpack.c.bf16 %v4386_v11, %v4383_v48  ;;  %v4394_v28 = vld [vmem:[%s10442_s1 + $0x1d10] sm:$0xff]  ;;  %v6089_v31 = vpack.c.bf16 %v4398_v24, %v4395_v22  ;;  %v4293_v45 = vld [vmem:[%s10442_s1 + $0x1a00] sm:$0xff] }
 0x19f   :  { %6060 = vmatpush1.bf16.msra.mxu1 %v6059_v37  ;;  %5887 = vmatprep.subr.bf16.mxu0 %v5886_v57  ;;  %v4266_v37 = vld [vmem:[%s10442_s1 + $0x1928] sm:$0xff]  ;;  %v4269_v57 = vld [vmem:[%s10442_s1 + $0x1940] sm:$0xff]  ;;  %v4268_v18 = vld [vmem:[%s10442_s1 + $0x1938] sm:$0xff]  ;;  %v5922_v48 = vpack.c.bf16 %v4293_v45, %v4290_v44 }
 0x1a0   :  { %6062 = vmatprep.subr.bf16.mxu1 %v6061_v50  ;;  %3037 = vmatprep.mubr.f32.mxu1 %v9156_v7  ;;  %v6079_v50 = vpack.c.bf16 %v4379_v47, %v4376_v43  ;;  %v5906_v53 = vpack.c.bf16 %v4269_v57, %v4266_v37  ;;  %v5908_v0 = vpack.c.bf16 %v4268_v18, %v4265_v55  ;;  %v4403_v43 = vld [vmem:[%s10442_s1 + $0x1d58] sm:$0xff]  ;;  %v4410_v47 = vld [vmem:[%s10442_s1 + $0x1d90] sm:$0xff]  ;;  %v4302_v6 = vld [vmem:[%s10442_s1 + $0x1a48] sm:$0xff] }
 0x1a1   :  { %v6095_v57 = vpack.c.bf16 %v4403_v43, %v4400_v39  ;;  %v4406_v11 = vld [vmem:[%s10442_s1 + $0x1d70] sm:$0xff]  ;;  %v4296_v55 = vld [vmem:[%s10442_s1 + $0x1a18] sm:$0xff]  ;;  %v4305_v8 = vld [vmem:[%s10442_s1 + $0x1a60] sm:$0xff] }
 0x1a2   :  { %5889 = vmatpush1.bf16.msra.mxu0 %v5888_v59  ;;  %v4385_v59 = vld [vmem:[%s10442_s1 + $0x1cc8] sm:$0xff]  ;;  %v4299_v18 = vld [vmem:[%s10442_s1 + $0x1a30] sm:$0xff]  ;;  %v5930_v22 = vpack.c.bf16 %v4305_v8, %v4302_v6  ;;  %v4317_v39 = vld [vmem:[%s10442_s1 + $0x1ac0] sm:$0xff] }
 0x1a3   :  { %6064 = vmatpush1.bf16.msra.mxu1 %v6063_v27  ;;  %5891 = vmatprep.subr.bf16.mxu0 %v5890_v58  ;;  %v4272_v27 = vld [vmem:[%s10442_s1 + $0x1958] sm:$0xff]  ;;  %v4275_v58 = vld [vmem:[%s10442_s1 + $0x1970] sm:$0xff]  ;;  %v5926_v52 = vpack.c.bf16 %v4299_v18, %v4296_v55 }
 0x1a4   :  { %6066 = vmatprep.subr.bf16.mxu1 %v6065_v41  ;;  %v6083_v41 = vpack.c.bf16 %v4385_v59, %v4382_v54  ;;  %v5910_v13 = vpack.c.bf16 %v4275_v58, %v4272_v27  ;;  %v4409_v54 = vld [vmem:[%s10442_s1 + $0x1d88] sm:$0xff]  ;;  %v4416_v59 = vld [vmem:[%s10442_s1 + $0x1dc0] sm:$0xff]  ;;  %v4418_v24 = vld [vmem:[%s10442_s1 + $0x1dd0] sm:$0xff] }
 0x1a5   :  { %2232 = vmatmul.mubr.f32.vlgmr.msra.gmra.mrb[8].mxu0 %v8893_v49  ;;  %v4370_v49 = vld [vmem:[%s10442_s1 + $0x1c50] sm:$0xff]  ;;  %v6099_v58 = vpack.c.bf16 %v4409_v54, %v4406_v11 }
 0x1a6   :  { %5893 = vmatpush1.bf16.msra.mxu0 %v5892_v16  ;;  %2302 = vmatprep.mubr.f32.mxu0 %v8917_v61  ;;  %v4373_v61 = vld [vmem:[%s10442_s1 + $0x1c68] sm:$0xff]  ;;  %v4391_v16 = vld [vmem:[%s10442_s1 + $0x1cf8] sm:$0xff]  ;;  %v4430_v45 = vld [vmem:[%s10442_s1 + $0x1e30] sm:$0xff] }
 0x1a7   :  { %6068 = vmatpush1.bf16.msra.mxu1 %v6067_v17  ;;  %5895 = vmatprep.subr.bf16.mxu0 %v5894_v21  ;;  %v6075_v42 = vpack.c.bf16 %v4373_v61, %v4370_v49  ;;  %v4278_v17 = vld [vmem:[%s10442_s1 + $0x1988] sm:$0xff]  ;;  %v4281_v21 = vld [vmem:[%s10442_s1 + $0x19a0] sm:$0xff]  ;;  %v5916_v61 = vpack.c.bf16 %v4280_v30, %v4277_v29  ;;  %v4308_v29 = vld [vmem:[%s10442_s1 + $0x1a78] sm:$0xff] }
 0x1a8   :  { %6070 = vmatprep.subr.bf16.mxu1 %v6069_v25  ;;  %v6087_v25 = vpack.c.bf16 %v4391_v16, %v4388_v5  ;;  %v5914_v26 = vpack.c.bf16 %v4281_v21, %v4278_v17  ;;  %v4415_v5 = vld [vmem:[%s10442_s1 + $0x1db8] sm:$0xff]  ;;  %v4422_v16 = vld [vmem:[%s10442_s1 + $0x1df0] sm:$0xff] }
 0x1a9   :  { %v6103_v21 = vpack.c.bf16 %v4415_v5, %v4412_v62  ;;  %v4311_v30 = vld [vmem:[%s10442_s1 + $0x1a90] sm:$0xff]  ;;  %v4326_v62 = vld [vmem:[%s10442_s1 + $0x1b08] sm:$0xff] }
 0x1aa   :  { %5897 = vmatpush1.bf16.msra.mxu0 %v5896_v32  ;;  %v4397_v32 = vld [vmem:[%s10442_s1 + $0x1d28] sm:$0xff]  ;;  %v4323_v11 = vld [vmem:[%s10442_s1 + $0x1af0] sm:$0xff] }
 0x1ab   :  { %6072 = vmatpush1.bf16.msra.mxu1 %v6071_v4  ;;  %5899 = vmatprep.subr.bf16.mxu0 %v5898_v33  ;;  %v4284_v4 = vld [vmem:[%s10442_s1 + $0x19b8] sm:$0xff]  ;;  %v4287_v33 = vld [vmem:[%s10442_s1 + $0x19d0] sm:$0xff]  ;;  %v6091_v36 = vpack.c.bf16 %v4397_v32, %v4394_v28  ;;  %v4421_v28 = vld [vmem:[%s10442_s1 + $0x1de8] sm:$0xff] }
 0x1ac   :  { %6074 = vmatprep.subr.bf16.mxu1 %v6073_v2  ;;  %v5918_v38 = vpack.c.bf16 %v4287_v33, %v4284_v4  ;;  %v4428_v32 = vld [vmem:[%s10442_s1 + $0x1e20] sm:$0xff]  ;;  %v6107_v33 = vpack.c.bf16 %v4421_v28, %v4418_v24 }
 0x1ae   :  { %5901 = vmatpush1.bf16.msra.mxu0 %v5900_v40  ;;  %v4283_v40 = vld [vmem:[%s10442_s1 + $0x19b0] sm:$0xff] }
 0x1af   :  { %6076 = vmatpush1.bf16.msra.mxu1 %v6075_v42  ;;  %5903 = vmatprep.subr.bf16.mxu0 %v5902_v63  ;;  %v4286_v42 = vld [vmem:[%s10442_s1 + $0x19c8] sm:$0xff]  ;;  %v6093_v63 = vpack.c.bf16 %v4404_v35, %v4401_v34  ;;  %v4424_v34 = vld [vmem:[%s10442_s1 + $0x1e00] sm:$0xff]  ;;  %v4307_v35 = vld [vmem:[%s10442_s1 + $0x1a70] sm:$0xff] }
 0x1b0   :  { %6078 = vmatprep.subr.bf16.mxu1 %v6077_v46  ;;  %v4407_v46 = vld [vmem:[%s10442_s1 + $0x1d78] sm:$0xff]  ;;  %v5920_v37 = vpack.c.bf16 %v4286_v42, %v4283_v40  ;;  %v4434_v42 = vld [vmem:[%s10442_s1 + $0x1e50] sm:$0xff] }
 0x1b1   :  { %v4431_v40 = vld [vmem:[%s10442_s1 + $0x1e38] sm:$0xff] }
 0x1b2   :  { %5905 = vmatpush1.bf16.msra.mxu0 %v5904_v60  ;;  %v4289_v60 = vld [vmem:[%s10442_s1 + $0x19e0] sm:$0xff] }
 0x1b3   :  { %6080 = vmatpush1.bf16.msra.mxu1 %v6079_v50  ;;  %5907 = vmatprep.subr.bf16.mxu0 %v5906_v53  ;;  %v4292_v50 = vld [vmem:[%s10442_s1 + $0x19f8] sm:$0xff]  ;;  %v6097_v53 = vpack.c.bf16 %v4410_v47, %v4407_v46  ;;  %v4313_v46 = vld [vmem:[%s10442_s1 + $0x1aa0] sm:$0xff] }
 0x1b4   :  { %6082 = vmatprep.subr.bf16.mxu1 %v6081_v56  ;;  %v4413_v56 = vld [vmem:[%s10442_s1 + $0x1da8] sm:$0xff]  ;;  %v5924_v27 = vpack.c.bf16 %v4292_v50, %v4289_v60  ;;  %v4316_v47 = vld [vmem:[%s10442_s1 + $0x1ab8] sm:$0xff]  ;;  %v4440_v50 = vld [vmem:[%s10442_s1 + $0x1e80] sm:$0xff] }
 0x1b5   :  { %v4437_v60 = vld [vmem:[%s10442_s1 + $0x1e68] sm:$0xff]  ;;  %v5940_v54 = vpack.c.bf16 %v4316_v47, %v4313_v46  ;;  %v4337_v47 = vld [vmem:[%s10442_s1 + $0x1b60] sm:$0xff] }
 0x1b6   :  { %5909 = vmatpush1.bf16.msra.mxu0 %v5908_v0  ;;  %v4295_v0 = vld [vmem:[%s10442_s1 + $0x1a10] sm:$0xff] }
 0x1b7   :  { %6084 = vmatpush1.bf16.msra.mxu1 %v6083_v41  ;;  %5911 = vmatprep.subr.bf16.mxu0 %v5910_v13  ;;  %v4298_v41 = vld [vmem:[%s10442_s1 + $0x1a28] sm:$0xff]  ;;  %v6101_v13 = vpack.c.bf16 %v4416_v59, %v4413_v56  ;;  %v4436_v56 = vld [vmem:[%s10442_s1 + $0x1e60] sm:$0xff]  ;;  %v4319_v59 = vld [vmem:[%s10442_s1 + $0x1ad0] sm:$0xff] }
 0x1b8   :  { %6086 = vmatprep.subr.bf16.mxu1 %v6085_v10  ;;  %v4786_v49 = vpop.f32.mrb[2].mxu0  ;;  %v4419_v10 = vld [vmem:[%s10442_s1 + $0x1dd8] sm:$0xff]  ;;  %v5928_v17 = vpack.c.bf16 %v4298_v41, %v4295_v0  ;;  %v4329_v0 = vld [vmem:[%s10442_s1 + $0x1b20] sm:$0xff] }
 0x1b9   :  { %v4787_v2 = vpop.f32.mrb[3].mxu0  ;;  %v4443_v41 = vld [vmem:[%s10442_s1 + $0x1e98] sm:$0xff] }
 0x1ba   :  { %5913 = vmatpush1.bf16.msra.mxu0 %v5912_v1  ;;  %v9311_v19 = vadd.f32 %v4787_v2, %v4786_v49  ;;  %v4301_v1 = vld [vmem:[%s10442_s1 + $0x1a40] sm:$0xff]  ;;  %v5934_v49 = vpack.c.bf16 %v4311_v30, %v4308_v29  ;;  %v4310_v2 = vld [vmem:[%s10442_s1 + $0x1a88] sm:$0xff] }
 0x1bb   :  { %6088 = vmatpush1.bf16.msra.mxu1 %v6087_v25  ;;  %5915 = vmatprep.subr.bf16.mxu0 %v5914_v26  ;;  %v4304_v25 = vld [vmem:[%s10442_s1 + $0x1a58] sm:$0xff]  ;;  %v6105_v26 = vpack.c.bf16 %v4422_v16, %v4419_v10  ;;  %v5946_v10 = vpack.c.bf16 %v4329_v0, %v4326_v62  ;;  %v4442_v16 = vld [vmem:[%s10442_s1 + $0x1e90] sm:$0xff]  ;;  %v4449_v29 = vld [vmem:[%s10442_s1 + $0x1ec8] sm:$0xff] }
 0x1bc   :  { %6090 = vmatprep.subr.bf16.mxu1 %v6089_v31  ;;  %v4425_v31 = vld [vmem:[%s10442_s1 + $0x1e08] sm:$0xff]  ;;  %v5932_v4 = vpack.c.bf16 %v4304_v25, %v4301_v1  ;;  %v4332_v25 = vld [vmem:[%s10442_s1 + $0x1b38] sm:$0xff]  ;;  %v4452_v30 = vld [vmem:[%s10442_s1 + $0x1ee0] sm:$0xff] }
 0x1bd   :  { %v4445_v1 = vld [vmem:[%s10442_s1 + $0x1ea8] sm:$0xff]  ;;  %v9584_v62 = vld [vmem:[%s10443_s0 + $0x20] sm:$0xff]  ;;  %v4467_v0 = vld [vmem:[%s10442_s1 + $0x1f58] sm:$0xff] }
 0x1be   :  { %5917 = vmatpush1.bf16.msra.mxu0 %v5916_v61  ;;  %v6109_v61 = vpack.c.bf16 %v4428_v32, %v4425_v31 }
 0x1bf   :  { %6092 = vmatpush1.bf16.msra.mxu1 %v6091_v36  ;;  %5919 = vmatprep.subr.bf16.mxu0 %v5918_v38  ;;  %v4427_v36 = vld [vmem:[%s10442_s1 + $0x1e18] sm:$0xff]  ;;  %v4314_v38 = vld [vmem:[%s10442_s1 + $0x1aa8] sm:$0xff] }
 0x1c0   :  { %6094 = vmatprep.subr.bf16.mxu1 %v6093_v63  ;;  %v5936_v63 = vpack.c.bf16 %v4310_v2, %v4307_v35  ;;  %v6111_v43 = vpack.c.bf16 %v4427_v36, %v4424_v34  ;;  %v5938_v44 = vpack.c.bf16 %v4317_v39, %v4314_v38  ;;  %v4448_v34 = vld [vmem:[%s10442_s1 + $0x1ec0] sm:$0xff]  ;;  %v4331_v35 = vld [vmem:[%s10442_s1 + $0x1b30] sm:$0xff]  ;;  %v4334_v2 = vld [vmem:[%s10442_s1 + $0x1b48] sm:$0xff] }
 0x1c1   :  { %v4451_v36 = vld [vmem:[%s10442_s1 + $0x1ed8] sm:$0xff]  ;;  %v4338_v38 = vld [vmem:[%s10442_s1 + $0x1b68] sm:$0xff]  ;;  %v4341_v39 = vld [vmem:[%s10442_s1 + $0x1b80] sm:$0xff] }
 0x1c2   :  { %5921 = vmatpush1.bf16.msra.mxu0 %v5920_v37  ;;  %v6113_v37 = vpack.c.bf16 %v4434_v42, %v4431_v40  ;;  %v4455_v40 = vld [vmem:[%s10442_s1 + $0x1ef8] sm:$0xff]  ;;  %v4458_v42 = vld [vmem:[%s10442_s1 + $0x1f10] sm:$0xff]  ;;  %v5954_v46 = vpack.c.bf16 %v4341_v39, %v4338_v38  ;;  %v4360_v39 = vld [vmem:[%s10442_s1 + $0x1c00] sm:$0xff] }
 0x1c3   :  { %6096 = vmatpush1.bf16.msra.mxu1 %v6095_v57  ;;  %5923 = vmatprep.subr.bf16.mxu0 %v5922_v48  ;;  %v4433_v57 = vld [vmem:[%s10442_s1 + $0x1e48] sm:$0xff]  ;;  %v4320_v48 = vld [vmem:[%s10442_s1 + $0x1ad8] sm:$0xff]  ;;  %v4478_v38 = vld [vmem:[%s10442_s1 + $0x1fb0] sm:$0xff] }
 0x1c4   :  { %6098 = vmatprep.subr.bf16.mxu1 %v6097_v53  ;;  %v9460_v53 = vld [vmem:[%s10444_s2 + $0x3] sm:$0x7]  ;;  %v6115_v55 = vpack.c.bf16 %v4433_v57, %v4430_v45  ;;  %v5942_v18 = vpack.c.bf16 %v4323_v11, %v4320_v48  ;;  %v4454_v45 = vld [vmem:[%s10442_s1 + $0x1ef0] sm:$0xff]  ;;  %v6129_v57 = vpack.c.bf16 %v4458_v42, %v4455_v40  ;;  %v4457_v48 = vld [vmem:[%s10442_s1 + $0x1f08] sm:$0xff] }
 0x1c5   :  { %v1215_v5 = vrot.slane %v9460_v53, %v8271_v23  ;;  %v4396_v11 = vld [vmem:[%s10442_s1 + $0x1d20] sm:$0xff]  ;;  %v4363_v40 = vld [vmem:[%s10442_s1 + $0x1c18] sm:$0xff] }
 0x1c6   :  { %5925 = vmatpush1.bf16.msra.mxu0 %v5924_v27  ;;  %v4322_v27 = vld [vmem:[%s10442_s1 + $0x1ae8] sm:$0xff] }
 0x1c7   :  { %6100 = vmatpush1.bf16.msra.mxu1 %v6099_v58  ;;  %5927 = vmatprep.subr.bf16.mxu0 %v5926_v52  ;;  %v6117_v58 = vpack.c.bf16 %v4440_v50, %v4437_v60  ;;  %v4439_v52 = vld [vmem:[%s10442_s1 + $0x1e78] sm:$0xff]  ;;  %v5944_v6 = vpack.c.bf16 %v4322_v27, %v4319_v59  ;;  %v1570_v31 = vadd.f32 %v9311_v19, %v1215_v5  ;;  %v4466_v5 = vld [vmem:[%s10442_s1 + $0x1f50] sm:$0xff] }
 0x1c8   :  { %6102 = vmatprep.subr.bf16.mxu1 %v6101_v13  ;;  %v4446_v13 = vld [vmem:[%s10442_s1 + $0x1eb0] sm:$0xff]  ;;  %v6119_v8 = vpack.c.bf16 %v4439_v52, %v4436_v56  ;;  %v4399_v60 = vld [vmem:[%s10442_s1 + $0x1d38] sm:$0xff]  ;;  %v6131_v56 = vpack.c.bf16 %v4457_v48, %v4454_v45  ;;  %v4485_v45 = vld [vmem:[%s10442_s1 + $0x1fe8] sm:$0xff] }
 0x1c9   :  { %v6121_v24 = vpack.c.bf16 %v4446_v13, %v4443_v41  ;;  %v9566_v50 = vld [vmem:[%s10443_s0 + $0x18] sm:$0xff]  ;;  %v6253_v59 = vpack.c.bf16 %v4399_v60, %v4396_v11  ;;  %v4470_v41 = vld [vmem:[%s10442_s1 + $0x1f70] sm:$0xff]  ;;  %v4484_v48 = vld [vmem:[%s10442_s1 + $0x1fe0] sm:$0xff] }
 0x1ca   :  { %5929 = vmatpush1.bf16.msra.mxu0 %v5928_v17  ;;  %v4325_v17 = vld [vmem:[%s10442_s1 + $0x1b00] sm:$0xff]  ;;  %v4463_v52 = vld [vmem:[%s10442_s1 + $0x1f38] sm:$0xff]  ;;  %v4366_v11 = vld [vmem:[%s10442_s1 + $0x1c30] sm:$0xff] }
 0x1cb   :  { %6104 = vmatpush1.bf16.msra.mxu1 %v6103_v21  ;;  %5931 = vmatprep.subr.bf16.mxu0 %v5930_v22  ;;  %v4328_v21 = vld [vmem:[%s10442_s1 + $0x1b18] sm:$0xff]  ;;  %v4369_v60 = vld [vmem:[%s10442_s1 + $0x1c48] sm:$0xff] }
 0x1cc   :  { %6106 = vmatprep.subr.bf16.mxu1 %v6105_v26  ;;  %v4335_v26 = vld [vmem:[%s10442_s1 + $0x1b50] sm:$0xff] }
 0x1ce   :  { %5933 = vmatpush1.bf16.msra.mxu0 %v5932_v4  ;;  %v5948_v4 = vpack.c.bf16 %v4328_v21, %v4325_v17  ;;  %v4402_v17 = vld [vmem:[%s10442_s1 + $0x1d50] sm:$0xff]  ;;  %v4405_v21 = vld [vmem:[%s10442_s1 + $0x1d68] sm:$0xff] }
 0x1cf   :  { %6108 = vmatpush1.bf16.msra.mxu1 %v6107_v33  ;;  %5935 = vmatprep.subr.bf16.mxu0 %v5934_v49  ;;  %v6123_v33 = vpack.c.bf16 %v4445_v1, %v4442_v16  ;;  %v5950_v49 = vpack.c.bf16 %v4335_v26, %v4332_v25  ;;  %v4469_v16 = vld [vmem:[%s10442_s1 + $0x1f68] sm:$0xff]  ;;  %v6257_v26 = vpack.c.bf16 %v4405_v21, %v4402_v17 }
 0x1d0   :  { %6110 = vmatprep.subr.bf16.mxu1 %v6109_v61  ;;  %v6125_v61 = vpack.c.bf16 %v4452_v30, %v4449_v29  ;;  %v6139_v25 = vpack.c.bf16 %v4469_v16, %v4466_v5  ;;  %v4354_v29 = vld [vmem:[%s10442_s1 + $0x1bd0] sm:$0xff]  ;;  %v4357_v30 = vld [vmem:[%s10442_s1 + $0x1be8] sm:$0xff]  ;;  %v4375_v5 = vld [vmem:[%s10442_s1 + $0x1c78] sm:$0xff] }
 0x1d1   :  { %v4426_v16 = vld [vmem:[%s10442_s1 + $0x1e10] sm:$0xff]  ;;  %v4429_v17 = vld [vmem:[%s10442_s1 + $0x1e28] sm:$0xff] }
 0x1d2   :  { %5937 = vmatpush1.bf16.msra.mxu0 %v5936_v63  ;;  %v9542_v63 = vld [vmem:[%s10443_s0] sm:$0xff] }
 0x1d3   :  { %6112 = vmatpush1.bf16.msra.mxu1 %v6111_v43  ;;  %5939 = vmatprep.subr.bf16.mxu0 %v5938_v44  ;;  %v5952_v43 = vpack.c.bf16 %v4334_v2, %v4331_v35  ;;  %v6127_v44 = vpack.c.bf16 %v4451_v36, %v4448_v34  ;;  %v4479_v34 = vld [vmem:[%s10442_s1 + $0x1fb8] sm:$0xff]  ;;  %v4482_v35 = vld [vmem:[%s10442_s1 + $0x1fd0] sm:$0xff]  ;;  %v6259_v2 = vpack.c.bf16 %v4357_v30, %v4354_v29  ;;  %v4496_v29 = vld [vmem:[%s10442_s1 + $0x2040] sm:$0xff] }
 0x1d4   :  { %6114 = vmatprep.subr.bf16.mxu1 %v6113_v37  ;;  %v4340_v37 = vld [vmem:[%s10442_s1 + $0x1b78] sm:$0xff]  ;;  %v6145_v42 = vpack.c.bf16 %v4482_v35, %v4479_v34  ;;  %v4378_v30 = vld [vmem:[%s10442_s1 + $0x1c90] sm:$0xff] }
 0x1d5   :  { %v4435_v34 = vld [vmem:[%s10442_s1 + $0x1e58] sm:$0xff] }
 0x1d6   :  { %5941 = vmatpush1.bf16.msra.mxu0 %v5940_v54  ;;  %v4461_v54 = vld [vmem:[%s10442_s1 + $0x1f28] sm:$0xff] }
 0x1d7   :  { %6116 = vmatpush1.bf16.msra.mxu1 %v6115_v55  ;;  %5943 = vmatprep.subr.bf16.mxu0 %v5942_v18  ;;  %v4464_v55 = vld [vmem:[%s10442_s1 + $0x1f40] sm:$0xff]  ;;  %v5956_v18 = vpack.c.bf16 %v4340_v37, %v4337_v47  ;;  %v6263_v47 = vpack.c.bf16 %v4363_v40, %v4360_v39  ;;  %v4502_v40 = vld [vmem:[%s10442_s1 + $0x2070] sm:$0xff] }
 0x1d8   :  { %v4821_v22 = vpop.f32.mrb[4].mxu0  ;;  %6118 = vmatprep.subr.bf16.mxu1 %v6117_v58  ;;  %v6133_v27 = vpack.c.bf16 %v4464_v55, %v4461_v54  ;;  %v4460_v58 = vld [vmem:[%s10442_s1 + $0x1f20] sm:$0xff]  ;;  %v4487_v55 = vld [vmem:[%s10442_s1 + $0x1ff8] sm:$0xff] }
 0x1d9   :  { %v4822_v28 = vpop.f32.mrb[5].mxu0  ;;  %v6135_v13 = vpack.c.bf16 %v4463_v52, %v4460_v58  ;;  %v6267_v58 = vpack.c.bf16 %v4369_v60, %v4366_v11  ;;  %v6151_v52 = vpack.c.bf16 %v4487_v55, %v4484_v48  ;;  %v4508_v11 = vld [vmem:[%s10442_s1 + $0x20a0] sm:$0xff]  ;;  %v4390_v60 = vld [vmem:[%s10442_s1 + $0x1cf0] sm:$0xff] }
 0x1da   :  { %v4823_v32 = vadd.f32 %v4822_v28, %v4821_v22  ;;  %5945 = vmatpush1.bf16.msra.mxu0 %v5944_v6  ;;  %v4348_v6 = vld [vmem:[%s10442_s1 + $0x1ba0] sm:$0xff]  ;;  %v4473_v22 = vld [vmem:[%s10442_s1 + $0x1f88] sm:$0xff] }
 0x1db   :  { %6120 = vmatpush1.bf16.msra.mxu1 %v6119_v8  ;;  %5947 = vmatprep.subr.bf16.mxu0 %v5946_v10  ;;  %v4351_v8 = vld [vmem:[%s10442_s1 + $0x1bb8] sm:$0xff]  ;;  %v6137_v10 = vpack.c.bf16 %v4470_v41, %v4467_v0  ;;  %v4472_v28 = vld [vmem:[%s10442_s1 + $0x1f80] sm:$0xff]  ;;  %v4490_v41 = vld [vmem:[%s10442_s1 + $0x2010] sm:$0xff] }
 0x1dc   :  { %v9522_v19 = vadd.f32 %v4823_v32, %v1570_v31  ;;  %6122 = vmatprep.subr.bf16.mxu1 %v6121_v24  ;;  %v4476_v24 = vld [vmem:[%s10442_s1 + $0x1fa0] sm:$0xff]  ;;  %v6255_v1 = vpack.c.bf16 %v4351_v8, %v4348_v6  ;;  %v4475_v32 = vld [vmem:[%s10442_s1 + $0x1f98] sm:$0xff] }
 0x1dd   :  { %v6141_v31 = vpack.c.bf16 %v4476_v24, %v4473_v22  ;;  %v4497_v22 = vld [vmem:[%s10442_s1 + $0x2048] sm:$0xff]  ;;  %v4500_v24 = vld [vmem:[%s10442_s1 + $0x2060] sm:$0xff] }
 0x1de   :  { %3038 = vmatmul.mubr.f32.vlgmr.msra.gmra.mrb[22].mxu1 %v9542_v63  ;;  %5949 = vmatpush1.bf16.msra.mxu0 %v5948_v4  ;;  %v4408_v4 = vld [vmem:[%s10442_s1 + $0x1d80] sm:$0xff] }
 0x1df   :  { %6124 = vmatpush1.bf16.msra.mxu1 %v6123_v33  ;;  %5951 = vmatprep.subr.bf16.mxu0 %v5950_v49  ;;  %v4411_v33 = vld [vmem:[%s10442_s1 + $0x1d98] sm:$0xff]  ;;  %v9639_v49 = vld [vmem:[%s10443_s0 + $0x30] sm:$0xff] }
 0x1e0   :  { %6126 = vmatprep.subr.bf16.mxu1 %v6125_v61  ;;  %3108 = vmatprep.mubr.f32.mxu1 %v9566_v50  ;;  %v6143_v61 = vpack.c.bf16 %v4475_v32, %v4472_v28  ;;  %v6261_v36 = vpack.c.bf16 %v4411_v33, %v4408_v4  ;;  %v6273_v28 = vpack.c.bf16 %v4429_v17, %v4426_v16  ;;  %v4499_v4 = vld [vmem:[%s10442_s1 + $0x2058] sm:$0xff]  ;;  %v4432_v33 = vld [vmem:[%s10442_s1 + $0x1e40] sm:$0xff]  ;;  %v4498_v17 = vld [vmem:[%s10442_s1 + $0x2050] sm:$0xff] }
 0x1e1   :  { %v6157_v32 = vpack.c.bf16 %v4500_v24, %v4497_v22  ;;  %v6277_v39 = vpack.c.bf16 %v4435_v34, %v4432_v33  ;;  %v4521_v24 = vld [vmem:[%s10442_s1 + $0x2108] sm:$0xff] }
 0x1e2   :  { %5953 = vmatpush1.bf16.msra.mxu0 %v5952_v43  ;;  %v4414_v43 = vld [vmem:[%s10442_s1 + $0x1db0] sm:$0xff]  ;;  %v4453_v33 = vld [vmem:[%s10442_s1 + $0x1ee8] sm:$0xff] }
 0x1e3   :  { %6128 = vmatpush1.bf16.msra.mxu1 %v6127_v44  ;;  %5955 = vmatprep.subr.bf16.mxu0 %v5954_v46  ;;  %v4417_v44 = vld [vmem:[%s10442_s1 + $0x1dc8] sm:$0xff]  ;;  %v4488_v46 = vld [vmem:[%s10442_s1 + $0x2000] sm:$0xff] }
 0x1e4   :  { %6130 = vmatprep.subr.bf16.mxu1 %v6129_v57  ;;  %v6265_v57 = vpack.c.bf16 %v4417_v44, %v4414_v43  ;;  %v6149_v54 = vpack.c.bf16 %v4488_v46, %v4485_v45  ;;  %v4505_v43 = vld [vmem:[%s10442_s1 + $0x2088] sm:$0xff]  ;;  %v4438_v44 = vld [vmem:[%s10442_s1 + $0x1e70] sm:$0xff] }
 0x1e5   :  { %2303 = vmatmul.mubr.f32.vlgmr.msra.gmra.mrb[8].mxu0 %v9584_v62  ;;  %v4441_v45 = vld [vmem:[%s10442_s1 + $0x1e88] sm:$0xff] }
 0x1e6   :  { %5957 = vmatpush1.bf16.msra.mxu0 %v5956_v18  ;;  %2373 = vmatprep.mubr.f32.mxu0 %v6450_v3  ;;  %v4420_v18 = vld [vmem:[%s10442_s1 + $0x1de0] sm:$0xff]  ;;  %v4509_v46 = vld [vmem:[%s10442_s1 + $0x20a8] sm:$0xff]  ;;  %v6281_v48 = vpack.c.bf16 %v4441_v45, %v4438_v44 }
 0x1e7   :  { %6132 = vmatpush1.bf16.msra.mxu1 %v6131_v56  ;;  %6254 = vmatprep.subr.bf16.mxu0 %v6253_v59  ;;  %v4423_v56 = vld [vmem:[%s10442_s1 + $0x1df8] sm:$0xff] }
 0x1e8   :  { %6134 = vmatprep.subr.bf16.mxu1 %v6133_v27  ;;  %v4491_v59 = vld [vmem:[%s10442_s1 + $0x2018] sm:$0xff]  ;;  %v4494_v27 = vld [vmem:[%s10442_s1 + $0x2030] sm:$0xff]  ;;  %v6269_v0 = vpack.c.bf16 %v4423_v56, %v4420_v18  ;;  %v4492_v56 = vld [vmem:[%s10442_s1 + $0x2020] sm:$0xff] }
 0x1e9   :  { %v6153_v8 = vpack.c.bf16 %v4494_v27, %v4491_v59  ;;  %v4511_v18 = vld [vmem:[%s10442_s1 + $0x20b8] sm:$0xff] }
 0x1ea   :  { %v4495_v59 = vld [vmem:[%s10442_s1 + $0x2038] sm:$0xff] }
 0x1eb   :  { %6136 = vmatpush1.bf16.msra.mxu1 %v6135_v13  ;;  %v4372_v13 = vld [vmem:[%s10442_s1 + $0x1c60] sm:$0xff]  ;;  %v4515_v27 = vld [vmem:[%s10442_s1 + $0x20d8] sm:$0xff] }
 0x1ec   :  { %6138 = vmatprep.subr.bf16.mxu1 %v6137_v10  ;;  %v4493_v10 = vld [vmem:[%s10442_s1 + $0x2028] sm:$0xff] }
 0x1ed   :  { %4344 = vmatmul.mubr.msk.f32.vlgmr.msra.gmra.mrb[8].mxu0 %vm338_vm0, %v9639_v49 }
 0x1ee   :  { %6256 = vmatpush3.bf16.msra.mxu0 %v6255_v1  ;;  %3321 = vmatprep.mubr.f32.mxu0 %v9156_v7  ;;  %v4481_v7 = vld [vmem:[%s10442_s1 + $0x1fc8] sm:$0xff] }
 0x1ef   :  { %6140 = vmatpush1.bf16.msra.mxu1 %v6139_v25  ;;  %6258 = vmatprep.subr.bf16.mxu0 %v6257_v26  ;;  %v6147_v37 = vpack.c.bf16 %v4481_v7, %v4478_v38  ;;  %v6271_v25 = vpack.c.bf16 %v4375_v5, %v4372_v13  ;;  %v6155_v26 = vpack.c.bf16 %v4493_v10, %v4490_v41  ;;  %v4447_v10 = vld [vmem:[%s10442_s1 + $0x1eb8] sm:$0xff] }
 0x1f0   :  { %6142 = vmatprep.subr.bf16.mxu1 %v6141_v31  ;;  %v4381_v31 = vld [vmem:[%s10442_s1 + $0x1ca8] sm:$0xff]  ;;  %v6159_v38 = vpack.c.bf16 %v4499_v4, %v4496_v29  ;;  %v1211_v41 = vrot.slane %v9460_v53, %v9044_v12  ;;  %v6167_v13 = vpack.c.bf16 %v4511_v18, %v4508_v11  ;;  %v6285_v5 = vpack.c.bf16 %v4495_v59, %v4492_v56  ;;  %v4450_v4 = vld [vmem:[%s10442_s1 + $0x1ed0] sm:$0xff]  ;;  %v4532_v59 = vld [vmem:[%s10442_s1 + $0x2160] sm:$0xff] }
 0x1f1   :  { %v6291_v44 = vpack.c.bf16 %v4453_v33, %v4450_v4  ;;  %v4513_v11 = vld [vmem:[%s10442_s1 + $0x20c8] sm:$0xff]  ;;  %v4544_v33 = vld [vmem:[%s10442_s1 + $0x21c0] sm:$0xff] }
 0x1f2   :  { %6260 = vmatpush3.bf16.msra.mxu0 %v6259_v2  ;;  %v4503_v2 = vld [vmem:[%s10442_s1 + $0x2078] sm:$0xff] }
 0x1f3   :  { %6144 = vmatpush1.bf16.msra.mxu1 %v6143_v61  ;;  %6262 = vmatprep.subr.bf16.mxu0 %v6261_v36  ;;  %v4506_v61 = vld [vmem:[%s10442_s1 + $0x2090] sm:$0xff]  ;;  %v6275_v36 = vpack.c.bf16 %v4381_v31, %v4378_v30 }
 0x1f4   :  { %6146 = vmatprep.subr.bf16.mxu1 %v6145_v42  ;;  %v4387_v42 = vld [vmem:[%s10442_s1 + $0x1cd8] sm:$0xff]  ;;  %v6161_v7 = vpack.c.bf16 %v4506_v61, %v4503_v2 }
 0x1f5   :  { %v4523_v61 = vld [vmem:[%s10442_s1 + $0x2118] sm:$0xff] }
 0x1f6   :  { %6264 = vmatpush3.bf16.msra.mxu0 %v6263_v47  ;;  %v4512_v47 = vld [vmem:[%s10442_s1 + $0x20c0] sm:$0xff] }
 0x1f7   :  { %6148 = vmatpush1.bf16.msra.mxu1 %v6147_v37  ;;  %6266 = vmatprep.subr.bf16.mxu0 %v6265_v57  ;;  %v6163_v57 = vpack.c.bf16 %v4505_v43, %v4502_v40  ;;  %v6165_v55 = vpack.c.bf16 %v4512_v47, %v4509_v46  ;;  %v4526_v46 = vld [vmem:[%s10442_s1 + $0x2130] sm:$0xff]  ;;  %v4456_v47 = vld [vmem:[%s10442_s1 + $0x1f00] sm:$0xff] }
 0x1f8   :  { %v4856_v6 = vpop.f32.mrb[6].mxu0  ;;  %6150 = vmatprep.subr.bf16.mxu1 %v6149_v54  ;;  %v4393_v54 = vld [vmem:[%s10442_s1 + $0x1d08] sm:$0xff] }
 0x1f9   :  { %v4857_v21 = vpop.f32.mrb[7].mxu0 }
 0x1fa   :  { %v4858_v1 = vadd.f32 %v4857_v21, %v4856_v6  ;;  %6268 = vmatpush3.bf16.msra.mxu0 %v6267_v58  ;;  %v4518_v58 = vld [vmem:[%s10442_s1 + $0x20f0] sm:$0xff]  ;;  %v4501_v21 = vld [vmem:[%s10442_s1 + $0x2068] sm:$0xff] }
 0x1fb   :  { %6152 = vmatpush1.bf16.msra.mxu1 %v6151_v52  ;;  %6270 = vmatprep.subr.bf16.mxu0 %v6269_v0  ;;  %v1207_v52 = vrot.slane %v9460_v53, %v9041_v9  ;;  %v6283_v0 = vpack.c.bf16 %v4393_v54, %v4390_v60  ;;  %v4514_v6 = vld [vmem:[%s10442_s1 + $0x20d0] sm:$0xff]  ;;  %v6169_v16 = vpack.c.bf16 %v4518_v58, %v4515_v27  ;;  %v4517_v53 = vld [vmem:[%s10442_s1 + $0x20e8] sm:$0xff]  ;;  %v4536_v54 = vld [vmem:[%s10442_s1 + $0x2180] sm:$0xff] }
 0x1fc   :  { %6154 = vmatprep.subr.bf16.mxu1 %v6153_v8  ;;  %v9741_v35 = vadd.f32 %v4858_v1, %v9522_v19  ;;  %v4384_v19 = vld [vmem:[%s10442_s1 + $0x1cc0] sm:$0xff]  ;;  %v6171_v30 = vpack.c.bf16 %v4517_v53, %v4514_v6  ;;  %v6289_v31 = vpack.c.bf16 %v4501_v21, %v4498_v17  ;;  %v4533_v60 = vld [vmem:[%s10442_s1 + $0x2168] sm:$0xff]  ;;  %v4462_v27 = vld [vmem:[%s10442_s1 + $0x1f30] sm:$0xff] }
 0x1fd   :  { %v6279_v37 = vpack.c.bf16 %v4387_v42, %v4384_v19  ;;  %v4444_v8 = vld [vmem:[%s10442_s1 + $0x1ea0] sm:$0xff]  ;;  %v4527_v19 = vld [vmem:[%s10442_s1 + $0x2138] sm:$0xff]  ;;  %v4530_v42 = vld [vmem:[%s10442_s1 + $0x2150] sm:$0xff] }
 0x1fe   :  { %6272 = vmatpush3.bf16.msra.mxu0 %v6271_v25  ;;  %v4524_v1 = vld [vmem:[%s10442_s1 + $0x2120] sm:$0xff]  ;;  %v4465_v58 = vld [vmem:[%s10442_s1 + $0x1f48] sm:$0xff]  ;;  %v4542_v6 = vld [vmem:[%s10442_s1 + $0x21b0] sm:$0xff] }
 0x1ff   :  { %6156 = vmatpush1.bf16.msra.mxu1 %v6155_v26  ;;  %6274 = vmatprep.subr.bf16.mxu0 %v6273_v28  ;;  %v6287_v28 = vpack.c.bf16 %v4447_v10, %v4444_v8  ;;  %v6173_v2 = vpack.c.bf16 %v4524_v1, %v4521_v24  ;;  %v6299_v8 = vpack.c.bf16 %v4465_v58, %v4462_v27  ;;  %v4538_v53 = vld [vmem:[%s10442_s1 + $0x2190] sm:$0xff]  ;;  %v4468_v17 = vld [vmem:[%s10442_s1 + $0x1f60] sm:$0xff]  ;;  %v4471_v21 = vld [vmem:[%s10442_s1 + $0x1f78] sm:$0xff] }
 0x200   :  { %6158 = vmatprep.subr.bf16.mxu1 %v6157_v32  ;;  %v4520_v32 = vld [vmem:[%s10442_s1 + $0x2100] sm:$0xff]  ;;  %v4541_v24 = vld [vmem:[%s10442_s1 + $0x21a8] sm:$0xff]  ;;  %v4522_v1 = vld [vmem:[%s10442_s1 + $0x2110] sm:$0xff] }
 0x201   :  { %v6175_v45 = vpack.c.bf16 %v4523_v61, %v4520_v32  ;;  %v6187_v32 = vpack.c.bf16 %v4541_v24, %v4538_v53  ;;  %v4477_v61 = vld [vmem:[%s10442_s1 + $0x1fa8] sm:$0xff]  ;;  %v4556_v58 = vld [vmem:[%s10442_s1 + $0x2220] sm:$0xff]  ;;  %v4543_v24 = vld [vmem:[%s10442_s1 + $0x21b8] sm:$0xff] }
 0x202   :  { %6276 = vmatpush3.bf16.msra.mxu0 %v6275_v36  ;;  %v4504_v36 = vld [vmem:[%s10442_s1 + $0x2080] sm:$0xff] }
 0x203   :  { %6160 = vmatpush1.bf16.msra.mxu1 %v6159_v38  ;;  %6278 = vmatprep.subr.bf16.mxu0 %v6277_v39  ;;  %v4507_v38 = vld [vmem:[%s10442_s1 + $0x2098] sm:$0xff] }
 0x204   :  { %6162 = vmatprep.subr.bf16.mxu1 %v6161_v7 }
 0x206   :  { %6280 = vmatpush3.bf16.msra.mxu0 %v6279_v37 }
 0x207   :  { %6164 = vmatpush1.bf16.msra.mxu1 %v6163_v57  ;;  %6282 = vmatprep.subr.bf16.mxu0 %v6281_v48  ;;  %v4529_v57 = vld [vmem:[%s10442_s1 + $0x2148] sm:$0xff]  ;;  %v4510_v48 = vld [vmem:[%s10442_s1 + $0x20b0] sm:$0xff] }
 0x208   :  { %6166 = vmatprep.subr.bf16.mxu1 %v6165_v55  ;;  %v6179_v18 = vpack.c.bf16 %v4529_v57, %v4526_v46  ;;  %v6297_v56 = vpack.c.bf16 %v4513_v11, %v4510_v48  ;;  %v4553_v48 = vld [vmem:[%s10442_s1 + $0x2208] sm:$0xff]  ;;  %v4534_v11 = vld [vmem:[%s10442_s1 + $0x2170] sm:$0xff] }
 0x209   :  { %v1498_v22 = vpop.f32.mrb[10].mxu1 }
 0x20a   :  { %v9825_v25 = vadd.f32 %v1498_v22, %v1207_v52  ;;  %v1500_v26 = vpop.f32.mrb[11].mxu1  ;;  %6284 = vmatpush3.bf16.msra.mxu0 %v6283_v0  ;;  %v6181_v52 = vpack.c.bf16 %v4536_v54, %v4533_v60  ;;  %v4535_v0 = vld [vmem:[%s10442_s1 + $0x2178] sm:$0xff]  ;;  %v4537_v60 = vld [vmem:[%s10442_s1 + $0x2188] sm:$0xff] }
 0x20b   :  { %v9827_v29 = vadd.f32 %v1500_v26, %v1211_v41  ;;  %6168 = vmatpush1.bf16.msra.mxu1 %v6167_v13  ;;  %6286 = vmatprep.subr.bf16.mxu0 %v6285_v5  ;;  %v4516_v41 = vld [vmem:[%s10442_s1 + $0x20e0] sm:$0xff]  ;;  %v4519_v13 = vld [vmem:[%s10442_s1 + $0x20f8] sm:$0xff]  ;;  %v6183_v10 = vpack.c.bf16 %v4535_v0, %v4532_v59  ;;  %v4525_v26 = vld [vmem:[%s10442_s1 + $0x2128] sm:$0xff]  ;;  %v6313_v27 = vpack.c.bf16 %v4537_v60, %v4534_v11 }
 0x20c   :  { %v3537_v34 = vmax.f32 %v9102_v51, %v9825_v25  ;;  %6170 = vmatprep.subr.bf16.mxu1 %v6169_v16  ;;  %v4539_v5 = vld [vmem:[%s10442_s1 + $0x2198] sm:$0xff]  ;;  %v6301_v16 = vpack.c.bf16 %v4519_v13, %v4516_v41  ;;  %v6305_v4 = vpack.c.bf16 %v4525_v26, %v4522_v1  ;;  %v6449_v54 = vld [vmem:[%s10443_s0 + $0x28] sm:$0xff]  ;;  %v4552_v11 = vld [vmem:[%s10442_s1 + $0x2200] sm:$0xff] }
 0x20d   :  { %v3538_v39 = vmax.f32 %v9116_v14, %v9827_v29  ;;  %v1779_v40 = vpop.f32.mrb[12].mxu1  ;;  %3322 = vmatmul.mubr.f32.vlgmr.msra.gmra.mrb[10].mxu0 %v9542_v63  ;;  %v6293_v63 = vpack.c.bf16 %v4507_v38, %v4504_v36  ;;  %v6185_v22 = vpack.c.bf16 %v4542_v6, %v4539_v5  ;;  %v4547_v38 = vld [vmem:[%s10442_s1 + $0x21d8] sm:$0xff]  ;;  %v4489_v0 = vld [vmem:[%s10442_s1 + $0x2008] sm:$0xff]  ;;  %v4588_v5 = vld [vmem:[%s10442_s1 + $0x2320] sm:$0xff] }
 0x20e   :  { %v9859_v7 = vadd.f32 %v1779_v40, %v9741_v35  ;;  %v5136_v43 = vpop.f32.mrb[13].mxu1  ;;  %6288 = vmatpush3.bf16.msra.mxu0 %v6287_v28  ;;  %3391 = vmatprep.mubr.f32.mxu0 %v9566_v50  ;;  %v4459_v35 = vld [vmem:[%s10442_s1 + $0x1f18] sm:$0xff]  ;;  %v6177_v50 = vpack.c.bf16 %v4530_v42, %v4527_v19  ;;  %v4545_v28 = vld [vmem:[%s10442_s1 + $0x21c8] sm:$0xff]  ;;  %v4528_v40 = vld [vmem:[%s10442_s1 + $0x2140] sm:$0xff] }
 0x20f   :  { %6172 = vmatpush1.bf16.msra.mxu1 %v6171_v30  ;;  %6290 = vmatprep.subr.bf16.mxu0 %v6289_v31  ;;  %v6295_v55 = vpack.c.bf16 %v4459_v35, %v4456_v47  ;;  %v4548_v30 = vld [vmem:[%s10442_s1 + $0x21e0] sm:$0xff]  ;;  %v6303_v31 = vpack.c.bf16 %v4471_v21, %v4468_v17  ;;  %v4531_v19 = vld [vmem:[%s10442_s1 + $0x2158] sm:$0xff]  ;;  %v4554_v43 = vld [vmem:[%s10442_s1 + $0x2210] sm:$0xff] }
 0x210   :  { %v3539_v37 = vmax.f32 %v8546_v15, %v9859_v7  ;;  %6174 = vmatprep.subr.bf16.mxu1 %v6173_v2  ;;  %v4474_v2 = vld [vmem:[%s10442_s1 + $0x1f90] sm:$0xff]  ;;  %v6189_v36 = vpack.c.bf16 %v4548_v30, %v4545_v28  ;;  %v4551_v42 = vld [vmem:[%s10442_s1 + $0x21f8] sm:$0xff]  ;;  %v6309_v46 = vpack.c.bf16 %v4531_v19, %v4528_v40  ;;  %v4480_v35 = vld [vmem:[%s10442_s1 + $0x1fc0] sm:$0xff] }
 0x211   :  { %v4550_v47 = vld [vmem:[%s10442_s1 + $0x21f0] sm:$0xff]  ;;  %v6193_v57 = vpack.c.bf16 %v4554_v43, %v4551_v42  ;;  %v4559_v13 = vld [vmem:[%s10442_s1 + $0x2238] sm:$0xff]  ;;  %v4565_v26 = vld [vmem:[%s10442_s1 + $0x2268] sm:$0xff] }
 0x212   :  { %6292 = vmatpush3.bf16.msra.mxu0 %v6291_v44  ;;  %v9963_v44 = vld [vmem:[%s10443_s0 + $0x10] sm:$0xff]  ;;  %v6195_v59 = vpack.c.bf16 %v4553_v48, %v4550_v47  ;;  %v4591_v6 = vld [vmem:[%s10442_s1 + $0x2338] sm:$0xff]  ;;  %v6199_v53 = vpack.c.bf16 %v4559_v13, %v4556_v58  ;;  %v4597_v30 = vld [vmem:[%s10442_s1 + $0x2368] sm:$0xff] }
 0x213   :  { %6176 = vmatpush1.bf16.msra.mxu1 %v6175_v45  ;;  %6294 = vmatprep.subr.bf16.mxu0 %v6293_v63  ;;  %v6307_v45 = vpack.c.bf16 %v4477_v61, %v4474_v2  ;;  %v6191_v63 = vpack.c.bf16 %v4547_v38, %v4544_v33  ;;  %v6317_v17 = vpack.c.bf16 %v4591_v6, %v4588_v5  ;;  %v4562_v21 = vld [vmem:[%s10442_s1 + $0x2250] sm:$0xff]  ;;  %v4568_v61 = vld [vmem:[%s10442_s1 + $0x2280] sm:$0xff]  ;;  %v4549_v38 = vld [vmem:[%s10442_s1 + $0x21e8] sm:$0xff] }
 0x214   :  { %6178 = vmatprep.subr.bf16.mxu1 %v6177_v50  ;;  %v4483_v50 = vld [vmem:[%s10442_s1 + $0x1fd8] sm:$0xff]  ;;  %v4594_v28 = vld [vmem:[%s10442_s1 + $0x2350] sm:$0xff]  ;;  %v6203_v33 = vpack.c.bf16 %v4565_v26, %v4562_v21  ;;  %v4600_v42 = vld [vmem:[%s10442_s1 + $0x2380] sm:$0xff] }
 0x215   :  { %v6321_v2 = vpack.c.bf16 %v4597_v30, %v4594_v28  ;;  %v4571_v19 = vld [vmem:[%s10442_s1 + $0x2298] sm:$0xff]  ;;  %v4558_v13 = vld [vmem:[%s10442_s1 + $0x2230] sm:$0xff]  ;;  %v4561_v5 = vld [vmem:[%s10442_s1 + $0x2248] sm:$0xff] }
 0x216   :  { %6296 = vmatpush3.bf16.msra.mxu0 %v6295_v55  ;;  %v4557_v55 = vld [vmem:[%s10442_s1 + $0x2228] sm:$0xff]  ;;  %v4603_v43 = vld [vmem:[%s10442_s1 + $0x2398] sm:$0xff]  ;;  %v6331_v21 = vpack.c.bf16 %v4561_v5, %v4558_v13  ;;  %v4564_v26 = vld [vmem:[%s10442_s1 + $0x2260] sm:$0xff] }
 0x217   :  { %6180 = vmatpush1.bf16.msra.mxu1 %v6179_v18  ;;  %6298 = vmatprep.subr.bf16.mxu0 %v6297_v56  ;;  %v4560_v18 = vld [vmem:[%s10442_s1 + $0x2240] sm:$0xff]  ;;  %v6311_v56 = vpack.c.bf16 %v4483_v50, %v4480_v35  ;;  %v6325_v48 = vpack.c.bf16 %v4603_v43, %v4600_v42  ;;  %v4555_v60 = vld [vmem:[%s10442_s1 + $0x2218] sm:$0xff]  ;;  %v4573_v42 = vld [vmem:[%s10442_s1 + $0x22a8] sm:$0xff] }
 0x218   :  { %6182 = vmatprep.subr.bf16.mxu1 %v6181_v52  ;;  %v4486_v52 = vld [vmem:[%s10442_s1 + $0x1ff0] sm:$0xff]  ;;  %v6197_v41 = vpack.c.bf16 %v4560_v18, %v4557_v55  ;;  %v4577_v55 = vld [vmem:[%s10442_s1 + $0x22c8] sm:$0xff]  ;;  %v6327_v58 = vpack.c.bf16 %v4555_v60, %v4552_v11  ;;  %v4567_v28 = vld [vmem:[%s10442_s1 + $0x2278] sm:$0xff] }
 0x219   :  { %v4606_v18 = vld [vmem:[%s10442_s1 + $0x23b0] sm:$0xff]  ;;  %v4576_v60 = vld [vmem:[%s10442_s1 + $0x22c0] sm:$0xff]  ;;  %v4585_v5 = vld [vmem:[%s10442_s1 + $0x2308] sm:$0xff] }
 0x21a   :  { %6300 = vmatpush3.bf16.msra.mxu0 %v6299_v8  ;;  %v4563_v8 = vld [vmem:[%s10442_s1 + $0x2258] sm:$0xff]  ;;  %v4598_v11 = vld [vmem:[%s10442_s1 + $0x2370] sm:$0xff] }
 0x21b   :  { %6184 = vmatpush1.bf16.msra.mxu1 %v6183_v10  ;;  %6302 = vmatprep.subr.bf16.mxu0 %v6301_v16  ;;  %v4566_v10 = vld [vmem:[%s10442_s1 + $0x2270] sm:$0xff]  ;;  %v6315_v16 = vpack.c.bf16 %v4489_v0, %v4486_v52 }
 0x21c   :  { %6186 = vmatprep.subr.bf16.mxu1 %v6185_v22  ;;  %v4540_v22 = vld [vmem:[%s10442_s1 + $0x21a0] sm:$0xff]  ;;  %v6201_v1 = vpack.c.bf16 %v4566_v10, %v4563_v8  ;;  %v4583_v8 = vld [vmem:[%s10442_s1 + $0x22f8] sm:$0xff]  ;;  %v4582_v13 = vld [vmem:[%s10442_s1 + $0x22f0] sm:$0xff] }
 0x21d   :  { %v4612_v10 = vld [vmem:[%s10442_s1 + $0x23e0] sm:$0xff] }
 0x21e   :  { %3109 = vmatmul.mubr.f32.vlgmr.msra.gmra.mrb[22].mxu1 %v9963_v44  ;;  %6304 = vmatpush3.bf16.msra.mxu0 %v6303_v31  ;;  %v4569_v31 = vld [vmem:[%s10442_s1 + $0x2288] sm:$0xff] }
 0x21f   :  { %6188 = vmatpush1.bf16.msra.mxu1 %v6187_v32  ;;  %6306 = vmatprep.subr.bf16.mxu0 %v6305_v4  ;;  %v4572_v32 = vld [vmem:[%s10442_s1 + $0x22a0] sm:$0xff]  ;;  %v6319_v4 = vpack.c.bf16 %v4543_v24, %v4540_v22 }
 0x220   :  { %6190 = vmatprep.subr.bf16.mxu1 %v6189_v36  ;;  %3179 = vmatprep.mubr.f32.mxu1 %v6449_v54  ;;  %v4546_v36 = vld [vmem:[%s10442_s1 + $0x21d0] sm:$0xff]  ;;  %v6205_v40 = vpack.c.bf16 %v4572_v32, %v4569_v31  ;;  %v4589_v31 = vld [vmem:[%s10442_s1 + $0x2328] sm:$0xff] }
 0x221   :  { %v6323_v35 = vpack.c.bf16 %v4549_v38, %v4546_v36  ;;  %v4618_v32 = vld [vmem:[%s10442_s1 + $0x2410] sm:$0xff] }
 0x222   :  { %6308 = vmatpush3.bf16.msra.mxu0 %v6307_v45 }
 0x223   :  { %6192 = vmatpush1.bf16.msra.mxu1 %v6191_v63  ;;  %6310 = vmatprep.subr.bf16.mxu0 %v6309_v46  ;;  %v4575_v63 = vld [vmem:[%s10442_s1 + $0x22b8] sm:$0xff]  ;;  %v4578_v46 = vld [vmem:[%s10442_s1 + $0x22d0] sm:$0xff] }
 0x224   :  { %6194 = vmatprep.subr.bf16.mxu1 %v6193_v57  ;;  %v6207_v57 = vpack.c.bf16 %v4571_v19, %v4568_v61  ;;  %v6335_v61 = vpack.c.bf16 %v4567_v28, %v4564_v26  ;;  %v4570_v19 = vld [vmem:[%s10442_s1 + $0x2290] sm:$0xff] }
 0x225   :  { %v4610_v28 = vld [vmem:[%s10442_s1 + $0x23d0] sm:$0xff] }
 0x226   :  { %6312 = vmatpush3.bf16.msra.mxu0 %v6311_v56  ;;  %v4609_v56 = vld [vmem:[%s10442_s1 + $0x23c8] sm:$0xff] }
 0x227   :  { %6196 = vmatpush1.bf16.msra.mxu1 %v6195_v59  ;;  %6314 = vmatprep.subr.bf16.mxu0 %v6313_v27  ;;  %v4581_v59 = vld [vmem:[%s10442_s1 + $0x22e8] sm:$0xff]  ;;  %v4584_v27 = vld [vmem:[%s10442_s1 + $0x2300] sm:$0xff]  ;;  %v6329_v0 = vpack.c.bf16 %v4609_v56, %v4606_v18  ;;  %v4630_v56 = vld [vmem:[%s10442_s1 + $0x2470] sm:$0xff] }
 0x228   :  { %6198 = vmatprep.subr.bf16.mxu1 %v6197_v41  ;;  %v4580_v41 = vld [vmem:[%s10442_s1 + $0x22e0] sm:$0xff]  ;;  %v6213_v6 = vpack.c.bf16 %v4584_v27, %v4581_v59  ;;  %v4601_v18 = vld [vmem:[%s10442_s1 + $0x2388] sm:$0xff] }
 0x229   :  { %v6215_v22 = vpack.c.bf16 %v4583_v8, %v4580_v41  ;;  %v4633_v59 = vld [vmem:[%s10442_s1 + $0x2488] sm:$0xff]  ;;  %v4604_v8 = vld [vmem:[%s10442_s1 + $0x23a0] sm:$0xff] }
 0x22a   :  { %6316 = vmatpush3.bf16.msra.mxu0 %v6315_v16  ;;  %v4615_v16 = vld [vmem:[%s10442_s1 + $0x23f8] sm:$0xff]  ;;  %v4605_v27 = vld [vmem:[%s10442_s1 + $0x23a8] sm:$0xff]  ;;  %v6345_v41 = vpack.c.bf16 %v4633_v59, %v4630_v56  ;;  %v4638_v56 = vld [vmem:[%s10442_s1 + $0x24b0] sm:$0xff] }
 0x22b   :  { %6200 = vmatpush1.bf16.msra.mxu1 %v6199_v53  ;;  %6318 = vmatprep.subr.bf16.mxu0 %v6317_v17  ;;  %v4587_v53 = vld [vmem:[%s10442_s1 + $0x2318] sm:$0xff]  ;;  %v4590_v17 = vld [vmem:[%s10442_s1 + $0x2330] sm:$0xff]  ;;  %v6333_v24 = vpack.c.bf16 %v4615_v16, %v4612_v10 }
 0x22c   :  { %6202 = vmatprep.subr.bf16.mxu1 %v6201_v1  ;;  %v4586_v1 = vld [vmem:[%s10442_s1 + $0x2310] sm:$0xff]  ;;  %v6217_v30 = vpack.c.bf16 %v4590_v17, %v4587_v53  ;;  %v4607_v10 = vld [vmem:[%s10442_s1 + $0x23b8] sm:$0xff]  ;;  %v6347_v17 = vpack.c.bf16 %v4585_v5, %v4582_v13 }
 0x22d   :  { %v4894_v45 = vpop.f32.mrb[14].mxu1  ;;  %3392 = vmatmul.mubr.f32.vlgmr.msra.gmra.mrb[12].mxu0 %v9963_v44  ;;  %v4574_v44 = vld [vmem:[%s10442_s1 + $0x22b0] sm:$0xff]  ;;  %v6219_v36 = vpack.c.bf16 %v4589_v31, %v4586_v1  ;;  %v4611_v16 = vld [vmem:[%s10442_s1 + $0x23d8] sm:$0xff]  ;;  %v10215_v1 = vld [vmem:[%s10444_s2 + $0x6] sm:$0x7] }
 0x22e   :  { %v4895_v47 = vpop.f32.mrb[15].mxu1  ;;  %6320 = vmatpush3.bf16.msra.mxu0 %v6319_v4  ;;  %3461 = vmatprep.mubr.f32.mxu0 %v6449_v54  ;;  %v6209_v54 = vpack.c.bf16 %v4578_v46, %v4575_v63  ;;  %v6211_v52 = vpack.c.bf16 %v4577_v55, %v4574_v44  ;;  %v4621_v4 = vld [vmem:[%s10442_s1 + $0x2428] sm:$0xff]  ;;  %v4624_v63 = vld [vmem:[%s10442_s1 + $0x2440] sm:$0xff]  ;;  %v4627_v46 = vld [vmem:[%s10442_s1 + $0x2458] sm:$0xff] }
 0x22f   :  { %v10066_v50 = vadd.f32 %v4895_v47, %v4894_v45  ;;  %6204 = vmatpush1.bf16.msra.mxu1 %v6203_v33  ;;  %6322 = vmatprep.subr.bf16.mxu0 %v6321_v2  ;;  %v4593_v33 = vld [vmem:[%s10442_s1 + $0x2348] sm:$0xff]  ;;  %v4596_v2 = vld [vmem:[%s10442_s1 + $0x2360] sm:$0xff]  ;;  %v6337_v38 = vpack.c.bf16 %v4621_v4, %v4618_v32  ;;  %v4595_v45 = vld [vmem:[%s10442_s1 + $0x2358] sm:$0xff]  ;;  %v6341_v44 = vpack.c.bf16 %v4627_v46, %v4624_v63 }
 0x230   :  { %6206 = vmatprep.subr.bf16.mxu1 %v6205_v40  ;;  %v4592_v40 = vld [vmem:[%s10442_s1 + $0x2340] sm:$0xff]  ;;  %v6221_v43 = vpack.c.bf16 %v4596_v2, %v4593_v33  ;;  %v4599_v47 = vld [vmem:[%s10442_s1 + $0x2378] sm:$0xff]  ;;  %v4614_v53 = vld [vmem:[%s10442_s1 + $0x23f0] sm:$0xff]  ;;  %v2092_v33 = vrot.slane %v10215_v1, %v8271_v23 }
 0x231   :  { %v6233_v26 = vpack.c.bf16 %v4614_v53, %v4611_v16  ;;  %v4617_v31 = vld [vmem:[%s10442_s1 + $0x2408] sm:$0xff]  ;;  %v4620_v32 = vld [vmem:[%s10442_s1 + $0x2420] sm:$0xff] }
 0x232   :  { %6324 = vmatpush3.bf16.msra.mxu0 %v6323_v35  ;;  %v4602_v35 = vld [vmem:[%s10442_s1 + $0x2390] sm:$0xff]  ;;  %v3582_v53 = vld [vmem:[%s10445_s3 + $0x108] sm:$0xff] }
 0x233   :  { %6208 = vmatpush1.bf16.msra.mxu1 %v6207_v57  ;;  %6326 = vmatprep.subr.bf16.mxu0 %v6325_v48  ;;  %v6339_v57 = vpack.c.bf16 %v4573_v42, %v4570_v19  ;;  %v6223_v48 = vpack.c.bf16 %v4595_v45, %v4592_v40  ;;  %v6225_v55 = vpack.c.bf16 %v4602_v35, %v4599_v47  ;;  %v4623_v19 = vld [vmem:[%s10442_s1 + $0x2438] sm:$0xff]  ;;  %v4626_v42 = vld [vmem:[%s10442_s1 + $0x2450] sm:$0xff] }
 0x234   :  { %6210 = vmatprep.subr.bf16.mxu1 %v6209_v54  ;;  %v4579_v54 = vld [vmem:[%s10442_s1 + $0x22d8] sm:$0xff]  ;;  %v2447_v45 = vadd.f32 %v10066_v50, %v2092_v33  ;;  %v6241_v47 = vpack.c.bf16 %v4626_v42, %v4623_v19  ;;  %v4622_v35 = vld [vmem:[%s10442_s1 + $0x2430] sm:$0xff]  ;;  %v4629_v50 = vld [vmem:[%s10442_s1 + $0x2468] sm:$0xff] }
 0x235   :  { %v3586_v33 = vld [vmem:[%s10445_s3 + $0x128] sm:$0xff]  ;;  %v3552_v19 = vld [vmem:[%s10445_s3 + $0x18] sm:$0xff] }
 0x236   :  { %6328 = vmatpush3.bf16.msra.mxu0 %v6327_v58  ;;  %v4608_v58 = vld [vmem:[%s10442_s1 + $0x23c0] sm:$0xff] }
 0x237   :  { %6212 = vmatpush1.bf16.msra.mxu1 %v6211_v52  ;;  %6330 = vmatprep.subr.bf16.mxu0 %v6329_v0  ;;  %v6343_v52 = vpack.c.bf16 %v4579_v54, %v4576_v60  ;;  %v6227_v0 = vpack.c.bf16 %v4601_v18, %v4598_v11  ;;  %v4628_v54 = vld [vmem:[%s10442_s1 + $0x2460] sm:$0xff]  ;;  %v4635_v18 = vld [vmem:[%s10442_s1 + $0x2498] sm:$0xff] }
 0x238   :  { %6214 = vmatprep.subr.bf16.mxu1 %v6213_v6  ;;  %v6229_v6 = vpack.c.bf16 %v4608_v58, %v4605_v27  ;;  %v6249_v27 = vpack.c.bf16 %v4638_v56, %v4635_v18  ;;  %v4634_v58 = vld [vmem:[%s10442_s1 + $0x2490] sm:$0xff]  ;;  %v3574_v56 = vld [vmem:[%s10445_s3 + $0xc8] sm:$0xff] }
 0x23a   :  { %6332 = vmatpush3.bf16.msra.mxu0 %v6331_v21  ;;  %v6231_v21 = vpack.c.bf16 %v4607_v10, %v4604_v8 }
 0x23b   :  { %6216 = vmatpush1.bf16.msra.mxu1 %v6215_v22  ;;  %6334 = vmatprep.subr.bf16.mxu0 %v6333_v24  ;;  %v4636_v22 = vld [vmem:[%s10442_s1 + $0x24a0] sm:$0xff]  ;;  %v4639_v24 = vld [vmem:[%s10442_s1 + $0x24b8] sm:$0xff] }
 0x23c   :  { %6218 = vmatprep.subr.bf16.mxu1 %v6217_v30  ;;  %v4613_v30 = vld [vmem:[%s10442_s1 + $0x23e8] sm:$0xff]  ;;  %v6350_v4 = vpack.c.bf16 %v4639_v24, %v4636_v22  ;;  %v3565_v24 = vld [vmem:[%s10445_s3 + $0x80] sm:$0xff] }
 0x23d   :  { %v6235_v2 = vpack.c.bf16 %v4613_v30, %v4610_v28  ;;  %v3549_v30 = vld [vmem:[%s10445_s3] sm:$0xff] }
 0x23e   :  { %6336 = vmatpush3.bf16.msra.mxu0 %v6335_v61  ;;  %v6237_v61 = vpack.c.bf16 %v4620_v32, %v4617_v31  ;;  %v3550_v31 = vld [vmem:[%s10445_s3 + $0x8] sm:$0xff] }
 0x23f   :  { %6220 = vmatpush1.bf16.msra.mxu1 %v6219_v36  ;;  %6338 = vmatprep.subr.bf16.mxu0 %v6337_v38  ;;  %v4616_v36 = vld [vmem:[%s10442_s1 + $0x2400] sm:$0xff]  ;;  %v4619_v38 = vld [vmem:[%s10442_s1 + $0x2418] sm:$0xff]  ;;  %v6354_v32 = vpack.c.bf16 %v3550_v31, %v3549_v30 }
 0x240   :  { %6222 = vmatprep.subr.bf16.mxu1 %v6221_v43  ;;  %v6239_v46 = vpack.c.bf16 %v4619_v38, %v4616_v36  ;;  %v3568_v36 = vld [vmem:[%s10445_s3 + $0x98] sm:$0xff] }
 0x241   :  { %v3564_v30 = vld [vmem:[%s10445_s3 + $0x78] sm:$0xff] }
 0x242   :  { %6340 = vmatpush3.bf16.msra.mxu0 %v6339_v57  ;;  %v4625_v57 = vld [vmem:[%s10442_s1 + $0x2448] sm:$0xff] }
 0x243   :  { %6224 = vmatpush1.bf16.msra.mxu1 %v6223_v48  ;;  %6342 = vmatprep.subr.bf16.mxu0 %v6341_v44  ;;  %v4632_v44 = vld [vmem:[%s10442_s1 + $0x2480] sm:$0xff]  ;;  %v6243_v11 = vpack.c.bf16 %v4625_v57, %v4622_v35  ;;  %v3554_v57 = vld [vmem:[%s10445_s3 + $0x28] sm:$0xff] }
 0x244   :  { %6226 = vmatprep.subr.bf16.mxu1 %v6225_v55  ;;  %v6245_v60 = vpack.c.bf16 %v4632_v44, %v4629_v50  ;;  %v4631_v55 = vld [vmem:[%s10442_s1 + $0x2478] sm:$0xff]  ;;  %v3553_v35 = vld [vmem:[%s10445_s3 + $0x20] sm:$0xff]  ;;  %v3571_v44 = vld [vmem:[%s10445_s3 + $0xb0] sm:$0xff] }
 0x245   :  { %v6247_v59 = vpack.c.bf16 %v4631_v55, %v4628_v54  ;;  %v3589_v50 = vld [vmem:[%s10445_s3 + $0x140] sm:$0xf]  ;;  %v3556_v54 = vld [vmem:[%s10445_s3 + $0x38] sm:$0xff] }
 0x246   :  { %6344 = vmatpush3.bf16.msra.mxu0 %v6343_v52  ;;  %v4637_v52 = vld [vmem:[%s10442_s1 + $0x24a8] sm:$0xff]  ;;  %v3573_v55 = vld [vmem:[%s10445_s3 + $0xc0] sm:$0xff] }
 0x247   :  { %6228 = vmatpush1.bf16.msra.mxu1 %v6227_v0  ;;  %6346 = vmatprep.subr.bf16.mxu0 %v6345_v41  ;;  %v6251_v0 = vpack.c.bf16 %v4637_v52, %v4634_v58  ;;  %v6368_v58 = vpack.c.bf16 %v3574_v56, %v3573_v55  ;;  %v3575_v52 = vld [vmem:[%s10445_s3 + $0xd0] sm:$0xff] }
 0x248   :  { %6230 = vmatprep.subr.bf16.mxu1 %v6229_v6 }
 0x24a   :  { %6348 = vmatpush3.bf16.msra.mxu0 %v6347_v17  ;;  %v3583_v17 = vld [vmem:[%s10445_s3 + $0x110] sm:$0xff] }
 0x24b   :  { %6232 = vmatpush1.bf16.msra.mxu1 %v6231_v21  ;;  %6349 = vmatprep.subr.bf16.mxu0 %v6451_v20  ;;  %v3584_v21 = vld [vmem:[%s10445_s3 + $0x118] sm:$0xff] }
 0x24c   :  { %6234 = vmatprep.subr.bf16.mxu1 %v6233_v26  ;;  %v6388_v22 = vpack.c.bf16 %v3584_v21, %v3583_v17  ;;  %v3566_v26 = vld [vmem:[%s10445_s3 + $0x88] sm:$0xff] }
 0x24d   :  { %v4929_v40 = vpop.f32.mrb[16].mxu1  ;;  %3462 = vmatmul.mubr.f32.vlgmr.msra.gmra.mrb[14].mxu0 %v9584_v62  ;;  %v6352_v28 = vpack.c.bf16 %v3566_v26, %v3565_v24  ;;  %v3562_v17 = vld [vmem:[%s10445_s3 + $0x68] sm:$0xff]  ;;  %v3580_v24 = vld [vmem:[%s10445_s3 + $0xf8] sm:$0xff] }
 0x24e   :  { %v4930_v43 = vpop.f32.mrb[17].mxu1  ;;  %6351 = vmatpush3.bf16.msra.mxu0 %v6350_v4  ;;  %5148 = vmatprep.mubr.msk.f32.mxu0 %vm6452_vm1, %v6450_v3  ;;  %v3585_v4 = vld [vmem:[%s10445_s3 + $0x120] sm:$0xff] }
 0x24f   :  { %v4931_v63 = vadd.f32 %v4930_v43, %v4929_v40  ;;  %6236 = vmatpush1.bf16.msra.mxu1 %v6235_v2  ;;  %6353 = vmatprep.subr.bf16.mxu0 %v6352_v28  ;;  %v6391_v2 = vpack.c.bf16 %v3586_v33, %v3585_v4  ;;  %v3551_v40 = vld [vmem:[%s10445_s3 + $0x10] sm:$0xff] }
 0x250   :  { %6238 = vmatprep.subr.bf16.mxu1 %v6237_v61  ;;  %v3567_v61 = vld [vmem:[%s10445_s3 + $0x90] sm:$0xff]  ;;  %v6358_v42 = vpack.c.bf16 %v3552_v19, %v3551_v40 }
 0x251   :  { %v2517_v48 = vadd.f32 %v4931_v63, %v2447_v45  ;;  %5149 = vmatmul.mubr.msk.f32.vlgmr.msra.gmra.mrb[16].mxu0 %vm338_vm0, %v9639_v49  ;;  %v6356_v38 = vpack.c.bf16 %v3568_v36, %v3567_v61  ;;  %v3587_v43 = vld [vmem:[%s10445_s3 + $0x130] sm:$0xff]  ;;  %v3588_v45 = vld [vmem:[%s10445_s3 + $0x138] sm:$0xff]  ;;  %v4640_v36 = vld [vmem:[%s10444_s2 + $0x9] sm:$0x7] }
 0x252   :  { %6355 = vmatpush3.bf16.msra.mxu0 %v6354_v32  ;;  %v6394_v63 = vpack.c.bf16 %v3588_v45, %v3587_v43  ;;  %v3563_v28 = vld [vmem:[%s10445_s3 + $0x70] sm:$0xff] }
 0x253   :  { %6240 = vmatpush1.bf16.msra.mxu1 %v6239_v46  ;;  %6357 = vmatprep.subr.bf16.mxu0 %v6356_v38  ;;  %v3569_v46 = vld [vmem:[%s10445_s3 + $0xa0] sm:$0xff]  ;;  %v6382_v31 = vpack.c.bf16 %v3564_v30, %v3563_v28  ;;  %v2969_v38 = vrot.slane %v4640_v36, %v8271_v23 }
 0x254   :  { %6242 = vmatprep.subr.bf16.mxu1 %v6241_v47  ;;  %v3570_v47 = vld [vmem:[%s10445_s3 + $0xa8] sm:$0xff] }
 0x256   :  { %6359 = vmatpush3.bf16.msra.mxu0 %v6358_v42 }
 0x257   :  { %6244 = vmatpush1.bf16.msra.mxu1 %v6243_v11  ;;  %v3572_v11 = vld [vmem:[%s10445_s3 + $0xb8] sm:$0xff] }
 0x258   :  { %6246 = vmatprep.subr.bf16.mxu1 %v6245_v60  ;;  %v6364_v60 = vpack.c.bf16 %v3572_v11, %v3571_v44  ;;  %v2084_v11 = vrot.slane %v10215_v1, %v9041_v9 }
 0x25b   :  { %6248 = vmatpush1.bf16.msra.mxu1 %v6247_v59  ;;  %v3557_v59 = vld [vmem:[%s10445_s3 + $0x40] sm:$0xff] }
 0x25c   :  { %6250 = vmatprep.subr.bf16.mxu1 %v6249_v27  ;;  %v3558_v27 = vld [vmem:[%s10445_s3 + $0x48] sm:$0xff] }
 0x25e   :  { %3180 = vmatmul.mubr.f32.vlgmr.msra.gmra.mrb[22].mxu1 %v9584_v62  ;;  %v3581_v62 = vld [vmem:[%s10445_s3 + $0x100] sm:$0xff] }
 0x25f   :  { %6252 = vmatpush1.bf16.msra.mxu1 %v6251_v0  ;;  %3250 = vmatprep.mubr.f32.mxu1 %v6450_v3  ;;  %v3576_v0 = vld [vmem:[%s10445_s3 + $0xd8] sm:$0xff] }
 0x260   :  { %6384 = vmatprep.subr.bf16.mxu1 %v6451_v20 }
 0x266   :  { %4641 = vmatmul.mubr.msk.f32.vlgmr.msra.gmra.mrb[22].mxu1 %vm338_vm0, %v9639_v49  ;;  %v6385_v49 = vpack.c.bf16 %v3582_v53, %v3581_v62  ;;  %v3578_v62 = vld [vmem:[%s10445_s3 + $0xe8] sm:$0xff] }
 0x267   :  { %5169 = vmatprep.mubr.msk.f32.mxu1 %vm6452_vm1, %v6450_v3 }
 0x268   :  { %6386 = vmatpush3.bf16.msra.mxu1 %v6385_v49  ;;  %v3561_v49 = vld [vmem:[%s10445_s3 + $0x60] sm:$0xff] }
 0x269   :  { %6387 = vmatprep.subr.bf16.mxu1 %v6451_v20  ;;  %v6378_v21 = vpack.c.bf16 %v3562_v17, %v3561_v49 }
 0x26c   :  { %6389 = vmatpush3.bf16.msra.mxu1 %v6388_v22  ;;  %v3579_v22 = vld [vmem:[%s10445_s3 + $0xf0] sm:$0xff] }
 0x26d   :  { %v4964_v41 = vpop.f32.mrb[18].mxu1  ;;  %6390 = vmatprep.subr.bf16.mxu1 %v6451_v20  ;;  %v6380_v26 = vpack.c.bf16 %v3580_v24, %v3579_v22 }
 0x26e   :  { %v4965_v13 = vpop.f32.mrb[19].mxu1 }
 0x26f   :  { %v4966_v5 = vadd.f32 %v4965_v13, %v4964_v41  ;;  %v6370_v41 = vpack.c.bf16 %v3558_v27, %v3557_v59  ;;  %v6372_v13 = vpack.c.bf16 %v3576_v0, %v3575_v52 }
 0x270   :  { %6392 = vmatpush3.bf16.msra.mxu1 %v6391_v2 }
 0x271   :  { %v2587_v6 = vadd.f32 %v4966_v5, %v2517_v48  ;;  %v2656_v8 = vpop.f32.mrb[20].mxu1  ;;  %6393 = vmatprep.subr.bf16.mxu1 %v6451_v20  ;;  %v6360_v20 = vpack.c.bf16 %v3570_v47, %v3569_v46  ;;  %v6362_v48 = vpack.c.bf16 %v3554_v57, %v3553_v35  ;;  %v3559_v5 = vld [vmem:[%s10445_s3 + $0x50] sm:$0xff] }
 0x272   :  { %v5143_v10 = vpop.f32.mrb[21].mxu1 }
 0x273   :  { %v10287_v16 = vadd.f32 %v2656_v8, %v2587_v6  ;;  %6361 = vmatprep.subr.bf16.mxu0 %v6360_v20  ;;  %v3560_v6 = vld [vmem:[%s10445_s3 + $0x58] sm:$0xff]  ;;  %v3577_v10 = vld [vmem:[%s10445_s3 + $0xe0] sm:$0xff] }
 0x274   :  { %6395 = vmatpush3.bf16.msra.mxu1 %v6394_v63  ;;  %6363 = vmatpush3.bf16.msra.mxu0 %v6362_v48  ;;  %v6374_v8 = vpack.c.bf16 %v3560_v6, %v3559_v5  ;;  %v6376_v53 = vpack.c.bf16 %v3578_v62, %v3577_v10 }
 0x275   :  { %5167 = vmatprep.subr.mxu1 %v6450_v3  ;;  %v3555_v3 = vld [vmem:[%s10445_s3 + $0x30] sm:$0xff]  ;;  %6365 = vmatprep.subr.bf16.mxu0 %v6364_v60  ;;  %v2961_v60 = vrot.slane %v4640_v36, %v9041_v9 }
 0x276   :  { %v6366_v18 = vpack.c.bf16 %v3556_v54, %v3555_v3  ;;  %v2088_v3 = vrot.slane %v10215_v1, %v9044_v12  ;;  %v2965_v54 = vrot.slane %v4640_v36, %v9044_v12 }
 0x278   :  { %5168 = vmatpush3.msk.msra.mxu1 %vm3601_vm2, %v3589_v50  ;;  %6367 = vmatpush3.bf16.msra.mxu0 %v6366_v18 }
 0x279   :  { %6369 = vmatprep.subr.bf16.mxu0 %v6368_v58 }
 0x27c   :  { %6371 = vmatpush3.bf16.msra.mxu0 %v6370_v41  ;;  %v4643_v41 = vld [vmem:[%s10446_s4] ss:$0 sm:$0xff] }
 0x27d   :  { %6373 = vmatprep.subr.bf16.mxu0 %v6372_v13 }
 0x280   :  { %6375 = vmatpush3.bf16.msra.mxu0 %v6374_v8 }
 0x281   :  { %6377 = vmatprep.subr.bf16.mxu0 %v6376_v53 }
 0x284   :  { %6379 = vmatpush3.bf16.msra.mxu0 %v6378_v21 }
 0x285   :  { %6381 = vmatprep.subr.bf16.mxu0 %v6380_v26 }
 0x288   :  { %6383 = vmatpush3.bf16.msra.mxu0 %v6382_v31 }
 0x2c0   :  { %v2375_v32 = vpop.f32.mrb[8].mxu0 }
 0x2c1   :  { %v2377_v4 = vpop.f32.mrb[9].mxu0  ;;  %v6402_v18 = vadd.f32 %v2375_v32, %v2084_v11 }
 0x2c2   :  { %v6403_v59 = vadd.f32 %v2377_v4, %v2088_v3 }
 0x2e0   :  { %v5002_v33 = vpop.f32.mrb[10].mxu0 }
 0x2e1   :  { %v5003_v2 = vpop.f32.mrb[11].mxu0 }
 0x2e2   :  { %v5004_v61 = vadd.f32 %v5003_v2, %v5002_v33 }
 0x2e4   :  { %v3324_v42 = vadd.f32 %v5004_v61, %v2969_v38 }
 0x300   :  { %v5037_v40 = vpop.f32.mrb[12].mxu0 }
 0x301   :  { %v5038_v19 = vpop.f32.mrb[13].mxu0 }
 0x302   :  { %v5039_v43 = vadd.f32 %v5038_v19, %v5037_v40 }
 0x304   :  { %v3394_v45 = vadd.f32 %v5039_v43, %v3324_v42 }
 0x320   :  { %v5072_v63 = vpop.f32.mrb[14].mxu0 }
 0x321   :  { %v5073_v46 = vpop.f32.mrb[15].mxu0 }
 0x322   :  { %v5074_v47 = vadd.f32 %v5073_v46, %v5072_v63 }
 0x324   :  { %v3464_v20 = vadd.f32 %v5074_v47, %v3394_v45  ;;  %v3533_v35 = vpop.f32.mrb[16].mxu0 }
 0x325   :  { %v5150_v57 = vpop.f32.mrb[17].mxu0 }
 0x326   :  { %v3534_v48 = vadd.f32 %v3533_v35, %v3464_v20 }
 0x328   :  { %v3542_v50 = vmax.f32 %v10287_v16, %v3534_v48 }
 0x32a   :  { %v3545_v44 = vmax.f32 %v3539_v37, %v3542_v50 }
 0x32c   :  { %v3548_v23 = vmax.f32 %v3545_v44, 0.0 }
 0x32e   :  { %5170 = vmatmul.mubr.msk.f32.vlgmr.msra.gmra.mrb[24].mxu1 %vm3597_vm3, %v3548_v23 }
 0x339   :  { %v3252_v55 = vpop.f32.mrb[22].mxu1 }
 0x33a   :  { %v6404_v16 = vadd.f32 %v3252_v55, %v2961_v60  ;;  %v3254_v56 = vpop.f32.mrb[23].mxu1 }
 0x33b   :  { %v6405_v15 = vadd.f32 %v3254_v56, %v2965_v54 }
 0x33c   :  { %v3540_v7 = vmax.f32 %v6402_v18, %v6404_v16 }
 0x33d   :  { %v3541_v37 = vmax.f32 %v6403_v59, %v6405_v15 }
 0x33e   :  { %v3543_v27 = vmax.f32 %v3537_v34, %v3540_v7 }
 0x33f   :  { %v3544_v9 = vmax.f32 %v3538_v39, %v3541_v37 }
 0x340   :  { %v3546_v1 = vmax.f32 %v3543_v27, 0.0 }
 0x341   :  { %v3547_v58 = vmax.f32 %v3544_v9, 0.0 }
 0x343   :  { %3669 = vmatprep.mubr.f32.mxu0 %v3547_v58 }
 0x344   :  { %3670 = vmatmul.mubr.f32.vlgmr.msra.gmra.mrb[18].mxu0 %v3546_v1 }
 0x401   :  { %v3741_v12 = vpop.f32.mrb[24].mxu1 }
 0x402   :  { %v5171_v52 = vpop.f32.mrb[25].mxu1 }
 0x417   :  { %v5110_v0 = vpop.f32.mrb[18].mxu0 }
 0x418   :  { %v5111_v13 = vpop.f32.mrb[19].mxu0 }
 0x419   :  { %v5112_v5 = vadd.f32 %v5111_v13, %v5110_v0 }
 0x41b   :  { %v3672_v6 = vadd.f32 %v5112_v5, %v4643_v41 }
 0x41d   :  { %v3742_v51 = vadd.f32 %v3741_v12, %v3672_v6 }
 0x41f   :  { %3745 = vst [vmem:[%s10447_s5] sm:$0xff] %v3742_v51 }

</bundles_post_ra>
